<compile_context>
chip_gen: v7x
topology: tpu7x:2x2x1
jax: 0.10.0
libtpu: 0.0.40
codegen_flags: <defaults>
</compile_context>

<pallas_src>
import functools

import jax
import jax.numpy as jnp
import numpy as np
from jax import lax
from jax.experimental import pallas as pl
from jax.experimental.pallas import tpu as pltpu

_LANE = 128


def _choose_batch_tile(B, C, HW, target_bytes=6 << 20):
    """Largest divisor of B whose (Bt, C, HW) f32 tile is <= ~target_bytes,
    preferring configurations that leave a grid of length >= 2 (megacore)."""
    hw_pad = -(-HW // _LANE) * _LANE
    per_sample = C * hw_pad * 4
    target_bt = max(1, target_bytes // per_sample)
    divisors = [d for d in range(1, B + 1) if B % d == 0]
    good = [d for d in divisors if d <= target_bt and (B // d) >= 2]
    if good:
        return max(good)
    ok = [d for d in divisors if d <= target_bt]
    return max(ok) if ok else 1


def _choose_channel_chunk(C):
    """Channel slab size for the fused chunked reduce (bounds live temps)."""
    for c in (256, 128):
        if C > c and C % c == 0:
            return c
    return C


def _head_kernel(x_ref, pool_ref, mask_ref, *, chunk_c):
    """One grid step == Bt batch elements.

    x_ref    : (Bt, C, HW)  backbone features (C on sublanes, HW on lanes)
    pool_ref : (Bt, 1, C)   GeM-pooled feature (pre-BN), lane-dense over C
    mask_ref : (Bt, 1, HW)  person mask (flattened spatial), lane-dense
    """
    Bt, C, HW = x_ref.shape
    n_chunks = C // chunk_c

    def body(i, sq_acc):
        off = pl.multiple_of(i * chunk_c, chunk_c)
        xs = x_ref[:, pl.ds(off, chunk_c), :]                  # (Bt, Cc, HW)
        x2 = xs * xs                                           # shared by both reduces
        x3 = x2 * xs
        # GeM pooling, p = 3: (mean(x^3) + 1e-12) ** (1/3), reduce over HW (lanes)
        pooled = jnp.power(jnp.mean(x3, axis=-1) + 1e-12,
                           jnp.float32(1.0 / 3.0))             # (Bt, Cc)
        pool_ref[:, :, pl.ds(off, chunk_c)] = pooled.reshape(Bt, 1, chunk_c)
        # partial sum of squares over channels for the per-pixel L2 norm
        return sq_acc + jnp.sum(x2, axis=1)                    # (Bt, HW)

    sq = lax.fori_loop(0, n_chunks, body,
                       jnp.zeros((Bt, HW), jnp.float32), unroll=True)

    # compute_mask: L2 norm over channels, min/max normalized PER SAMPLE over HW
    norms = jnp.sqrt(sq)                                       # (Bt, HW)
    norms = norms - jnp.min(norms, axis=-1, keepdims=True)
    norms = norms / (jnp.max(norms, axis=-1, keepdims=True) + 1e-12)
    mask_ref[...] = norms.reshape(Bt, 1, HW)


@jax.jit
def embed_net_head(x_nchw, w_fold, b_fold):
    """Pallas implementation of embed_net forward (post-backbone, eval,
    with_feature=True semantics).

    x_nchw : (B, C, H, W) float32 backbone feature map (NCHW, as in PyTorch)
    w_fold : (C, class_num) classifier weight with the eval-mode BN affine
             already folded in (see fold_bn_classifier)
    b_fold : (class_num,) bias produced by the same fold
    returns (feat_pool (B,C), logits (B,NC), x (B,C,H,W), person_mask (B,1,H,W))
    """
    B, C, H, W = x_nchw.shape
    HW = H * W

    # Pure reshape of contiguous NCHW -> (B, C, HW): no data movement in HBM.
    x_flat = x_nchw.reshape(B, C, HW)

    bt = _choose_batch_tile(B, C, HW)
    chunk_c = _choose_channel_chunk(C)

    # VMEM budget for this block config (double-buffered input + per-slab
    # temporaries + outputs), clamped so the same limit is legal on
    # v5e (16 MiB default) / v6e (32 MiB default) / v7x (64 MiB physical).
    hw_pad = -(-HW // _LANE) * _LANE
    c_pad = -(-C // _LANE) * _LANE
    est = (2 * bt * C * hw_pad * 4            # double-buffered input tile
           + 3 * bt * chunk_c * hw_pad * 4    # xs / x^2 / x^3 slab temporaries
           + 4 * bt * (c_pad + hw_pad) * 4    # double-buffered outputs
           + bt * hw_pad * 4)                 # norm accumulator carry
    vmem_limit = int(min(max(2 * est, 32 << 20), 48 << 20))

    flops = 4 * B * C * HW                    # x^2, x^3, two reductions
    transcendentals = B * (C + HW)            # cube roots + sqrts
    bytes_accessed = 4 * (B * C * HW + B * C + B * HW)

    pool_b1c, mask_b1hw = pl.pallas_call(
        functools.partial(_head_kernel, chunk_c=chunk_c),
        out_shape=(
            jax.ShapeDtypeStruct((B, 1, C), jnp.float32),
            jax.ShapeDtypeStruct((B, 1, HW), jnp.float32),
        ),
        grid_spec=pltpu.PrefetchScalarGridSpec(
            num_scalar_prefetch=0,
            grid=(B // bt,),
            in_specs=[
                pl.BlockSpec((bt, C, HW), lambda b: (b, 0, 0)),
            ],
            out_specs=[
                pl.BlockSpec((bt, 1, C), lambda b: (b, 0, 0)),
                pl.BlockSpec((bt, 1, HW), lambda b: (b, 0, 0)),
            ],
        ),
        compiler_params=pltpu.CompilerParams(
            dimension_semantics=("parallel",),
            vmem_limit_bytes=vmem_limit,
        ),
        cost_estimate=pl.CostEstimate(
            flops=flops,
            transcendentals=transcendentals,
            bytes_accessed=bytes_accessed,
        ),
    )(x_flat)

    feat_pool = pool_b1c.reshape(B, C)

    # BatchNorm1d (eval, bias frozen at 0) folded into the classifier weight;
    # Dropout (eval) == identity; feat itself is never returned.
    logits = feat_pool @ w_fold + b_fold

    person_mask = mask_b1hw.reshape(B, 1, H, W)
    return feat_pool, logits, x_nchw, person_mask


def fold_bn_classifier(bn_gamma, bn_beta, running_mean, running_var, eps, w):
    """Fold eval-mode BatchNorm1d into the bias-free classifier (done once)."""
    scale = bn_gamma / jnp.sqrt(running_var + eps)        # (C,)
    shift = bn_beta - running_mean * scale                # (C,)
    w_t = w.T                                             # (C, NC)
    w_fold = scale[:, None] * w_t                         # (C, NC)
    b_fold = shift @ w_t                                  # (NC,)
    return w_fold, b_fold


def _reference(x_nchw, bn_scale, bn_shift, w_t):
    """Plain-JAX reference matching the PyTorch semantics (unfolded BN)."""
    B, C, H, W = x_nchw.shape
    xf = x_nchw.reshape(B, C, H * W)
    feat_pool = jnp.power(jnp.mean(xf ** 3.0, axis=-1) + 1e-12, 1.0 / 3.0)
    feat = feat_pool * bn_scale[None, :] + bn_shift[None, :]
    logits = feat @ w_t
    norms = jnp.sqrt(jnp.sum(x_nchw ** 2, axis=1)).reshape(B, H * W)
    norms = norms - jnp.min(norms, axis=-1, keepdims=True)
    norms = norms / (jnp.max(norms, axis=-1, keepdims=True) + 1e-12)
    mask = norms.reshape(B, 1, H, W)
    return feat_pool, logits, x_nchw, mask


if __name__ == "__main__":
    # Small, module-consistent shapes (real model: pool_dim=2048, H*W from the
    # ResNet-50 stage-4 output). C=256 / HW=256 exercises both the batch-tiled
    # grid (Bt=2, grid=2) and the multi-slab channel loop (chunk_c=128).
    B, C, H, W = 4, 256, 16, 16
    CLASS_NUM = 16

    key = jax.random.PRNGKey(0)
    kx, kg, kw = jax.random.split(key, 3)

    # Backbone output is post-ReLU => nonnegative (keeps the GeM cube-root
    # real, as in the PyTorch model where x comes from a ReLU-terminated stage).
    x = jax.nn.relu(jax.random.normal(kx, (B, C, H, W), dtype=jnp.float32))

    # BatchNorm1d params: weights_init_kaiming => gamma ~ N(1, 0.01), beta = 0;
    # running stats: mean = 0, var = 1, eps = 1e-5 (eval mode).
    eps = 1e-5
    bn_gamma = 1.0 + 0.01 * jax.random.normal(kg, (C,), dtype=jnp.float32)
    bn_beta = jnp.zeros((C,), dtype=jnp.float32)
    running_mean = jnp.zeros((C,), dtype=jnp.float32)
    running_var = jnp.ones((C,), dtype=jnp.float32)

    # Classifier: weights_init_classifier => W ~ N(0, 0.001), no bias.
    w = 0.001 * jax.random.normal(kw, (CLASS_NUM, C), dtype=jnp.float32)

    # One-time fold of BN into the classifier (feat post-BN is never returned).
    w_fold, b_fold = fold_bn_classifier(bn_gamma, bn_beta, running_mean,
                                        running_var, eps, w)

    outs = embed_net_head(x, w_fold, b_fold)
    outs = jax.block_until_ready(outs)

    bn_scale = bn_gamma / jnp.sqrt(running_var + eps)
    bn_shift = bn_beta - running_mean * bn_scale
    refs = _reference(x, bn_scale, bn_shift, w.T)
    for o, r in zip(outs, refs):
        np.testing.assert_allclose(np.asarray(o), np.asarray(r),
                                   rtol=1e-4, atol=1e-5)

    print("KERNEL_OK")
</pallas_src>

<mosaic_0001>
module attributes {stable_mosaic.version = 11 : i64} {
  func.func @_head_kernel(%arg0: i32, %arg1: memref<2x256x256xf32, #tpu.memory_space<vmem>>, %arg2: memref<2x1x256xf32, #tpu.memory_space<vmem>>, %arg3: memref<2x1x256xf32, #tpu.memory_space<vmem>>) attributes {dimension_semantics = [#tpu.dimension_semantics<parallel>], iteration_bounds = array<i64: 2>, scalar_prefetch = 0 : i64, scratch_operands = 0 : i64, tpu.core_type = #tpu.core_type<tc>, window_params = [{transform_indices = @transform_0, window_bounds = array<i64: 2, 256, 256>}, {transform_indices = @transform_1, window_bounds = array<i64: 2, 1, 256>}, {transform_indices = @transform_2, window_bounds = array<i64: 2, 1, 256>}]} {
    %cst = arith.constant 0.000000e+00 : f32
    %0 = vector.broadcast %cst : f32 to vector<2x256xf32>
    %c0_i32 = arith.constant 0 : i32
    %c128_i32 = arith.constant 128 : i32
    %1 = arith.muli %c0_i32, %c128_i32 : i32
    %2 = tpu.assume_multiple %1, 128 : i32
    %c0 = arith.constant 0 : index
    %3 = arith.index_cast %2 : i32 to index
    %c0_0 = arith.constant 0 : index
    %4 = vector.load %arg1[%c0, %3, %c0_0] : memref<2x256x256xf32, #tpu.memory_space<vmem>>, vector<2x128x256xf32>
    %5 = arith.mulf %4, %4 : vector<2x128x256xf32>
    %6 = arith.mulf %5, %4 : vector<2x128x256xf32>
    %cst_1 = arith.constant dense<0.000000e+00> : vector<2x128xf32>
    %7 = vector.multi_reduction <add>, %6, %cst_1 [2] : vector<2x128x256xf32> to vector<2x128xf32>
    %cst_2 = arith.constant 2.560000e+02 : f32
    %8 = vector.broadcast %cst_2 : f32 to vector<2x128xf32>
    %9 = arith.divf %7, %8 : vector<2x128xf32>
    %cst_3 = arith.constant 9.99999996E-13 : f32
    %10 = vector.broadcast %cst_3 : f32 to vector<2x128xf32>
    %11 = arith.addf %9, %10 : vector<2x128xf32>
    %cst_4 = arith.constant 0.333333343 : f32
    %12 = vector.broadcast %cst_4 : f32 to vector<2x128xf32>
    %13 = math.powf %11, %12 : vector<2x128xf32>
    %14 = vector.shape_cast %13 : vector<2x128xf32> to vector<2x1x128xf32>
    %c0_5 = arith.constant 0 : index
    %c0_6 = arith.constant 0 : index
    %15 = arith.index_cast %2 : i32 to index
    %16 = vector.load %arg2[%c0_5, %c0_6, %15] : memref<2x1x256xf32, #tpu.memory_space<vmem>>, vector<2x1x128xf32>
    tpu.vector_store %arg2[%c0_5, %c0_6, %15], %14 {strides = array<i32>} : memref<2x1x256xf32, #tpu.memory_space<vmem>>, vector<2x1x128xf32>,
    %cst_7 = arith.constant dense<0.000000e+00> : vector<2x256xf32>
    %17 = vector.multi_reduction <add>, %5, %cst_7 [1] : vector<2x128x256xf32> to vector<2x256xf32>
    %18 = arith.addf %0, %17 : vector<2x256xf32>
    %c1_i32 = arith.constant 1 : i32
    %c128_i32_8 = arith.constant 128 : i32
    %19 = arith.muli %c1_i32, %c128_i32_8 : i32
    %20 = tpu.assume_multiple %19, 128 : i32
    %c0_9 = arith.constant 0 : index
    %21 = arith.index_cast %20 : i32 to index
    %c0_10 = arith.constant 0 : index
    %22 = vector.load %arg1[%c0_9, %21, %c0_10] : memref<2x256x256xf32, #tpu.memory_space<vmem>>, vector<2x128x256xf32>
    %23 = arith.mulf %22, %22 : vector<2x128x256xf32>
    %24 = arith.mulf %23, %22 : vector<2x128x256xf32>
    %cst_11 = arith.constant dense<0.000000e+00> : vector<2x128xf32>
    %25 = vector.multi_reduction <add>, %24, %cst_11 [2] : vector<2x128x256xf32> to vector<2x128xf32>
    %cst_12 = arith.constant 2.560000e+02 : f32
    %26 = vector.broadcast %cst_12 : f32 to vector<2x128xf32>
    %27 = arith.divf %25, %26 : vector<2x128xf32>
    %cst_13 = arith.constant 9.99999996E-13 : f32
    %28 = vector.broadcast %cst_13 : f32 to vector<2x128xf32>
    %29 = arith.addf %27, %28 : vector<2x128xf32>
    %cst_14 = arith.constant 0.333333343 : f32
    %30 = vector.broadcast %cst_14 : f32 to vector<2x128xf32>
    %31 = math.powf %29, %30 : vector<2x128xf32>
    %32 = vector.shape_cast %31 : vector<2x128xf32> to vector<2x1x128xf32>
    %c0_15 = arith.constant 0 : index
    %c0_16 = arith.constant 0 : index
    %33 = arith.index_cast %20 : i32 to index
    %34 = vector.load %arg2[%c0_15, %c0_16, %33] : memref<2x1x256xf32, #tpu.memory_space<vmem>>, vector<2x1x128xf32>
    tpu.vector_store %arg2[%c0_15, %c0_16, %33], %32 {strides = array<i32>} : memref<2x1x256xf32, #tpu.memory_space<vmem>>, vector<2x1x128xf32>,
    %cst_17 = arith.constant dense<0.000000e+00> : vector<2x256xf32>
    %35 = vector.multi_reduction <add>, %23, %cst_17 [1] : vector<2x128x256xf32> to vector<2x256xf32>
    %36 = arith.addf %18, %35 : vector<2x256xf32>
    %c2_i32 = arith.constant 2 : i32
    %37 = math.sqrt %36 : vector<2x256xf32>
    %cst_18 = arith.constant dense<0x7F800000> : vector<2xf32>
    %38 = vector.multi_reduction <minimumf>, %37, %cst_18 [1] : vector<2x256xf32> to vector<2xf32>
    %39 = vector.shape_cast %38 : vector<2xf32> to vector<2x1xf32>
    %40 = vector.broadcast %39 : vector<2x1xf32> to vector<2x256xf32>
    %41 = arith.subf %37, %40 : vector<2x256xf32>
    %cst_19 = arith.constant dense<0xFF800000> : vector<2xf32>
    %42 = vector.multi_reduction <maximumf>, %41, %cst_19 [1] : vector<2x256xf32> to vector<2xf32>
    %43 = vector.shape_cast %42 : vector<2xf32> to vector<2x1xf32>
    %cst_20 = arith.constant 9.99999996E-13 : f32
    %44 = vector.broadcast %cst_20 : f32 to vector<2x1xf32>
    %45 = arith.addf %43, %44 : vector<2x1xf32>
    %46 = vector.broadcast %45 : vector<2x1xf32> to vector<2x256xf32>
    %47 = arith.divf %41, %46 : vector<2x256xf32>
    %48 = vector.shape_cast %47 : vector<2x256xf32> to vector<2x1x256xf32>
    %c0_21 = arith.constant 0 : index
    %c0_22 = arith.constant 0 : index
    %c0_23 = arith.constant 0 : index
    %49 = vector.load %arg3[%c0_21, %c0_22, %c0_23] : memref<2x1x256xf32, #tpu.memory_space<vmem>>, vector<2x1x256xf32>
    tpu.vector_store %arg3[%c0_21, %c0_22, %c0_23], %48 {strides = array<i32>} : memref<2x1x256xf32, #tpu.memory_space<vmem>>, vector<2x1x256xf32>,
    return
  }
  func.func @transform_0(%arg0: i32) -> (i32, i32, i32) {
    %c0_i32 = arith.constant 0 : i32
    %c0_i32_0 = arith.constant 0 : i32
    %c0_i32_1 = arith.constant 0 : i32
    return %arg0, %c0_i32, %c0_i32_0 : i32, i32, i32
  }
  func.func @transform_1(%arg0: i32) -> (i32, i32, i32) {
    %c0_i32 = arith.constant 0 : i32
    %c0_i32_0 = arith.constant 0 : i32
    %c0_i32_1 = arith.constant 0 : i32
    return %arg0, %c0_i32, %c0_i32_0 : i32, i32, i32
  }
  func.func @transform_2(%arg0: i32) -> (i32, i32, i32) {
    %c0_i32 = arith.constant 0 : i32
    %c0_i32_0 = arith.constant 0 : i32
    %c0_i32_1 = arith.constant 0 : i32
    return %arg0, %c0_i32, %c0_i32_0 : i32, i32, i32
  }
}

</mosaic_0001>

<bundles_post_ra>
// kernel: embed_net_head.1
= control target key start
LH: loop header
LB: loop body
LE: loop exit
PB: predicated region body
PF: predicated region fallthrough
CT: control target
= control target key end

     0   :  { %s8718_s9 = smov 0   ;;  %s12638_s0 = inlined_call_operand.vmem [shape: f32[4,256,256], index: 0, kind: input, shape index: {}]   ;;  %s12639_s1 = inlined_call_operand.vmem [shape: f32[4,1,256], index: 1, kind: output, shape index: {0}]   ;;  %s12640_s2 = inlined_call_operand.vmem [shape: f32[4,1,256], index: 2, kind: output, shape index: {1}]  }
   0x1 LB: > { %s7180_s10 = sadd.s32 4294967295, %s8699_s9   ;;  %p7184_p0 = scmp.ge.s32.totalorder %s8699_s9, 1  ;;  %s8699_s9 = sphi %s8718_s9, %s13_s9  }
   0x2   : > { %p117_p1 = scmp.lt.s32.totalorder %s8699_s9, 3 }
   0x4   : > { %p118_p2 = pnand %p7184_p0, %p117_p1 }
   0x6   : > { %121 = sbr.rel (%p118_p2) target bundleno = 964 (0x3c4), region = 24 }
   0xd   : > { %s7185_s11 = sshll.u32 %s7180_s10, 1  ;;  %vm12642_vm8 = vcmask 1041409   ;;  %vm12641_vm9 = vcmask 1041408  }
   0xe   : > { %p146_p3 = scmp.lt.s32.totalorder %s7185_s11, 3 }
  0x10   : > { %s12814_s11 = smov (!%p146_p3, %s7185_s11), 3 }
  0x11   : > { %s7260_s12 = sshll.u32 %s12814_s11, 9  ;;  %s7189_s16 = sshll.u32 %s12814_s11, 1 }
  0x12   : > { %s8732_s15 = scalar_lea.vmem %s12638_s0, %s7260_s12  ;;  %s162_s19 = scalar_lea.vmem %s12640_s2, %s7189_s16 }
  0x13   : > { %v171_v0 = vld [vmem:[%s8732_s15 + $0x20] sm:$0xff]  ;;  %v172_v1 = vld [vmem:[%s8732_s15 + $0x28] sm:$0xff]  ;;  %v173_v7 = vld [vmem:[%s8732_s15 + $0x30] sm:$0xff]  ;;  %s12506_s22 = scalar_lea.vmem %s12639_s1, %s7189_s16 }
  0x14   : > { %v167_v2 = vld [vmem:[%s8732_s15] sm:$0xff]  ;;  %v235_v3 = vmul.f32 %v171_v0, %v171_v0  ;;  %v236_v4 = vmul.f32 %v172_v1, %v172_v1  ;;  %v168_v5 = vld [vmem:[%s8732_s15 + $0x8] sm:$0xff]  ;;  %v174_v8 = vld [vmem:[%s8732_s15 + $0x38] sm:$0xff]  ;;  %v237_v10 = vmul.f32 %v173_v7, %v173_v7 }
  0x15   : > { %v231_v6 = vmul.f32 %v167_v2, %v167_v2  ;;  %v232_v9 = vmul.f32 %v168_v5, %v168_v5  ;;  %v238_v11 = vmul.f32 %v174_v8, %v174_v8  ;;  %v169_v12 = vld [vmem:[%s8732_s15 + $0x10] sm:$0xff]  ;;  %v170_v13 = vld [vmem:[%s8732_s15 + $0x18] sm:$0xff]  ;;  %v175_v24 = vld [vmem:[%s8732_s15 + $0x40] sm:$0xff] }
  0x16   : > { %v177_v14 = vld [vmem:[%s8732_s15 + $0x50] sm:$0xff]  ;;  %v299_v15 = vmul.f32 %v235_v3, %v171_v0  ;;  %v300_v16 = vmul.f32 %v236_v4, %v172_v1  ;;  %v233_v18 = vmul.f32 %v169_v12, %v169_v12  ;;  %v301_v20 = vmul.f32 %v237_v10, %v173_v7  ;;  %v178_v23 = vld [vmem:[%s8732_s15 + $0x58] sm:$0xff]  ;;  %v176_v29 = vld [vmem:[%s8732_s15 + $0x48] sm:$0xff] }
  0x17   : > { %v295_v17 = vmul.f32 %v231_v6, %v167_v2  ;;  %v296_v19 = vmul.f32 %v232_v9, %v168_v5  ;;  %v302_v21 = vmul.f32 %v238_v11, %v174_v8  ;;  %v234_v22 = vmul.f32 %v170_v13, %v170_v13  ;;  %v181_v30 = vld [vmem:[%s8732_s15 + $0x70] sm:$0xff]  ;;  %v182_v35 = vld [vmem:[%s8732_s15 + $0x78] sm:$0xff]  ;;  %v179_v40 = vld [vmem:[%s8732_s15 + $0x60] sm:$0xff] }
  0x18   : > { %v365_v25 = vadd.f32 %v300_v16, %v299_v15  ;;  %v297_v26 = vmul.f32 %v233_v18, %v169_v12  ;;  %v3498_v27 = vadd.f32 %v233_v18, %v231_v6  ;;  %v241_v28 = vmul.f32 %v177_v14, %v177_v14  ;;  %v180_v45 = vld [vmem:[%s8732_s15 + $0x68] sm:$0xff]  ;;  %v185_v50 = vld [vmem:[%s8732_s15 + $0x90] sm:$0xff]  ;;  %v186_v55 = vld [vmem:[%s8732_s15 + $0x98] sm:$0xff] }
  0x19   : > { %v359_v31 = vadd.f32 %v296_v19, %v295_v17  ;;  %v368_v32 = vadd.f32 %v302_v21, %v301_v20  ;;  %v298_v33 = vmul.f32 %v234_v22, %v170_v13  ;;  %v3519_v34 = vadd.f32 %v234_v22, %v232_v9  ;;  %v183_v60 = vld [vmem:[%s8732_s15 + $0x80] sm:$0xff]  ;;  %v184_v61 = vld [vmem:[%s8732_s15 + $0x88] sm:$0xff]  ;;  %v189_v2 = vld [vmem:[%s8732_s15 + $0xb0] sm:$0xff] }
  0x1a   : > { %366 = vadd.xlane.f32.xlu1 %v365_v25  ;;  %v3499_v36 = vadd.f32 %v3498_v27, %v235_v3  ;;  %v242_v37 = vmul.f32 %v178_v23, %v178_v23  ;;  %v305_v38 = vmul.f32 %v241_v28, %v177_v14  ;;  %v239_v39 = vmul.f32 %v175_v24, %v175_v24  ;;  %v190_v7 = vld [vmem:[%s8732_s15 + $0xb8] sm:$0xff]  ;;  %v187_v12 = vld [vmem:[%s8732_s15 + $0xa0] sm:$0xff]  ;;  %v188_v17 = vld [vmem:[%s8732_s15 + $0xa8] sm:$0xff] }
  0x1b   : > { %360 = vadd.xlane.f32.xlu0 %v359_v31  ;;  %v362_v41 = vadd.f32 %v298_v33, %v297_v26  ;;  %v3520_v42 = vadd.f32 %v3519_v34, %v236_v4  ;;  %v240_v43 = vmul.f32 %v176_v29, %v176_v29  ;;  %v245_v44 = vmul.f32 %v181_v30, %v181_v30  ;;  %v193_v22 = vld [vmem:[%s8732_s15 + $0xd0] sm:$0xff]  ;;  %v191_v27 = vld [vmem:[%s8732_s15 + $0xc0] sm:$0xff] }
  0x1c   : > { %v306_v46 = vmul.f32 %v242_v37, %v178_v23  ;;  %v303_v47 = vmul.f32 %v239_v39, %v175_v24  ;;  %v3500_v48 = vadd.f32 %v3499_v36, %v237_v10  ;;  %v246_v49 = vmul.f32 %v182_v35, %v182_v35  ;;  %v194_v23 = vld [vmem:[%s8732_s15 + $0xd8] sm:$0xff] }
  0x1d   : > { %v304_v51 = vmul.f32 %v240_v43, %v176_v29  ;;  %v3521_v52 = vadd.f32 %v3520_v42, %v238_v11  ;;  %v309_v53 = vmul.f32 %v245_v44, %v181_v30  ;;  %v243_v54 = vmul.f32 %v179_v40, %v179_v40  ;;  %v198_v42 = vld [vmem:[%s8732_s15 + $0xf8] sm:$0xff] }
  0x1e   : > { %369 = vadd.xlane.f32.xlu1 %v368_v32  ;;  %v374_v56 = vadd.f32 %v306_v46, %v305_v38  ;;  %v3501_v57 = vadd.f32 %v3500_v48, %v239_v39  ;;  %v310_v58 = vmul.f32 %v246_v49, %v182_v35  ;;  %v244_v59 = vmul.f32 %v180_v45, %v180_v45  ;;  %v192_v32 = vld [vmem:[%s8732_s15 + $0xc8] sm:$0xff] }
  0x1f   : > { %363 = vadd.xlane.f32.xlu0 %v362_v41  ;;  %v371_v62 = vadd.f32 %v304_v51, %v303_v47  ;;  %v3522_v63 = vadd.f32 %v3521_v52, %v240_v43  ;;  %v307_v0 = vmul.f32 %v243_v54, %v179_v40  ;;  %v249_v1 = vmul.f32 %v185_v50, %v185_v50  ;;  %v195_v47 = vld [vmem:[%s8732_s15 + $0xe0] sm:$0xff]  ;;  %v196_v48 = vld [vmem:[%s8732_s15 + $0xe8] sm:$0xff] }
  0x20   : > { %v380_v3 = vadd.f32 %v310_v58, %v309_v53  ;;  %v308_v4 = vmul.f32 %v244_v59, %v180_v45  ;;  %v3502_v5 = vadd.f32 %v3501_v57, %v241_v28  ;;  %v250_v6 = vmul.f32 %v186_v55, %v186_v55  ;;  %v201_v53 = vld [vmem:[%s8732_s15 + $0x210] sm:$0xff]  ;;  %v202_v58 = vld [vmem:[%s8732_s15 + $0x218] sm:$0xff] }
  0x21   : > { %v3523_v8 = vadd.f32 %v3522_v63, %v242_v37  ;;  %v313_v9 = vmul.f32 %v249_v1, %v185_v50  ;;  %v247_v10 = vmul.f32 %v183_v60, %v183_v60  ;;  %v248_v11 = vmul.f32 %v184_v61, %v184_v61  ;;  %v197_v37 = vld [vmem:[%s8732_s15 + $0xf0] sm:$0xff]  ;;  %v199_v63 = vld [vmem:[%s8732_s15 + $0x200] sm:$0xff] }
  0x22   : > { %375 = vadd.xlane.f32.xlu1 %v374_v56  ;;  %v377_v13 = vadd.f32 %v308_v4, %v307_v0  ;;  %v3503_v14 = vadd.f32 %v3502_v5, %v243_v54  ;;  %v314_v15 = vmul.f32 %v250_v6, %v186_v55  ;;  %v253_v16 = vmul.f32 %v189_v2, %v189_v2 }
  0x23   : > { %372 = vadd.xlane.f32.xlu0 %v371_v62  ;;  %v3524_v18 = vadd.f32 %v3523_v8, %v244_v59  ;;  %v311_v19 = vmul.f32 %v247_v10, %v183_v60  ;;  %v312_v20 = vmul.f32 %v248_v11, %v184_v61  ;;  %v254_v21 = vmul.f32 %v190_v7, %v190_v7 }
  0x24   : > { %v3504_v24 = vadd.f32 %v3503_v14, %v245_v44  ;;  %v317_v25 = vmul.f32 %v253_v16, %v189_v2  ;;  %v251_v26 = vmul.f32 %v187_v12, %v187_v12  ;;  %v386_v28 = vadd.f32 %v314_v15, %v313_v9 }
  0x25   : > { %v3525_v29 = vadd.f32 %v3524_v18, %v246_v49  ;;  %v318_v30 = vmul.f32 %v254_v21, %v190_v7  ;;  %v252_v31 = vmul.f32 %v188_v17, %v188_v17  ;;  %v257_v35 = vmul.f32 %v193_v22, %v193_v22  ;;  %v205_v7 = vld [vmem:[%s8732_s15 + $0x230] sm:$0xff] }
  0x26   : > { %381 = vadd.xlane.f32.xlu1 %v380_v3  ;;  %v3505_v33 = vadd.f32 %v3504_v24, %v247_v10  ;;  %v315_v34 = vmul.f32 %v251_v26, %v187_v12  ;;  %v258_v36 = vmul.f32 %v194_v23, %v194_v23  ;;  %v383_v38 = vadd.f32 %v312_v20, %v311_v19  ;;  %v200_v3 = vld [vmem:[%s8732_s15 + $0x208] sm:$0xff] }
  0x27   : > { %378 = vadd.xlane.f32.xlu0 %v377_v13  ;;  %v3526_v39 = vadd.f32 %v3525_v29, %v248_v11  ;;  %v316_v40 = vmul.f32 %v252_v31, %v188_v17  ;;  %v255_v41 = vmul.f32 %v191_v27, %v191_v27  ;;  %v392_v43 = vadd.f32 %v318_v30, %v317_v25  ;;  %v203_v17 = vld [vmem:[%s8732_s15 + $0x220] sm:$0xff] }
  0x28   : > { %v3506_v44 = vadd.f32 %v3505_v33, %v249_v1  ;;  %v321_v45 = vmul.f32 %v257_v35, %v193_v22  ;;  %v256_v46 = vmul.f32 %v192_v32, %v192_v32  ;;  %v322_v51 = vmul.f32 %v258_v36, %v194_v23  ;;  %v204_v22 = vld [vmem:[%s8732_s15 + $0x228] sm:$0xff] }
  0x29   : > { %v389_v49 = vadd.f32 %v316_v40, %v315_v34  ;;  %v3527_v50 = vadd.f32 %v3526_v39, %v250_v6  ;;  %v261_v52 = vmul.f32 %v197_v37, %v197_v37  ;;  %v319_v55 = vmul.f32 %v255_v41, %v191_v27  ;;  %v207_v39 = vld [vmem:[%s8732_s15 + $0x240] sm:$0xff]  ;;  %v208_v40 = vld [vmem:[%s8732_s15 + $0x248] sm:$0xff] }
  0x2a   : > { %387 = vadd.xlane.f32.xlu1 %v386_v28  ;;  %v3507_v54 = vadd.f32 %v3506_v44, %v251_v26  ;;  %v320_v56 = vmul.f32 %v256_v46, %v192_v32  ;;  %v262_v57 = vmul.f32 %v198_v42, %v198_v42  ;;  %v259_v61 = vmul.f32 %v195_v47, %v195_v47 }
  0x2b   : > { %384 = vadd.xlane.f32.xlu0 %v383_v38  ;;  %v3528_v59 = vadd.f32 %v3527_v50, %v252_v31  ;;  %v325_v60 = vmul.f32 %v261_v52, %v197_v37  ;;  %v260_v62 = vmul.f32 %v196_v48, %v196_v48  ;;  %v265_v2 = vmul.f32 %v201_v53, %v201_v53  ;;  %v209_v31 = vld [vmem:[%s8732_s15 + $0x250] sm:$0xff] }
  0x2c   : > { %v3508_v0 = vadd.f32 %v3507_v54, %v253_v16  ;;  %v326_v1 = vmul.f32 %v262_v57, %v198_v42  ;;  %v398_v4 = vadd.f32 %v322_v51, %v321_v45  ;;  %v266_v6 = vmul.f32 %v202_v58, %v202_v58  ;;  %v206_v16 = vld [vmem:[%s8732_s15 + $0x238] sm:$0xff] }
  0x2d   : > { %v3529_v5 = vadd.f32 %v3528_v59, %v254_v21  ;;  %v395_v8 = vadd.f32 %v320_v56, %v319_v55  ;;  %v323_v10 = vmul.f32 %v259_v61, %v195_v47  ;;  %v263_v11 = vmul.f32 %v199_v63, %v199_v63  ;;  %v211_v56 = vld [vmem:[%s8732_s15 + $0x260] sm:$0xff] }
  0x2e   : > { %393 = vadd.xlane.f32.xlu1 %v392_v43  ;;  %v3509_v9 = vadd.f32 %v3508_v0, %v255_v41  ;;  %v404_v13 = vadd.f32 %v326_v1, %v325_v60  ;;  %v324_v14 = vmul.f32 %v260_v62, %v196_v48  ;;  %v264_v15 = vmul.f32 %v200_v3, %v200_v3  ;;  %v213_v48 = vld [vmem:[%s8732_s15 + $0x270] sm:$0xff]  ;;  %v212_v60 = vld [vmem:[%s8732_s15 + $0x268] sm:$0xff] }
  0x2f   : > { %390 = vadd.xlane.f32.xlu0 %v389_v49  ;;  %v3530_v12 = vadd.f32 %v3529_v5, %v256_v46  ;;  %v329_v19 = vmul.f32 %v265_v2, %v201_v53  ;;  %v3540_v20 = vadd.f32 %v265_v2, %v263_v11  ;;  %v269_v21 = vmul.f32 %v205_v7, %v205_v7  ;;  %v214_v53 = vld [vmem:[%s8732_s15 + $0x278] sm:$0xff]  ;;  %v217_v1 = vld [vmem:[%s8732_s15 + $0x290] sm:$0xff] }
  0x30   : > { %v3510_v18 = vadd.f32 %v3509_v9, %v257_v35  ;;  %v330_v24 = vmul.f32 %v266_v6, %v202_v58  ;;  %v327_v25 = vmul.f32 %v263_v11, %v199_v63  ;;  %v3561_v26 = vadd.f32 %v266_v6, %v264_v15  ;;  %v210_v35 = vld [vmem:[%s8732_s15 + $0x258] sm:$0xff] }
  0x31   : > { %v3531_v23 = vadd.f32 %v3530_v12, %v258_v36  ;;  %v328_v28 = vmul.f32 %v264_v15, %v200_v3  ;;  %v270_v29 = vmul.f32 %v206_v16, %v206_v16  ;;  %v267_v30 = vmul.f32 %v203_v17, %v203_v17 }
  0x32   : > { %399 = vadd.xlane.f32.xlu1 %v398_v4  ;;  %v3511_v27 = vadd.f32 %v3510_v18, %v259_v61  ;;  %v401_v32 = vadd.f32 %v324_v14, %v323_v10  ;;  %v268_v34 = vmul.f32 %v204_v22, %v204_v22  ;;  %v333_v36 = vmul.f32 %v269_v21, %v205_v7  ;;  %v218_v10 = vld [vmem:[%s8732_s15 + $0x298] sm:$0xff]  ;;  %v216_v14 = vld [vmem:[%s8732_s15 + $0x288] sm:$0xff] }
  0x33   : > { %396 = vadd.xlane.f32.xlu0 %v395_v8  ;;  %v3532_v33 = vadd.f32 %v3531_v23, %v260_v62  ;;  %v3541_v38 = vadd.f32 %v3540_v20, %v267_v30  ;;  %v334_v42 = vmul.f32 %v270_v29, %v206_v16  ;;  %v273_v44 = vmul.f32 %v209_v31, %v209_v31  ;;  %v221_v23 = vld [vmem:[%s8732_s15 + $0x2b0] sm:$0xff] }
  0x34   : > { %v8776_v37 = vadd.f32 %v3511_v27, %v261_v52  ;;  %v3562_v43 = vadd.f32 %v3561_v26, %v268_v34  ;;  %v410_v45 = vadd.f32 %v330_v24, %v329_v19  ;;  %v407_v46 = vadd.f32 %v328_v28, %v327_v25  ;;  %v222_v24 = vld [vmem:[%s8732_s15 + $0x2b8] sm:$0xff] }
  0x35   : > { %v8780_v41 = vadd.f32 %v3532_v33, %v262_v57  ;;  %v274_v47 = vmul.f32 %v210_v35, %v210_v35  ;;  %v331_v49 = vmul.f32 %v267_v30, %v203_v17  ;;  %v332_v50 = vmul.f32 %v268_v34, %v204_v22  ;;  %v220_v34 = vld [vmem:[%s8732_s15 + $0x2a8] sm:$0xff] }
  0x36   : > { %405 = vadd.xlane.f32.xlu1 %v404_v13  ;;  %v271_v51 = vmul.f32 %v207_v39, %v207_v39  ;;  %v272_v52 = vmul.f32 %v208_v40, %v208_v40  ;;  %v3542_v54 = vadd.f32 %v3541_v38, %v269_v21  ;;  %v3563_v55 = vadd.f32 %v3562_v43, %v270_v29  ;;  %v215_v13 = vld [vmem:[%s8732_s15 + $0x280] sm:$0xff] }
  0x37   : > { %402 = vadd.xlane.f32.xlu0 %v401_v32  ;;  %v416_v57 = vadd.f32 %v334_v42, %v333_v36  ;;  %v337_v58 = vmul.f32 %v273_v44, %v209_v31  ;;  %v277_v59 = vmul.f32 %v213_v48, %v213_v48  ;;  %v338_v61 = vmul.f32 %v274_v47, %v210_v35  ;;  %v219_v29 = vld [vmem:[%s8732_s15 + $0x2a0] sm:$0xff] }
  0x38   : > { %v3543_v62 = vadd.f32 %v3542_v54, %v271_v51  ;;  %v3564_v63 = vadd.f32 %v3563_v55, %v272_v52  ;;  %v278_v0 = vmul.f32 %v214_v53, %v214_v53  ;;  %v413_v2 = vadd.f32 %v332_v50, %v331_v49 }
  0x39   : > { %v335_v3 = vmul.f32 %v271_v51, %v207_v39  ;;  %v336_v4 = vmul.f32 %v272_v52, %v208_v40  ;;  %v275_v5 = vmul.f32 %v211_v56, %v211_v56  ;;  %v341_v6 = vmul.f32 %v277_v59, %v213_v48  ;;  %v225_v40 = vld [vmem:[%s8732_s15 + $0x2d0] sm:$0xff]  ;;  %v224_v52 = vld [vmem:[%s8732_s15 + $0x2c8] sm:$0xff] }
  0x3a   : > { %411 = vadd.xlane.f32.xlu1 %v410_v45  ;;  %v342_v7 = vmul.f32 %v278_v0, %v214_v53  ;;  %v276_v8 = vmul.f32 %v212_v60, %v212_v60  ;;  %v3544_v9 = vadd.f32 %v3543_v62, %v273_v44  ;;  %v3565_v11 = vadd.f32 %v3564_v63, %v274_v47  ;;  %v223_v47 = vld [vmem:[%s8732_s15 + $0x2c0] sm:$0xff]  ;;  %v230_v62 = vld [vmem:[%s8732_s15 + $0x2f8] sm:$0xff] }
  0x3b   : > { %408 = vadd.xlane.f32.xlu0 %v407_v46  ;;  %v281_v12 = vmul.f32 %v217_v1, %v217_v1  ;;  %v422_v15 = vadd.f32 %v338_v61, %v337_v58  ;;  %v339_v16 = vmul.f32 %v275_v5, %v211_v56  ;;  %v3513_v19 = vrot.slane %v8776_v37, 4  ;;  %v226_v46 = vld [vmem:[%s8732_s15 + $0x2d8] sm:$0xff] }
  0x3c   : > { %v340_v17 = vmul.f32 %v276_v8, %v212_v60  ;;  %v3545_v18 = vadd.f32 %v3544_v9, %v275_v5  ;;  %v419_v20 = vadd.f32 %v336_v4, %v335_v3  ;;  %v3566_v21 = vadd.f32 %v3565_v11, %v276_v8 }
  0x3d   : > { %v282_v22 = vmul.f32 %v218_v10, %v218_v10  ;;  %v3534_v25 = vrot.slane %v8780_v41, 4  ;;  %v428_v26 = vadd.f32 %v342_v7, %v341_v6  ;;  %v279_v27 = vmul.f32 %v215_v13, %v215_v13  ;;  %v227_v6 = vld [vmem:[%s8732_s15 + $0x2e0] sm:$0xff]  ;;  %v228_v7 = vld [vmem:[%s8732_s15 + $0x2e8] sm:$0xff] }
  0x3e   : > { %417 = vadd.xlane.f32.xlu1 %v416_v57  ;;  %v280_v28 = vmul.f32 %v216_v14, %v216_v14  ;;  %v345_v30 = vmul.f32 %v281_v12, %v217_v1  ;;  %v3546_v32 = vadd.f32 %v3545_v18, %v277_v59  ;;  %v3567_v33 = vadd.f32 %v3566_v21, %v278_v0  ;;  %v229_v57 = vld [vmem:[%s8732_s15 + $0x2f0] sm:$0xff] }
  0x3f   : > { %414 = vadd.xlane.f32.xlu0 %v413_v2  ;;  %v346_v31 = vmul.f32 %v282_v22, %v218_v10  ;;  %v425_v35 = vadd.f32 %v340_v17, %v339_v16  ;;  %v343_v36 = vmul.f32 %v279_v27, %v215_v13  ;;  %v285_v38 = vmul.f32 %v221_v23, %v221_v23  ;;  %v7193_v17 = vld [vmem:[%s8732_s15 + $0x108] sm:$0xff] }
  0x40   : > { %v286_v39 = vmul.f32 %v222_v24, %v222_v24  ;;  %v344_v42 = vmul.f32 %v280_v28, %v216_v14  ;;  %v3547_v43 = vadd.f32 %v3546_v32, %v279_v27  ;;  %v3568_v44 = vadd.f32 %v3567_v33, %v280_v28  ;;  %v7198_v33 = vld [vmem:[%s8732_s15 + $0x130] sm:$0xff] }
  0x41   : > { %v283_v45 = vmul.f32 %v219_v29, %v219_v29  ;;  %v3514_v48 = vadd.f32 %v3513_v19, %v8776_v37  ;;  %v349_v49 = vmul.f32 %v285_v38, %v221_v23  ;;  %v284_v51 = vmul.f32 %v220_v34, %v220_v34 }
  0x42   : > { %423 = vadd.xlane.f32.xlu1 %v422_v15  ;;  %v350_v50 = vmul.f32 %v286_v39, %v222_v24  ;;  %v434_v53 = vadd.f32 %v346_v31, %v345_v30  ;;  %v3548_v54 = vadd.f32 %v3547_v43, %v281_v12  ;;  %v3569_v55 = vadd.f32 %v3568_v44, %v282_v22  ;;  %v7192_v12 = vld [vmem:[%s8732_s15 + $0x100] sm:$0xff]  ;;  %v7195_v22 = vld [vmem:[%s8732_s15 + $0x118] sm:$0xff] }
  0x43   : > { %420 = vadd.xlane.f32.xlu0 %v419_v20  ;;  %v289_v56 = vmul.f32 %v225_v40, %v225_v40  ;;  %v347_v58 = vmul.f32 %v283_v45, %v219_v29  ;;  %v348_v59 = vmul.f32 %v284_v51, %v220_v34  ;;  %v290_v60 = vmul.f32 %v226_v46, %v226_v46 }
  0x44   : > { %v287_v61 = vmul.f32 %v223_v47, %v223_v47  ;;  %v431_v37 = vadd.f32 %v344_v42, %v343_v36  ;;  %v3549_v63 = vadd.f32 %v3548_v54, %v283_v45  ;;  %v3570_v0 = vadd.f32 %v3569_v55, %v284_v51  ;;  %v7197_v42 = vld [vmem:[%s8732_s15 + $0x128] sm:$0xff]  ;;  %v7202_v51 = vld [vmem:[%s8732_s15 + $0x150] sm:$0xff] }
  0x45   : > { %v288_v1 = vmul.f32 %v224_v52, %v224_v52  ;;  %v3515_v2 = vrot.slane %v3514_v48, 2  ;;  %v3535_v3 = vadd.f32 %v3534_v25, %v8780_v41  ;;  %v440_v4 = vadd.f32 %v350_v50, %v349_v49  ;;  %v7194_v41 = vld [vmem:[%s8732_s15 + $0x110] sm:$0xff] }
  0x46   : > { %429 = vadd.xlane.f32.xlu1 %v428_v26  ;;  %v8804_v5 = vmul.f32 %v229_v57, %v229_v57  ;;  %v353_v8 = vmul.f32 %v289_v56, %v225_v40  ;;  %v3550_v9 = vadd.f32 %v3549_v63, %v285_v38  ;;  %v3571_v10 = vadd.f32 %v3570_v0, %v286_v39  ;;  %v7199_v39 = vld [vmem:[%s8732_s15 + $0x138] sm:$0xff]  ;;  %v7196_v40 = vld [vmem:[%s8732_s15 + $0x120] sm:$0xff] }
  0x47   : > { %426 = vadd.xlane.f32.xlu0 %v425_v35  ;;  %v8808_v11 = vmul.f32 %v230_v62, %v230_v62  ;;  %v437_v13 = vadd.f32 %v348_v59, %v347_v58  ;;  %v354_v14 = vmul.f32 %v290_v60, %v226_v46  ;;  %v351_v15 = vmul.f32 %v287_v61, %v223_v47 }
  0x48   : > { %v352_v16 = vmul.f32 %v288_v1, %v224_v52  ;;  %v3551_v18 = vadd.f32 %v3550_v9, %v287_v61  ;;  %v3572_v19 = vadd.f32 %v3571_v10, %v288_v1  ;;  %v291_v20 = vmul.f32 %v227_v6, %v227_v6  ;;  %v7203_v52 = vld [vmem:[%s8732_s15 + $0x158] sm:$0xff]  ;;  %v7201_v61 = vld [vmem:[%s8732_s15 + $0x148] sm:$0xff] }
  0x49   : > { %v292_v21 = vmul.f32 %v228_v7, %v228_v7  ;;  %v357_v23 = vmul.f32 %v8804_v5, %v229_v57  ;;  %v358_v24 = vmul.f32 %v8808_v11, %v230_v62  ;;  %v3653_v25 = vmul.f32 %v7192_v12, %v7192_v12 }
  0x4a   : > { %435 = vadd.xlane.f32.xlu1 %v434_v53  ;;  %v3552_v26 = vadd.f32 %v3551_v18, %v289_v56  ;;  %v3654_v27 = vmul.f32 %v7193_v17, %v7193_v17  ;;  %v3655_v28 = vmul.f32 %v7194_v41, %v7194_v41  ;;  %v8816_v29 = vadd.f32 %v3515_v2, %v3514_v48 }
  0x4b   : > { %432 = vadd.xlane.f32.xlu0 %v431_v37  ;;  %v3536_v30 = vrot.slane %v3535_v3, 2  ;;  %v446_v31 = vadd.f32 %v354_v14, %v353_v8  ;;  %v3656_v32 = vmul.f32 %v7195_v22, %v7195_v22  ;;  %v443_v34 = vadd.f32 %v352_v16, %v351_v15  ;;  %v7207_v16 = vld [vmem:[%s8732_s15 + $0x178] sm:$0xff] }
  0x4c   : > { %v355_v35 = vmul.f32 %v291_v20, %v227_v6  ;;  %v356_v36 = vmul.f32 %v292_v21, %v228_v7  ;;  %v3573_v38 = vadd.f32 %v3572_v19, %v290_v60  ;;  %v452_v43 = vadd.f32 %v358_v24, %v357_v23  ;;  %v7200_v60 = vld [vmem:[%s8732_s15 + $0x140] sm:$0xff]  ;;  %v7206_v7 = vld [vmem:[%s8732_s15 + $0x170] sm:$0xff] }
  0x4d   : > { %v3717_v44 = vmul.f32 %v7192_v12, %v3653_v25  ;;  %v6884_v45 = vadd.f32 %v3655_v28, %v3653_v25  ;;  %v6905_v46 = vadd.f32 %v3656_v32, %v3654_v27  ;;  %v3553_v47 = vadd.f32 %v3552_v26, %v291_v20  ;;  %v7205_v20 = vld [vmem:[%s8732_s15 + $0x168] sm:$0xff] }
  0x4e   : > { %441 = vadd.xlane.f32.xlu1 %v440_v4  ;;  %v3718_v48 = vmul.f32 %v7193_v17, %v3654_v27  ;;  %v3719_v49 = vmul.f32 %v7194_v41, %v3655_v28  ;;  %v3720_v50 = vmul.f32 %v7195_v22, %v3656_v32  ;;  %v3659_v53 = vmul.f32 %v7198_v33, %v7198_v33  ;;  %v7204_v17 = vld [vmem:[%s8732_s15 + $0x160] sm:$0xff] }
  0x4f   : > { %438 = vadd.xlane.f32.xlu0 %v437_v13  ;;  %v3660_v54 = vmul.f32 %v7199_v39, %v7199_v39  ;;  %v3657_v55 = vmul.f32 %v7196_v40, %v7196_v40  ;;  %v3658_v56 = vmul.f32 %v7197_v42, %v7197_v42  ;;  %v8824_v57 = vadd.f32 %v3536_v30, %v3535_v3 }
  0x50   : > { %v449_v58 = vadd.f32 %v356_v36, %v355_v35  ;;  %v3574_v59 = vadd.f32 %v3573_v38, %v292_v21  ;;  %v3663_v63 = vmul.f32 %v7202_v51, %v7202_v51  ;;  %v3664_v0 = vmul.f32 %v7203_v52, %v7203_v52 }
  0x51   : > { %v6885_v62 = vadd.f32 %v6884_v45, %v3657_v55  ;;  %v6906_v37 = vadd.f32 %v6905_v46, %v3658_v56  ;;  %v3517_v1 = vrot.slane %v8816_v29, 1  ;;  %v3554_v2 = vadd.f32 %v3553_v47, %v8804_v5 }
  0x52   : > { %447 = vadd.xlane.f32.xlu1 %v446_v31  ;;  %v3781_v4 = vadd.f32 %v3718_v48, %v3717_v44  ;;  %v3784_v6 = vadd.f32 %v3720_v50, %v3719_v49  ;;  %v3723_v3 = vmul.f32 %v7198_v33, %v3659_v53  ;;  %v3724_v8 = vmul.f32 %v7199_v39, %v3660_v54  ;;  %v7210_v33 = vld [vmem:[%s8732_s15 + $0x190] sm:$0xff] }
  0x53   : > { %444 = vadd.xlane.f32.xlu0 %v443_v34  ;;  %v3661_v9 = vmul.f32 %v7200_v60, %v7200_v60  ;;  %v3662_v10 = vmul.f32 %v7201_v61, %v7201_v61  ;;  %v3721_v12 = vmul.f32 %v7196_v40, %v3657_v55  ;;  %v3722_v13 = vmul.f32 %v7197_v42, %v3658_v56  ;;  %v7211_v34 = vld [vmem:[%s8732_s15 + $0x198] sm:$0xff]  ;;  %v7208_v40 = vld [vmem:[%s8732_s15 + $0x180] sm:$0xff]  ;;  %v7209_v42 = vld [vmem:[%s8732_s15 + $0x188] sm:$0xff] }
  0x54   : > { %v6886_v14 = vadd.f32 %v6885_v62, %v3659_v53  ;;  %v6907_v15 = vadd.f32 %v6906_v37, %v3660_v54  ;;  %v3575_v41 = vadd.f32 %v3574_v59, %v8808_v11  ;;  %v3727_v18 = vmul.f32 %v7202_v51, %v3663_v63  ;;  %v7224_v51 = vld [vmem:[%s8732_s15 + $0x300] sm:$0xff]  ;;  %v7213_v62 = vld [vmem:[%s8732_s15 + $0x1a8] sm:$0xff] }
  0x55   : > { %v3728_v5 = vmul.f32 %v7203_v52, %v3664_v0  ;;  %v3667_v19 = vmul.f32 %v7206_v7, %v7206_v7  ;;  %v3725_v21 = vmul.f32 %v7200_v60, %v3661_v9  ;;  %v3726_v22 = vmul.f32 %v7201_v61, %v3662_v10  ;;  %v7225_v52 = vld [vmem:[%s8732_s15 + $0x308] sm:$0xff]  ;;  %v7212_v53 = vld [vmem:[%s8732_s15 + $0x1a0] sm:$0xff] }
  0x56   : > { %453 = vadd.xlane.f32.xlu1 %v452_v43  ;;  %v6887_v23 = vadd.f32 %v6886_v14, %v3661_v9  ;;  %v6908_v24 = vadd.f32 %v6907_v15, %v3662_v10  ;;  %v3538_v25 = vrot.slane %v8824_v57, 1  ;;  %v3790_v26 = vadd.f32 %v3724_v8, %v3723_v3  ;;  %v7227_v10 = vld [vmem:[%s8732_s15 + $0x318] sm:$0xff] }
  0x57   : > { %450 = vadd.xlane.f32.xlu0 %v449_v58  ;;  %v3668_v27 = vmul.f32 %v7207_v16, %v7207_v16  ;;  %v3665_v28 = vmul.f32 %v7204_v17, %v7204_v17  ;;  %v3555_v30 = vrot.slane %v3554_v2, 4  ;;  %v3787_v11 = vadd.f32 %v3722_v13, %v3721_v12 }
  0x58   : > { %v3666_v31 = vmul.f32 %v7205_v20, %v7205_v20  ;;  %v6888_v32 = vadd.f32 %v6887_v23, %v3663_v63  ;;  %v3576_v35 = vrot.slane %v3575_v41, 4  ;;  %v3731_v36 = vmul.f32 %v7206_v7, %v3667_v19 }
  0x59   : > { %v3732_v38 = vmul.f32 %v7207_v16, %v3668_v27  ;;  %v6909_v39 = vadd.f32 %v6908_v24, %v3664_v0  ;;  %v8841_v43 = vadd.f32 %v3517_v1, %v8816_v29  ;;  %v3796_v44 = vadd.f32 %v3728_v5, %v3727_v18 }
  0x5a   : > { %3782 = vadd.xlane.f32.xlu1 %v3781_v4  ;;  %v3793_v45 = vadd.f32 %v3726_v22, %v3725_v21  ;;  %v6889_v46 = vadd.f32 %v6888_v32, %v3665_v28  ;;  %v3729_v47 = vmul.f32 %v7204_v17, %v3665_v28  ;;  %v3671_v49 = vmul.f32 %v7210_v33, %v7210_v33  ;;  %v7228_v4 = vld [vmem:[%s8732_s15 + $0x320] sm:$0xff]  ;;  %v7230_v28 = vld [vmem:[%s8732_s15 + $0x330] sm:$0xff] }
  0x5b   : > { %3785 = vadd.xlane.f32.xlu0 %v3784_v6  ;;  %v6910_v48 = vadd.f32 %v6909_v39, %v3666_v31  ;;  %v3672_v50 = vmul.f32 %v7211_v34, %v7211_v34  ;;  %v3730_v54 = vmul.f32 %v7205_v20, %v3666_v31  ;;  %v3669_v55 = vmul.f32 %v7208_v40, %v7208_v40  ;;  %v7229_v6 = vld [vmem:[%s8732_s15 + $0x328] sm:$0xff]  ;;  %v7232_v22 = vld [vmem:[%s8732_s15 + $0x340] sm:$0xff] }
  0x5c   : > { %v3670_v56 = vmul.f32 %v7209_v42, %v7209_v42  ;;  %v6890_v29 = vadd.f32 %v6889_v46, %v3667_v19  ;;  %v8846_v58 = vadd.f32 %v3555_v30, %v3554_v2  ;;  %v8848_v59 = vadd.f32 %v3576_v35, %v3575_v41  ;;  %v7226_v2 = vld [vmem:[%s8732_s15 + $0x310] sm:$0xff]  ;;  %v7231_v30 = vld [vmem:[%s8732_s15 + $0x338] sm:$0xff] }
  0x5d   : > { %v3802_v60 = vadd.f32 %v3732_v38, %v3731_v36  ;;  %v6911_v61 = vadd.f32 %v6910_v48, %v3668_v27  ;;  %v3685_v63 = vmul.f32 %v7224_v51, %v7224_v51  ;;  %v3686_v0 = vmul.f32 %v7225_v52, %v7225_v52  ;;  %v7237_v48 = vld [vmem:[%s8732_s15 + $0x368] sm:$0xff] }
  0x5e   : > { %3791 = vadd.xlane.f32.xlu1 %v3790_v26  ;;  %v6891_v37 = vadd.f32 %v6890_v29, %v3669_v55  ;;  %v3673_v1 = vmul.f32 %v7212_v53, %v7212_v53  ;;  %v3735_v7 = vmul.f32 %v7210_v33, %v3671_v49  ;;  %v3736_v3 = vmul.f32 %v7211_v34, %v3672_v50  ;;  %v7233_v34 = vld [vmem:[%s8732_s15 + $0x348] sm:$0xff] }
  0x5f   : > { %3788 = vadd.xlane.f32.xlu0 %v3787_v11  ;;  %v3733_v8 = vmul.f32 %v7208_v40, %v3669_v55  ;;  %v3734_v9 = vmul.f32 %v7209_v42, %v3670_v56  ;;  %v3799_v12 = vadd.f32 %v3730_v54, %v3729_v47  ;;  %v3749_v13 = vmul.f32 %v7224_v51, %v3685_v63  ;;  %v7236_v40 = vld [vmem:[%s8732_s15 + $0x360] sm:$0xff]  ;;  %v7234_v42 = vld [vmem:[%s8732_s15 + $0x350] sm:$0xff]  ;;  %v7235_v54 = vld [vmem:[%s8732_s15 + $0x358] sm:$0xff] }
  0x60   : > { %v3750_v14 = vmul.f32 %v7225_v52, %v3686_v0  ;;  %v8855_v15 = vmul.f32 %v7213_v62, %v7213_v62  ;;  %v6912_v16 = vadd.f32 %v6911_v61, %v3670_v56  ;;  %v6892_v17 = vadd.f32 %v6891_v37, %v3671_v49 }
  0x61   : > { %v3689_v41 = vmul.f32 %v7228_v4, %v7228_v4  ;;  %v3690_v18 = vmul.f32 %v7229_v6, %v7229_v6  ;;  %v3737_v5 = vmul.f32 %v7212_v53, %v3673_v1  ;;  %v3687_v20 = vmul.f32 %v7226_v2, %v7226_v2 }
  0x62   : > { %3797 = vadd.xlane.f32.xlu1 %v3796_v44  ;;  %v3738_v19 = vmul.f32 %v7213_v62, %v8855_v15  ;;  %v3688_v21 = vmul.f32 %v7227_v10, %v7227_v10  ;;  %v3808_v23 = vadd.f32 %v3736_v3, %v3735_v7  ;;  %v3805_v24 = vadd.f32 %v3734_v9, %v3733_v8  ;;  %v7239_v8 = vld [vmem:[%s8732_s15 + $0x378] sm:$0xff]  ;;  %v7214_v9 = vld [vmem:[%s8732_s15 + $0x1b0] sm:$0xff] }
  0x63   : > { %3794 = vadd.xlane.f32.xlu0 %v3793_v45  ;;  %v3753_v26 = vmul.f32 %v7228_v4, %v3689_v41  ;;  %v3754_v27 = vmul.f32 %v7229_v6, %v3690_v18  ;;  %v3829_v11 = vadd.f32 %v3750_v14, %v3749_v13  ;;  %v3751_v31 = vmul.f32 %v7226_v2, %v3687_v20 }
  0x64   : > { %v3752_v32 = vmul.f32 %v7227_v10, %v3688_v21  ;;  %v6926_v33 = vadd.f32 %v3687_v20, %v3685_v63  ;;  %v8862_v35 = vadd.f32 %v6892_v17, %v3673_v1  ;;  %v6913_v36 = vadd.f32 %v6912_v16, %v3672_v50  ;;  %v7238_v1 = vld [vmem:[%s8732_s15 + $0x370] sm:$0xff] }
  0x65   : > { %v6947_v38 = vadd.f32 %v3688_v21, %v3686_v0  ;;  %v3693_v39 = vmul.f32 %v7232_v22, %v7232_v22  ;;  %v3811_v44 = vadd.f32 %v3738_v19, %v3737_v5  ;;  %v3691_v45 = vmul.f32 %v7230_v28, %v7230_v28  ;;  %v7241_v0 = vld [vmem:[%s8732_s15 + $0x388] sm:$0xff] }
  0x66   : > { %3803 = vadd.xlane.f32.xlu1 %v3802_v60  ;;  %v3692_v46 = vmul.f32 %v7231_v30, %v7231_v30  ;;  %v6927_v47 = vadd.f32 %v6926_v33, %v3689_v41  ;;  %v3835_v49 = vadd.f32 %v3754_v27, %v3753_v26  ;;  %v3694_v51 = vmul.f32 %v7233_v34, %v7233_v34  ;;  %v7240_v60 = vld [vmem:[%s8732_s15 + $0x380] sm:$0xff]  ;;  %v7242_v27 = vld [vmem:[%s8732_s15 + $0x390] sm:$0xff] }
  0x67   : > { %3800 = vadd.xlane.f32.xlu0 %v3799_v12  ;;  %v3757_v52 = vmul.f32 %v7232_v22, %v3693_v39  ;;  %v6948_v53 = vadd.f32 %v6947_v38, %v3690_v18  ;;  %v3832_v50 = vadd.f32 %v3752_v32, %v3751_v31  ;;  %v3697_v56 = vmul.f32 %v7236_v40, %v7236_v40  ;;  %v7215_v18 = vld [vmem:[%s8732_s15 + $0x1b8] sm:$0xff]  ;;  %v7216_v33 = vld [vmem:[%s8732_s15 + $0x1c0] sm:$0xff] }
  0x68   : > { %v6928_v55 = vadd.f32 %v6927_v47, %v3691_v45  ;;  %v3695_v29 = vmul.f32 %v7234_v42, %v7234_v42  ;;  %v3758_v61 = vmul.f32 %v7233_v34, %v3694_v51  ;;  %v3755_v62 = vmul.f32 %v7230_v28, %v3691_v45  ;;  %v7243_v28 = vld [vmem:[%s8732_s15 + $0x398] sm:$0xff] }
  0x69   : > { %v6949_v37 = vadd.f32 %v6948_v53, %v3692_v46  ;;  %v3698_v63 = vmul.f32 %v7237_v48, %v7237_v48  ;;  %v3756_v4 = vmul.f32 %v7231_v30, %v3692_v46  ;;  %v3761_v6 = vmul.f32 %v7236_v40, %v3697_v56  ;;  %v8881_v46 = vld [vmem:[%s8732_s15 + $0x1d0] sm:$0xff]  ;;  %v8884_v47 = vld [vmem:[%s8732_s15 + $0x1d8] sm:$0xff] }
  0x6a   : > { %3809 = vadd.xlane.f32.xlu1 %v3808_v23  ;;  %v3696_v7 = vmul.f32 %v7235_v54, %v7235_v54  ;;  %v6929_v3 = vadd.f32 %v6928_v55, %v3693_v39  ;;  %v3759_v10 = vmul.f32 %v7234_v42, %v3695_v29  ;;  %v3701_v13 = vmul.f32 %v7240_v60, %v7240_v60 }
  0x6b   : > { %3806 = vadd.xlane.f32.xlu0 %v3805_v24  ;;  %v3762_v2 = vmul.f32 %v7237_v48, %v3698_v63  ;;  %v6950_v12 = vadd.f32 %v6949_v37, %v3694_v51  ;;  %v3702_v17 = vmul.f32 %v7241_v0, %v7241_v0  ;;  %v3699_v41 = vmul.f32 %v7238_v1, %v7238_v1  ;;  %v8887_v51 = vld [vmem:[%s8732_s15 + $0x1e0] sm:$0xff] }
  0x6c   : > { %v3760_v14 = vmul.f32 %v7235_v54, %v3696_v7  ;;  %v6930_v16 = vadd.f32 %v6929_v3, %v3695_v29  ;;  %v6914_v5 = vadd.f32 %v6913_v36, %v8855_v15  ;;  %v3700_v20 = vmul.f32 %v7239_v8, %v7239_v8  ;;  %v7217_v15 = vld [vmem:[%s8732_s15 + $0x1c8] sm:$0xff]  ;;  %v8893_v29 = vld [vmem:[%s8732_s15 + $0x1f0] sm:$0xff] }
  0x6d   : > { %v6951_v19 = vadd.f32 %v6950_v12, %v3696_v7  ;;  %v3675_v21 = vmul.f32 %v7214_v9, %v7214_v9  ;;  %v3841_v22 = vadd.f32 %v3758_v61, %v3757_v52  ;;  %v3765_v23 = vmul.f32 %v7240_v60, %v3701_v13  ;;  %v7244_v60 = vld [vmem:[%s8732_s15 + $0x3a0] sm:$0xff] }
  0x6e   : > { %3830 = vadd.xlane.f32.xlu1 %v3829_v11  ;;  %v3766_v24 = vmul.f32 %v7241_v0, %v3702_v17  ;;  %v6931_v26 = vadd.f32 %v6930_v16, %v3697_v56  ;;  %v3763_v30 = vmul.f32 %v7238_v1, %v3699_v41  ;;  %v3764_v11 = vmul.f32 %v7239_v8, %v3700_v20  ;;  %v8890_v56 = vld [vmem:[%s8732_s15 + $0x1e8] sm:$0xff]  ;;  %v7246_v1 = vld [vmem:[%s8732_s15 + $0x3b0] sm:$0xff]  ;;  %v8908_v8 = vld [vmem:[%s8732_s15 + $0x1f8] sm:$0xff] }
  0x6f   : > { %3812 = vadd.xlane.f32.xlu0 %v3811_v44  ;;  %v6952_v31 = vadd.f32 %v6951_v19, %v3698_v63  ;;  %v3676_v32 = vmul.f32 %v7215_v18, %v7215_v18  ;;  %v3838_v34 = vadd.f32 %v3756_v4, %v3755_v62  ;;  %v3847_v36 = vadd.f32 %v3762_v2, %v3761_v6  ;;  %v7245_v0 = vld [vmem:[%s8732_s15 + $0x3a8] sm:$0xff]  ;;  %v7247_v4 = vld [vmem:[%s8732_s15 + $0x3b8] sm:$0xff] }
  0x70   : > { %v3844_v38 = vadd.f32 %v3760_v14, %v3759_v10  ;;  %v6932_v39 = vadd.f32 %v6931_v26, %v3699_v41  ;;  %v6894_v42 = vadd.f32 %v8862_v35, %v3675_v21  ;;  %v3703_v44 = vmul.f32 %v7242_v27, %v7242_v27  ;;  %v8923_v14 = vld [vmem:[%s8732_s15 + $0x3c0] sm:$0xff] }
  0x71   : > { %v6953_v40 = vadd.f32 %v6952_v31, %v3700_v20  ;;  %v3704_v45 = vmul.f32 %v7243_v28, %v7243_v28  ;;  %v6915_v48 = vadd.f32 %v6914_v5, %v3676_v32  ;;  %v3677_v52 = vmul.f32 %v7216_v33, %v7216_v33 }
  0x72   : > { %3836 = vadd.xlane.f32.xlu1 %v3835_v49  ;;  %v6933_v49 = vadd.f32 %v6932_v39, %v3701_v13  ;;  %v3678_v53 = vmul.f32 %v7217_v15, %v7217_v15  ;;  %v3853_v54 = vadd.f32 %v3766_v24, %v3765_v23  ;;  %v3850_v35 = vadd.f32 %v3764_v11, %v3763_v30  ;;  %v8940_v39 = vld [vmem:[%s8732_s15 + $0x3e0] sm:$0xff] }
  0x73   : > { %3833 = vadd.xlane.f32.xlu0 %v3832_v50  ;;  %v3739_v50 = vmul.f32 %v7214_v9, %v3675_v21  ;;  %v6954_v55 = vadd.f32 %v6953_v40, %v3702_v17  ;;  %v3740_v61 = vmul.f32 %v7215_v18, %v3676_v32  ;;  %v3767_v62 = vmul.f32 %v7242_v27, %v3703_v44  ;;  %v7250_v32 = vld [vmem:[%s8732_s15 + $0x3d0] sm:$0xff] }
  0x74   : > { %v8898_v37 = vmul.f32 %v8881_v46, %v8881_v46  ;;  %v8902_v63 = vmul.f32 %v8884_v47, %v8884_v47  ;;  %v3768_v6 = vmul.f32 %v7243_v28, %v3704_v45  ;;  %v6934_v7 = vadd.f32 %v6933_v49, %v3703_v44 }
  0x75   : > { %v6955_v3 = vadd.f32 %v6954_v55, %v3704_v45  ;;  %v8912_v9 = vmul.f32 %v8887_v51, %v8887_v51  ;;  %v8916_v2 = vmul.f32 %v8890_v56, %v8890_v56  ;;  %v8920_v10 = vmul.f32 %v8893_v29, %v8893_v29 }
  0x76   : > { %3842 = vadd.xlane.f32.xlu1 %v3841_v22  ;;  %v6895_v12 = vadd.f32 %v6894_v42, %v3677_v52  ;;  %v6916_v13 = vadd.f32 %v6915_v48, %v3678_v53  ;;  %v3705_v16 = vmul.f32 %v7244_v60, %v7244_v60  ;;  %v3706_v17 = vmul.f32 %v7245_v0, %v7245_v0  ;;  %v7249_v22 = vld [vmem:[%s8732_s15 + $0x3c8] sm:$0xff] }
  0x77   : > { %3839 = vadd.xlane.f32.xlu0 %v3838_v34  ;;  %v3707_v41 = vmul.f32 %v7246_v1, %v7246_v1  ;;  %v3708_v18 = vmul.f32 %v7247_v4, %v7247_v4  ;;  %v8927_v5 = vmul.f32 %v8908_v8, %v8908_v8  ;;  %v3741_v19 = vmul.f32 %v7216_v33, %v3677_v52  ;;  %v8945_v48 = vld [vmem:[%s8732_s15 + $0x3e8] sm:$0xff] }
  0x78   : > { %v6896_v20 = vadd.f32 %v6895_v12, %v8898_v37  ;;  %v6917_v21 = vadd.f32 %v6916_v13, %v8902_v63  ;;  %v3742_v23 = vmul.f32 %v7217_v15, %v3678_v53  ;;  %v6935_v24 = vadd.f32 %v6934_v7, %v3705_v16  ;;  %v7251_v15 = vld [vmem:[%s8732_s15 + $0x3d8] sm:$0xff] }
  0x79   : > { %v6956_v26 = vadd.f32 %v6955_v3, %v3706_v17  ;;  %v3709_v27 = vmul.f32 %v8923_v14, %v8923_v14  ;;  %v3557_v28 = vrot.slane %v8846_v58, 2  ;;  %v3814_v30 = vadd.f32 %v3740_v61, %v3739_v50 }
  0x7a   : > { %3848 = vadd.xlane.f32.xlu1 %v3847_v36  ;;  %v6897_v11 = vadd.f32 %v6896_v20, %v8912_v9  ;;  %v6918_v31 = vadd.f32 %v6917_v21, %v8916_v2  ;;  %v3856_v33 = vadd.f32 %v3768_v6, %v3767_v62  ;;  %v6936_v34 = vadd.f32 %v6935_v24, %v3707_v41  ;;  %v8948_v62 = vld [vmem:[%s8732_s15 + $0x3f0] sm:$0xff]  ;;  %v8951_v6 = vld [vmem:[%s8732_s15 + $0x3f8] sm:$0xff] }
  0x7b   : > { %3845 = vadd.xlane.f32.xlu0 %v3844_v38  ;;  %v6957_v36 = vadd.f32 %v6956_v26, %v3708_v18  ;;  %v3710_v38 = vmul.f32 %v7249_v22, %v7249_v22  ;;  %v3769_v44 = vmul.f32 %v7244_v60, %v3705_v16  ;;  %v3770_v45 = vmul.f32 %v7245_v0, %v3706_v17 }
  0x7c   : > { %v6898_v40 = vadd.f32 %v6897_v11, %v8920_v10  ;;  %v6919_v42 = vadd.f32 %v6918_v31, %v8927_v5  ;;  %v3817_v49 = vadd.f32 %v3742_v23, %v3741_v19  ;;  %v6937_v52 = vadd.f32 %v6936_v34, %v3709_v27 }
  0x7d   : > { %v6958_v53 = vadd.f32 %v6957_v36, %v3710_v38  ;;  %v3712_v61 = vmul.f32 %v7251_v15, %v7251_v15  ;;  %v3771_v7 = vmul.f32 %v7246_v1, %v3707_v41  ;;  %v3772_v60 = vmul.f32 %v7247_v4, %v3708_v18 }
  0x7e   : > { %3854 = vadd.xlane.f32.xlu1 %v3853_v54  ;;  %v3711_v54 = vmul.f32 %v7250_v32, %v7250_v32  ;;  %v6899_v50 = vrot.slane %v6898_v40, 4  ;;  %v6920_v55 = vrot.slane %v6919_v42, 4  ;;  %v3714_v3 = vmul.f32 %v8945_v48, %v8945_v48 }
  0x7f   : > { %3851 = vadd.xlane.f32.xlu0 %v3850_v35  ;;  %v3713_v35 = vmul.f32 %v8940_v39, %v8940_v39  ;;  %v3859_v16 = vadd.f32 %v3770_v45, %v3769_v44  ;;  %v6959_v17 = vadd.f32 %v6958_v53, %v3712_v61  ;;  %v3539_v19 = vadd.f32 %v3538_v25, %v8824_v57 }
  0x80   : > { %v6938_v0 = vadd.f32 %v6937_v52, %v3711_v54  ;;  %v6900_v12 = vadd.f32 %v6899_v50, %v6898_v40  ;;  %v6921_v13 = vadd.f32 %v6920_v55, %v6919_v42  ;;  %v3578_v20 = vrot.slane %v8848_v59, 2 }
  0x81   : > { %v3715_v21 = vmul.f32 %v8948_v62, %v8948_v62  ;;  %v3716_v1 = vmul.f32 %v8951_v6, %v8951_v6  ;;  %v3558_v4 = vadd.f32 %v3557_v28, %v8846_v58  ;;  %v3862_v24 = vadd.f32 %v3772_v60, %v3771_v7 }
  0x82   : > { %3815 = vadd.xlane.f32.xlu1 %v3814_v30  ;;  %v6901_v41 = vrot.slane %v6900_v12, 2  ;;  %v6922_v18 = vrot.slane %v6921_v13, 2  ;;  %v6939_v23 = vadd.f32 %v6938_v0, %v3713_v35  ;;  %v3773_v26 = vmul.f32 %v8923_v14, %v3709_v27 }
  0x83   : > { %3857 = vadd.xlane.f32.xlu0 %v3856_v33  ;;  %v3774_v30 = vmul.f32 %v7249_v22, %v3710_v38  ;;  %v6960_v11 = vadd.f32 %v6959_v17, %v3714_v3  ;;  %v3743_v33 = vmul.f32 %v8881_v46, %v8898_v37  ;;  %v3744_v58 = vmul.f32 %v8884_v47, %v8902_v63 }
  0x84   : > { %v6902_v57 = vadd.f32 %v6901_v41, %v6900_v12  ;;  %v6923_v25 = vadd.f32 %v6922_v18, %v6921_v13  ;;  %v6940_v31 = vadd.f32 %v6939_v23, %v3715_v21  ;;  %v3745_v28 = vmul.f32 %v8887_v51, %v8912_v9 }
  0x85   : > { %v6961_v34 = vadd.f32 %v6960_v11, %v3716_v1  ;;  %v3746_v36 = vmul.f32 %v8890_v56, %v8916_v2  ;;  %v3579_v14 = vadd.f32 %v3578_v20, %v8848_v59  ;;  %v3865_v40 = vadd.f32 %v3774_v30, %v3773_v26 }
  0x86   : > { %3818 = vadd.xlane.f32.xlu1 %v3817_v49  ;;  %v6903_v22 = vrot.slane %v6902_v57, 1  ;;  %v6924_v27 = vrot.slane %v6923_v25, 1  ;;  %v6941_v38 = vrot.slane %v6940_v31, 4  ;;  %v3775_v42 = vmul.f32 %v7250_v32, %v3711_v54 }
  0x87   : > { %3860 = vadd.xlane.f32.xlu0 %v3859_v16  ;;  %v6962_v44 = vrot.slane %v6961_v34, 4  ;;  %v3820_v45 = vadd.f32 %v3744_v58, %v3743_v33  ;;  %v3776_v49 = vmul.f32 %v7251_v15, %v3712_v61  ;;  %v3823_v51 = vadd.f32 %v3746_v36, %v3745_v28 }
  0x88   : > { %v6904_v46 = vadd.f32 %v6903_v22, %v6902_v57  ;;  %v6925_v37 = vadd.f32 %v6924_v27, %v6923_v25  ;;  %v6942_v47 = vadd.f32 %v6941_v38, %v6940_v31  ;;  %v3747_v56 = vmul.f32 %v8893_v29, %v8920_v10 }
  0x89   : > { %v6963_v63 = vadd.f32 %v6962_v44, %v6961_v34  ;;  %v3748_v59 = vmul.f32 %v8908_v8, %v8927_v5  ;;  %v3559_v9 = vrot.slane %v3558_v4, 1  ;;  %v3580_v53 = vrot.slane %v3579_v14, 1 }
  0x8a   : > { %3821 = vadd.xlane.f32.xlu1 %v3820_v45  ;;  %v6968_v2 = vadd.f32 %v6904_v46, %v8841_v43  ;;  %v6969_v32 = vadd.f32 %v6925_v37, %v3539_v19  ;;  %v6943_v52 = vrot.slane %v6942_v47, 2  ;;  %v3777_v54 = vmul.f32 %v8940_v39, %v3713_v35 }
  0x8b   : > { %3863 = vadd.xlane.f32.xlu0 %v3862_v24  ;;  %v3778_v15 = vmul.f32 %v8945_v48, %v3714_v3  ;;  %v6964_v50 = vrot.slane %v6963_v63, 2  ;;  %v3868_v55 = vadd.f32 %v3776_v49, %v3775_v42  ;;  %v3779_v29 = vmul.f32 %v8948_v62, %v3715_v21 }
  0x8c   : > { %v6944_v61 = vadd.f32 %v6943_v52, %v6942_v47  ;;  %8425 = vrsqrt.f32 %v6968_v2  ;;  %v3826_v8 = vadd.f32 %v3748_v59, %v3747_v56  ;;  %v3780_v43 = vmul.f32 %v8951_v6, %v3716_v1 }
  0x8d   : > { %v6965_v10 = vadd.f32 %v6964_v50, %v6963_v63  ;;  %8427 = vrsqrt.f32 %v6969_v32  ;;  %v3560_v5 = vadd.f32 %v3559_v9, %v3558_v4  ;;  %v3581_v60 = vadd.f32 %v3580_v53, %v3579_v14 }
  0x8e   : > { %3824 = vadd.xlane.f32.xlu1 %v3823_v51  ;;  %v6945_v7 = vrot.slane %v6944_v61, 1  ;;  %v8701_v39 = vmov 0   ;;  %v3871_v48 = vadd.f32 %v3778_v15, %v3777_v54  ;;  %v3874_v12 = vadd.f32 %v3780_v43, %v3779_v29 }
  0x8f   : > { %3866 = vadd.xlane.f32.xlu0 %v3865_v40  ;;  %v6966_v0 = vrot.slane %v6965_v10, 1  ;;  %8424 = vset.pattern.permute.xlu1 %v8701_v39  ;;  %vm6974_vm0 = vcmp.eq.f32.partialorder %v6968_v2, inf  ;;  %vm6981_vm1 = vcmp.eq.f32.partialorder %v6969_v32, inf  ;;  %v6977_v20 = vand.u32 2147483648, %v6968_v2 }
  0x90   : > { %8423 = vset.pattern.permute.xlu0 %v8701_v39  ;;  %v6946_v35 = vadd.f32 %v6945_v7, %v6944_v61  ;;  %vm6976_vm2 = vcmp.eq.f32.partialorder %v6968_v2, 0.0  ;;  %v6984_v1 = vand.u32 2147483648, %v6969_v32  ;;  %vm6983_vm3 = vcmp.eq.f32.partialorder %v6969_v32, 0.0 }
  0x91   : > { %v6967_v3 = vadd.f32 %v6966_v0, %v6965_v10 }
  0x92   : > { %3827 = vadd.xlane.f32.xlu1 %v3826_v8  ;;  %v6970_v62 = vadd.f32 %v6946_v35, %v3560_v5 }
  0x93   : > { %3869 = vadd.xlane.f32.xlu0 %v3868_v55  ;;  %v6971_v13 = vadd.f32 %v6967_v3, %v3581_v60 }
  0x94   : > { %8429 = vrsqrt.f32 %v6970_v62  ;;  %vm6988_vm4 = vcmp.eq.f32.partialorder %v6970_v62, inf  ;;  %v6991_v18 = vand.u32 2147483648, %v6970_v62  ;;  %vm6990_vm5 = vcmp.eq.f32.partialorder %v6970_v62, 0.0 }
  0x95   : > { %8431 = vrsqrt.f32 %v6971_v13  ;;  %vm6995_vm6 = vcmp.eq.f32.partialorder %v6971_v13, inf  ;;  %v6998_v26 = vand.u32 2147483648, %v6971_v13  ;;  %vm6997_vm7 = vcmp.eq.f32.partialorder %v6971_v13, 0.0 }
  0x96   : > { %3875 = vadd.xlane.f32.xlu1 %v3874_v12  ;;  %v8426_v6 = vpop.eup %8425 }
  0x97   : > { %3872 = vadd.xlane.f32.xlu0 %v3871_v48  ;;  %v8428_v16 = vpop.eup %8427  ;;  %v6973_v17 = vmul.f32 %v8426_v6, %v6968_v2 }
  0x98   : > { %v6980_v19 = vmul.f32 %v8428_v16, %v6969_v32 }
  0x99   : > { %v6975_v21 = vsel %vm6974_vm0, %v6968_v2, %v6973_v17 }
  0x9a   : > { %v6982_v41 = vsel %vm6981_vm1, %v6969_v32, %v6980_v19  ;;  %v8985_v30 = vsel %vm6976_vm2, %v6977_v20, %v6975_v21  ;;  %v12643_v20 = vlaneseq }
  0x9b   : > { %12682 = vst [vmem:[#allocation2_spill] sm:$0xff] %v8985_v30  ;;  %v8987_v57 = vsel %vm6983_vm3, %v6984_v1, %v6982_v41 }
  0x9c   : > { %12683 = vst [vmem:[#allocation3_spill] sm:$0xff] %v8987_v57 }
  0x9e   : > { %v8430_v4 = vpop.eup %8429 }
  0x9f   : > { %v8432_v23 = vpop.eup %8431  ;;  %v6987_v24 = vmul.f32 %v8430_v4, %v6970_v62 }
  0xa0   : > { %v6994_v11 = vmul.f32 %v8432_v23, %v6971_v13 }
  0xa1   : > { %v6989_v25 = vsel %vm6988_vm4, %v6970_v62, %v6987_v24  ;;  %v8702_v24 = vmov 1966171168  }
  0xa2   : > { %v8989_v31 = vsel %vm6990_vm5, %v6991_v18, %v6989_v25  ;;  %v6996_v33 = vsel %vm6995_vm6, %v6971_v13, %v6994_v11  ;;  %v9055_v18 = vshrl.u32 %v12643_v20, 7 }
  0xa3   : > { %12684 = vst [vmem:[#allocation4_spill] sm:$0xff] %v8989_v31  ;;  %v8991_v34 = vsel %vm6997_vm7, %v6998_v26, %v6996_v33  ;;  %v7005_v58 = vsel %vm12642_vm8, %v8989_v31, %v8985_v30  ;;  %v1613_v26 = vunpack.c.l.s4 %v8702_v24 }
  0xa4   : > { %12685 = vst [vmem:[#allocation5_spill] sm:$0xff] %v8991_v34  ;;  %v7006_v28 = vsel %vm12642_vm8, %v8991_v34, %v8987_v57  ;;  %v7010_v36 = vsel %vm12641_vm9, %v7005_v58, inf  ;;  %12686 = vst [vmem:[#allocation6_spill] sm:$0xff] %v9055_v18  ;;  %v9061_v58 = vsub.s32 0, %v9055_v18 }
  0xa5   : > { %v7011_v14 = vsel %vm12641_vm9, %v7006_v28, inf }
  0xa6   : > { %v7012_v22 = vmin.f32 %v7010_v36, %v7011_v14 }
  0xa7   : > { %v367_v27 = vpop.xlane.xlu1 %366 }
  0xa8   : > { %7013 = vmin.xlane.f32.xlu0 %v7012_v22  ;;  %v361_v38 = vpop.xlane.xlu0 %360  ;;  %v458_v40 = vmul.f32 0.00390625, %v367_v27 }
  0xa9   : > { %v456_v42 = vmul.f32 0.00390625, %v361_v38  ;;  %v1614_v38 = vunpack.c.0.s8 %v1613_v26 }
  0xaa   : > { %v9001_v37 = vadd.f32 1e-12, %v458_v40 }
  0xab   : > { %v370_v44 = vpop.xlane.xlu1 %369  ;;  %v9003_v49 = vadd.f32 1e-12, %v456_v42 }
  0xac   : > { %v459_v45 = vmul.f32 0.00390625, %v370_v44  ;;  %v364_v46 = vpop.xlane.xlu0 %363  ;;  %v9008_v56 = vand.u32 2147483647, %v9001_v37  ;;  %v7303_v36 = vand.u32 2147483648, %v9001_v37  ;;  %v9067_v44 = vsub.s32 1, %v9055_v18 }
  0xad   : > { %v457_v63 = vmul.f32 0.00390625, %v364_v46  ;;  %v9011_v59 = vand.u32 2147483647, %v9003_v49  ;;  %v9073_v46 = vsub.s32 3, %v9055_v18  ;;  %vm7298_vm10 = vcmp.lt.f32.partialorder %v9001_v37, 0.0 }
  0xae   : > { %v9005_v47 = vadd.f32 1e-12, %v459_v45  ;;  %8433 = vlog2.f32 %v9008_v56  ;;  %v9070_v45 = vsub.s32 2, %v9055_v18  ;;  %vm7307_vm11 = vweird.f32 %v9008_v56 }
  0xaf   : > { %v376_v51 = vpop.xlane.xlu1 %375  ;;  %v9016_v2 = vadd.f32 1e-12, %v457_v63  ;;  %8435 = vlog2.f32 %v9011_v59  ;;  %vm7309_vm12 = vcmp.eq.f32.partialorder %v9008_v56, 0.0  ;;  %vm7271_vm13 = vweird.f32 %v9011_v59 }
  0xb0   : > { %v9014_v9 = vand.u32 2147483647, %v9005_v47  ;;  %v373_v32 = vpop.xlane.xlu0 %372  ;;  %v461_v52 = vmul.f32 0.00390625, %v376_v51  ;;  %v7321_v51 = vand.u32 2147483648, %v9005_v47  ;;  %vm7262_vm14 = vcmp.lt.f32.partialorder %v9003_v49, 0.0 }
  0xb1   : > { %v9022_v54 = vand.u32 2147483647, %v9016_v2  ;;  %v460_v15 = vmul.f32 0.00390625, %v373_v32  ;;  %vm7273_vm15 = vcmp.eq.f32.partialorder %v9011_v59, 0.0  ;;  %vm7297_vm1 = vcmp.eq.f32.partialorder %v9001_v37, 0.0 }
  0xb2   : > { %8437 = vlog2.f32 %v9014_v9  ;;  %v9024_v55 = vadd.f32 1e-12, %v461_v52  ;;  %v9080_v52 = vsub.s32 4, %v9055_v18  ;;  %vm7325_vm0 = vweird.f32 %v9014_v9 }
  0xb3   : > { %v382_v53 = vpop.xlane.xlu1 %381  ;;  %8439 = vlog2.f32 %v9022_v54  ;;  %v9027_v29 = vadd.f32 1e-12, %v460_v15  ;;  %v7285_v24 = vand.u32 2147483648, %v9016_v2  ;;  %vm7261_vm2 = vcmp.eq.f32.partialorder %v9003_v49, 0.0 }
  0xb4   : > { %v463_v50 = vmul.f32 0.00390625, %v382_v53  ;;  %v379_v61 = vpop.xlane.xlu0 %378  ;;  %v9032_v5 = vand.u32 2147483647, %v9024_v55  ;;  %v9083_v53 = vsub.s32 5, %v9055_v18  ;;  %vm7315_vm3 = vcmp.eq.f32.partialorder %v9005_v47, 0.0 }
  0xb5   : > { %v462_v43 = vmul.f32 0.00390625, %v379_v61  ;;  %v9035_v60 = vand.u32 2147483647, %v9027_v29  ;;  %vm7327_vm4 = vcmp.eq.f32.partialorder %v9014_v9, 0.0  ;;  %vm7300_vm5 = vcmp.eq.f32.partialorder %v9008_v56, inf }
  0xb6   : > { %v9029_v8 = vadd.f32 1e-12, %v463_v50  ;;  %8441 = vlog2.f32 %v9032_v5  ;;  %v7267_v50 = vand.u32 2147483648, %v9003_v49  ;;  %vm7316_vm6 = vcmp.lt.f32.partialorder %v9005_v47, 0.0 }
  0xb7   : > { %v388_v10 = vpop.xlane.xlu1 %387  ;;  %v9040_v3 = vadd.f32 1e-12, %v462_v43  ;;  %8443 = vlog2.f32 %v9035_v60  ;;  %v9090_v43 = vsub.s32 7, %v9055_v18  ;;  %vm7280_vm7 = vcmp.lt.f32.partialorder %v9016_v2, 0.0 }
  0xb8   : > { %v8434_v7 = vpop.eup %8433  ;;  %v465_v0 = vmul.f32 0.00390625, %v388_v10  ;;  %v9038_v35 = vand.u32 2147483647, %v9029_v8  ;;  %v385_v19 = vpop.xlane.xlu0 %384  ;;  %v9087_v10 = vsub.s32 6, %v9055_v18  ;;  %vm7279_vm9 = vcmp.eq.f32.partialorder %v9016_v2, 0.0 }
  0xb9   : > { %v8436_v39 = vpop.eup %8435  ;;  %v7304_v12 = vmul.f32 0.33333334, %v8434_v7  ;;  %v9048_v17 = vand.u32 2147483647, %v9040_v3  ;;  %v464_v41 = vmul.f32 0.00390625, %v385_v19  ;;  %vm7343_vm8 = vweird.f32 %v9035_v60 }
  0xba   : > { %v7268_v62 = vmul.f32 0.33333334, %v8436_v39  ;;  %v9044_v13 = vadd.f32 1e-12, %v465_v0  ;;  %8445 = vlog2.f32 %v9038_v35 }
  0xbb   : > { %8447 = vpow2.f32 %v7304_v12  ;;  %v394_v4 = vpop.xlane.xlu1 %393  ;;  %v9058_v33 = vadd.f32 1e-12, %v464_v41 }
  0xbc   : > { %v8438_v48 = vpop.eup %8437  ;;  %8449 = vpow2.f32 %v7268_v62  ;;  %v9051_v21 = vand.u32 2147483647, %v9044_v13  ;;  %v467_v23 = vmul.f32 0.00390625, %v394_v4  ;;  %v391_v27 = vpop.xlane.xlu0 %390 }
  0xbd   : > { %v7322_v6 = vmul.f32 0.33333334, %v8438_v48  ;;  %v8440_v16 = vpop.eup %8439  ;;  %v9077_v32 = vand.u32 2147483647, %v9058_v33  ;;  %v9098_v48 = vsub.s32 %v1614_v38, %v9055_v18  ;;  %v466_v62 = vmul.f32 0.00390625, %v391_v27 }
  0xbe   : > { %v7286_v1 = vmul.f32 0.33333334, %v8440_v16  ;;  %v9064_v22 = vadd.f32 1e-12, %v467_v23 }
  0xbf   : > { %8451 = vpow2.f32 %v7322_v6  ;;  %v400_v6 = vpop.xlane.xlu1 %399 }
  0xc0   : > { %8453 = vlog2.f32 %v9048_v17  ;;  %v8442_v11 = vpop.eup %8441  ;;  %v9095_v39 = vand.u32 2147483647, %v9064_v22  ;;  %v469_v26 = vmul.f32 0.00390625, %v400_v6 }
  0xc1   : > { %8455 = vlog2.f32 %v9051_v21  ;;  %v8444_v25 = vpop.eup %8443  ;;  %v7358_v14 = vmul.f32 0.33333334, %v8442_v11 }
  0xc2   : > { %8457 = vpow2.f32 %v7286_v1  ;;  %v7340_v42 = vmul.f32 0.33333334, %v8444_v25  ;;  %v397_v1 = vpop.xlane.xlu0 %396 }
  0xc3   : > { %8459 = vpow2.f32 %v7358_v14  ;;  %v468_v14 = vmul.f32 0.00390625, %v397_v1 }
  0xc4   : > { %v8446_v28 = vpop.eup %8445  ;;  %8461 = vpow2.f32 %v7340_v42 }
  0xc5   : > { %v8448_v40 = vpop.eup %8447  ;;  %v7394_v61 = vmul.f32 0.33333334, %v8446_v28  ;;  %8463 = vlog2.f32 %v9077_v32  ;;  %v9115_v28 = vadd.f32 1e-12, %v466_v62  ;;  %v7393_v62 = vand.u32 2147483648, %v9029_v8 }
  0xc6   : > { %v8450_v63 = vpop.eup %8449  ;;  %v7306_v0 = vor.u32 %v8448_v40, %v7303_v36 }
  0xc7   : > { %v7270_v12 = vor.u32 %v8450_v63, %v7267_v50  ;;  %8465 = vpow2.f32 %v7394_v61  ;;  %v7357_v63 = vand.u32 2147483648, %v9024_v55 }
  0xc8   : > { %v7308_v23 = vsel %vm7307_vm11, %v9001_v37, %v7306_v0  ;;  %8467 = vlog2.f32 %v9095_v39  ;;  %vm7289_vm11 = vweird.f32 %v9022_v54  ;;  %v9138_v0 = vadd.f32 1e-12, %v468_v14 }
  0xc9   : > { %v8452_v15 = vpop.eup %8451  ;;  %v7272_v11 = vsel %vm7271_vm13, %v9003_v49, %v7270_v12  ;;  %v7311_v40 = vsel %vm7309_vm12, %v7303_v36, %v7308_v23  ;;  %vm7264_vm13 = vcmp.eq.f32.partialorder %v9011_v59, inf  ;;  %vm7291_vm12 = vcmp.eq.f32.partialorder %v9022_v54, 0.0 }
  0xca   : > { %v8454_v7 = vpop.eup %8453  ;;  %v7324_v19 = vor.u32 %v8452_v15, %v7321_v51  ;;  %v7275_v42 = vsel %vm7273_vm15, %v7267_v50, %v7272_v11  ;;  %v9132_v15 = vadd.f32 1e-12, %v469_v26  ;;  %vm7361_vm15 = vweird.f32 %v9032_v5 }
  0xcb   : > { %v8456_v16 = vpop.eup %8455  ;;  %v7376_v41 = vmul.f32 0.33333334, %v8454_v7  ;;  %v9136_v7 = vand.u32 2147483647, %v9115_v28 }
  0xcc   : > { %v8458_v4 = vpop.eup %8457  ;;  %v7430_v25 = vmul.f32 0.33333334, %v8456_v16  ;;  %v7326_v27 = vsel %vm7325_vm0, %v9005_v47, %v7324_v19  ;;  %vm7318_vm0 = vcmp.eq.f32.partialorder %v9014_v9, inf  ;;  %v7312_v16 = vsel %vm7298_vm10, nan, %v7311_v40 }
  0xcd   : > { %v7288_v38 = vor.u32 %v8458_v4, %v7285_v24  ;;  %8469 = vpow2.f32 %v7376_v41  ;;  %v7329_v61 = vsel %vm7327_vm4, %v7321_v51, %v7326_v27  ;;  %v8460_v12 = vpop.eup %8459  ;;  %vm7363_vm4 = vcmp.eq.f32.partialorder %v9032_v5, 0.0  ;;  %v406_v41 = vpop.xlane.xlu1 %405 }
  0xce   : > { %8471 = vpow2.f32 %v7430_v25  ;;  %v8462_v50 = vpop.eup %8461  ;;  %v7339_v51 = vand.u32 2147483648, %v9027_v29  ;;  %v7276_v19 = vsel %vm7262_vm14, nan, %v7275_v42  ;;  %v7330_v1 = vsel %vm7316_vm6, nan, %v7329_v61 }
  0xcf   : > { %v7290_v36 = vsel %vm7289_vm11, %v9016_v2, %v7288_v38  ;;  %v8464_v6 = vpop.eup %8463  ;;  %v9157_v4 = vand.u32 2147483647, %v9132_v15  ;;  %v7360_v11 = vor.u32 %v8460_v12, %v7357_v63  ;;  %8473 = vlog2.f32 %v9136_v7  ;;  %v403_v12 = vpop.xlane.xlu0 %402 }
  0xd0   : > { %v7293_v26 = vsel %vm7291_vm12, %v7285_v24, %v7290_v36  ;;  %v9165_v25 = vand.u32 2147483647, %v9138_v0  ;;  %vm7397_vm14 = vweird.f32 %v9038_v35  ;;  %vm7399_vm6 = vcmp.eq.f32.partialorder %v9038_v35, 0.0 }
  0xd1   : > { %v8466_v23 = vpop.eup %8465  ;;  %v12646_v27 = vand.u32 2147483648, %v9040_v3  ;;  %v12645_v38 = vand.u32 2147483648, %v9044_v13  ;;  %v7313_v24 = vsel %vm7297_vm1, 0.0, %v7312_v16  ;;  %v7277_v40 = vsel %vm7261_vm2, 0.0, %v7276_v19 }
  0xd2   : > { %v8468_v14 = vpop.eup %8467  ;;  %vm7345_vm12 = vcmp.eq.f32.partialorder %v9035_v60, 0.0  ;;  %vm7379_vm11 = vweird.f32 %v9048_v17  ;;  %vm7433_vm10 = vweird.f32 %v9051_v21  ;;  %v7412_v42 = vmul.f32 0.33333334, %v8464_v6 }
  0xd3   : > { %v471_v61 = vmul.f32 0.00390625, %v406_v41  ;;  %v7331_v36 = vsel %vm7315_vm3, 0.0, %v7330_v1  ;;  %v7294_v20 = vsel %vm7280_vm7, nan, %v7293_v26  ;;  %v7342_v37 = vor.u32 %v8462_v50, %v7339_v51 }
  0xd4   : > { %8475 = vlog2.f32 %v9157_v4  ;;  %vm7351_vm1 = vcmp.eq.f32.partialorder %v9024_v55, 0.0  ;;  %v7362_v6 = vsel %vm7361_vm15, %v9024_v55, %v7360_v11  ;;  %v7396_v16 = vor.u32 %v8466_v23, %v7393_v62 }
  0xd5   : > { %v7466_v47 = vmul.f32 0.33333334, %v8468_v14  ;;  %8477 = vlog2.f32 %v9165_v25  ;;  %v9195_v19 = vsel %vm7300_vm5, inf, %v7313_v24  ;;  %v9199_v50 = vsel %vm7264_vm13, inf, %v7277_v40  ;;  %v412_v40 = vpop.xlane.xlu1 %411 }
  0xd6   : > { %vm7388_vm2 = vcmp.lt.f32.partialorder %v9029_v8, 0.0  ;;  %v470_v41 = vmul.f32 0.00390625, %v403_v12  ;;  %v9205_v23 = vsel %vm7318_vm0, inf, %v7331_v36  ;;  %vm7334_vm3 = vcmp.lt.f32.partialorder %v9027_v29, 0.0 }
  0xd7   : > { %v8470_v49 = vpop.eup %8469  ;;  %vm7435_vm7 = vcmp.eq.f32.partialorder %v9051_v21, 0.0  ;;  %8479 = vpow2.f32 %v7412_v42  ;;  %v9210_v59 = vadd.f32 1e-12, %v471_v61  ;;  %v7295_v11 = vsel %vm7279_vm9, 0.0, %v7294_v20 }
  0xd8   : > { %v8472_v26 = vpop.eup %8471  ;;  %v7365_v14 = vsel %vm7363_vm4, %v7357_v63, %v7362_v6  ;;  %v7344_v9 = vsel %vm7343_vm8, %v9027_v29, %v7342_v37  ;;  %v7378_v24 = vor.u32 %v8470_v49, %v12646_v27  ;;  %vm7354_vm5 = vcmp.eq.f32.partialorder %v9032_v5, inf }
  0xd9   : > { %v7398_v2 = vsel %vm7397_vm14, %v9029_v8, %v7396_v16  ;;  %vm7381_vm9 = vcmp.eq.f32.partialorder %v9048_v17, 0.0  ;;  %8481 = vpow2.f32 %v7466_v47  ;;  %v587_v20 = vrot.slane %v9199_v50, %v9061_v58  ;;  %v8474_v37 = vpop.eup %8473 }
  0xda   : > { %v591_v63 = vrot.slane %v9199_v50, %v9067_v44  ;;  %vm7387_vm8 = vcmp.eq.f32.partialorder %v9029_v8, 0.0  ;;  %v7432_v42 = vor.u32 %v8472_v26, %v12645_v38  ;;  %v9235_v61 = vadd.f32 1e-12, %v470_v41 }
  0xdb   : > { %v595_v12 = vrot.slane %v9199_v50, %v9070_v45  ;;  %v599_v36 = vrot.slane %v9199_v50, %v9073_v46  ;;  %vm12687_vm13 = vcmp.eq.f32.partialorder %v9022_v54, inf  ;;  %vm12688_vm0 = vcmp.lt.f32.partialorder %v9024_v55, 0.0 }
  0xdc   : > { %v9243_v49 = vsel %vm12687_vm13, inf, %v7295_v11  ;;  %v7366_v6 = vsel %vm12688_vm0, nan, %v7365_v14  ;;  %vm7333_vm15 = vcmp.eq.f32.partialorder %v9027_v29, 0.0  ;;  %vm7424_vm4 = vcmp.lt.f32.partialorder %v9044_v13, 0.0  ;;  %v409_v11 = vpop.xlane.xlu0 %408 }
  0xdd   : > { %v9250_v16 = vand.u32 2147483647, %v9210_v59  ;;  %v473_v47 = vmul.f32 0.00390625, %v412_v40  ;;  %v7347_v41 = vsel %vm7345_vm12, %v7339_v51, %v7344_v9  ;;  %v7401_v54 = vsel %vm7399_vm6, %v7393_v62, %v7398_v2 }
  0xde   : > { %vm7370_vm14 = vcmp.lt.f32.partialorder %v9040_v3, 0.0  ;;  %v7380_v26 = vsel %vm7379_vm11, %v9040_v3, %v7378_v24  ;;  %v603_v14 = vrot.slane %v9199_v50, %v9080_v52  ;;  %v607_v40 = vrot.slane %v9199_v50, %v9083_v53  ;;  %v8476_v2 = vpop.eup %8475 }
  0xdf   : > { %v611_v51 = vrot.slane %v9199_v50, %v9087_v10  ;;  %v615_v9 = vrot.slane %v9199_v50, %v9090_v43  ;;  %v1608_v62 = vcombine.low %v587_v20, %v591_v63  ;;  %vm7390_vm6 = vcmp.eq.f32.partialorder %v9038_v35, inf  ;;  %v8478_v27 = vpop.eup %8477 }
  0xe0   : > { %v7434_v24 = vsel %vm7433_vm10, %v9044_v13, %v7432_v42  ;;  %v7448_v56 = vmul.f32 0.33333334, %v8474_v37  ;;  %v9277_v1 = vand.u32 2147483647, %v9235_v61  ;;  %v1609_v38 = vcombine.low %v595_v12, %v599_v36 }
  0xe1   : > { %vm7336_vm11 = vcmp.eq.f32.partialorder %v9035_v60, inf  ;;  %vm7423_vm12 = vcmp.eq.f32.partialorder %v9044_v13, 0.0  ;;  %vm7415_vm13 = vweird.f32 %v9077_v32  ;;  %8483 = vlog2.f32 %v9250_v16  ;;  %v8480_v18 = vpop.eup %8479 }
  0xe2   : > { %v9283_v50 = vadd.f32 1e-12, %v473_v47  ;;  %v472_v20 = vmul.f32 0.00390625, %v409_v11  ;;  %v1610_v63 = vcombine.low %v603_v14, %v607_v40  ;;  %v7367_v42 = vsel %vm7351_vm1, 0.0, %v7366_v6  ;;  %v418_v11 = vpop.xlane.xlu1 %417 }
  0xe3   : > { %v7348_v37 = vsel %vm7334_vm3, nan, %v7347_v41  ;;  %vm7369_vm10 = vcmp.eq.f32.partialorder %v9040_v3, 0.0  ;;  %vm7469_vm0 = vweird.f32 %v9095_v39  ;;  %v1611_v36 = vcombine.low %v611_v51, %v615_v9 }
  0xe4   : > { %v7402_v47 = vsel %vm7388_vm2, nan, %v7401_v54  ;;  %v7502_v57 = vmul.f32 0.33333334, %v8476_v2  ;;  %v1618_v14 = vrot.slane %v1608_v62, %v9098_v48  ;;  %v1625_v55 = vrot.slane %v1609_v38, %v9098_v48  ;;  %v8482_v54 = vpop.eup %8481 }
  0xe5   : > { %v12689_v6 = vand.u32 2147483648, %v9040_v3  ;;  %v12690_v40 = vand.u32 2147483648, %v9044_v13  ;;  %vm7417_vm1 = vcmp.eq.f32.partialorder %v9077_v32, 0.0  ;;  %v7484_v9 = vmul.f32 0.33333334, %v8478_v27 }
  0xe6   : > { %8485 = vlog2.f32 %v9277_v1  ;;  %vm7471_vm2 = vcmp.eq.f32.partialorder %v9095_v39, 0.0  ;;  %v9308_v38 = vand.u32 2147483647, %v9283_v50  ;;  %v9310_v62 = vadd.f32 1e-12, %v472_v20 }
  0xe7   : > { %v7383_v41 = vsel %vm7381_vm9, %v12689_v6, %v7380_v26  ;;  %v7437_v51 = vsel %vm7435_vm7, %v12690_v40, %v7434_v24  ;;  %8487 = vpow2.f32 %v7448_v56  ;;  %v1632_v26 = vrot.slane %v1610_v63, %v9098_v48  ;;  %v415_v40 = vpop.xlane.xlu0 %414 }
  0xe8   : > { %v9315_v2 = vsel %vm7354_vm5, inf, %v7367_v42  ;;  %v7349_v27 = vsel %vm7333_vm15, 0.0, %v7348_v37  ;;  %v12692_v24 = vand.u32 2147483648, %v9058_v33  ;;  %v1639_v56 = vrot.slane %v1611_v36, %v9098_v48  ;;  %v424_v36 = vpop.xlane.xlu1 %423 }
  0xe9   : > { %12691 = vst [vmem:[#allocation7_spill] sm:$0xff] %v9315_v2  ;;  %v7403_v12 = vsel %vm7387_vm8, 0.0, %v7402_v47  ;;  %v7384_v20 = vsel %vm7370_vm14, nan, %v7383_v41  ;;  %vm7406_vm3 = vcmp.lt.f32.partialorder %v9058_v33, 0.0  ;;  %8489 = vpow2.f32 %v7502_v57 }
  0xea   : > { %v7414_v6 = vor.u32 %v8480_v18, %v12692_v24  ;;  %v1640_v5 = vcombine.low %v1618_v14, %v1625_v55  ;;  %v7438_v29 = vsel %vm7424_vm4, nan, %v7437_v51  ;;  %8491 = vpow2.f32 %v7484_v9 }
  0xeb   : > { %v475_v63 = vmul.f32 0.00390625, %v418_v11  ;;  %v1641_v42 = vcombine.low %v1632_v26, %v1639_v56  ;;  %v12693_v18 = vand.u32 2147483648, %v9064_v22  ;;  %8493 = vlog2.f32 %v9308_v38  ;;  %v8484_v41 = vpop.eup %8483 }
  0xec   : > { %v9333_v8 = vand.u32 2147483647, %v9310_v62  ;;  %v1648_v47 = vrot.slane %v1640_v5, %v9098_v48  ;;  %v9338_v57 = vsel %vm7336_vm11, inf, %v7349_v27  ;;  %v7416_v11 = vsel %vm7415_vm13, %v9058_v33, %v7414_v6 }
  0xed   : > { %v7468_v37 = vor.u32 %v8482_v54, %v12693_v18  ;;  %v474_v14 = vmul.f32 0.00390625, %v415_v40  ;;  %v1655_v55 = vrot.slane %v1641_v42, %v9098_v48  ;;  %v9346_v51 = vsel %vm7390_vm6, inf, %v7403_v12  ;;  %v421_v12 = vpop.xlane.xlu0 %420 }
  0xee   : > { %12694 = vst [vmem:[#allocation8_spill] sm:$0xff] %v9346_v51  ;;  %v9350_v9 = vsel %vm7369_vm10, 0.0, %v7384_v20  ;;  %vm7426_vm7 = vcmp.eq.f32.partialorder %v9051_v21, inf  ;;  %v9357_v26 = vsel %vm7423_vm12, 0.0, %v7438_v29  ;;  %vm7460_vm5 = vcmp.lt.f32.partialorder %v9064_v22, 0.0 }
  0xef   : > { %v9360_v27 = vadd.f32 1e-12, %v475_v63  ;;  %v477_v35 = vmul.f32 0.00390625, %v424_v36  ;;  %v1656_v24 = vcombine.low %v1648_v47, %v1655_v55  ;;  %vm7372_vm9 = vcmp.eq.f32.partialorder %v9048_v17, inf }
  0xf0   : > { %v12695_v3 = vand.u32 2147483648, %v9058_v33  ;;  %v7470_v13 = vsel %vm7469_vm0, %v9064_v22, %v7468_v37  ;;  %8495 = vlog2.f32 %v9333_v8  ;;  %v619_v40 = vrot.slane %v9243_v49, %v9061_v58  ;;  %v8486_v56 = vpop.eup %8485 }
  0xf1   : > { %vm7405_vm8 = vcmp.eq.f32.partialorder %v9058_v33, 0.0  ;;  %vm7505_vm15 = vweird.f32 %v9157_v4  ;;  %v7538_v20 = vmul.f32 0.33333334, %v8484_v41  ;;  %v9375_v5 = vadd.f32 1e-12, %v474_v14  ;;  %3177 = vperm.xlu0 %8423, %v1656_v24   ;;  %v8488_v42 = vpop.eup %8487 }
  0xf2   : > { %v7419_v6 = vsel %vm7417_vm1, %v12695_v3, %v7416_v11  ;;  %v623_v29 = vrot.slane %v9243_v49, %v9067_v44  ;;  %v627_v63 = vrot.slane %v9243_v49, %v9070_v45  ;;  %vm7459_vm4 = vcmp.eq.f32.partialorder %v9064_v22, 0.0 }
  0xf3   : > { %vm7451_vm14 = vweird.f32 %v9136_v7  ;;  %v476_v18 = vmul.f32 0.00390625, %v421_v12  ;;  %v631_v37 = vrot.slane %v9243_v49, %v9073_v46  ;;  %v635_v36 = vrot.slane %v9243_v49, %v9080_v52  ;;  %v8490_v24 = vpop.eup %8489 }
  0xf4   : > { %v639_v47 = vrot.slane %v9243_v49, %v9083_v53  ;;  %v7420_v11 = vsel %vm7406_vm3, nan, %v7419_v6  ;;  %v12696_v14 = vand.u32 2147483648, %v9064_v22  ;;  %vm7487_vm6 = vweird.f32 %v9165_v25 }
  0xf5   : > { %v9397_v41 = vand.u32 2147483647, %v9360_v27  ;;  %v9399_v12 = vadd.f32 1e-12, %v477_v35  ;;  %vm7408_vm11 = vcmp.eq.f32.partialorder %v9077_v32, inf  ;;  %vm7507_vm12 = vcmp.eq.f32.partialorder %v9157_v4, 0.0 }
  0xf6   : > { %v7473_v55 = vsel %vm7471_vm2, %v12696_v14, %v7470_v13  ;;  %v7520_v3 = vmul.f32 0.33333334, %v8486_v56  ;;  %v643_v6 = vrot.slane %v9243_v49, %v9087_v10  ;;  %v647_v54 = vrot.slane %v9243_v49, %v9090_v43  ;;  %v8492_v14 = vpop.eup %8491 }
  0xf7   : > { %v1657_v13 = vcombine.low %v619_v40, %v623_v29  ;;  %vm7462_vm13 = vcmp.eq.f32.partialorder %v9095_v39, inf  ;;  %v12697_v60 = vand.u32 2147483648, %v9115_v28  ;;  %vm7453_vm10 = vcmp.eq.f32.partialorder %v9136_v7, 0.0  ;;  %v8494_v34 = vpop.eup %8493 }
  0xf8   : > { %v9412_v51 = vand.u32 2147483647, %v9375_v5  ;;  %v1658_v30 = vcombine.low %v627_v63, %v631_v37  ;;  %v1659_v56 = vcombine.low %v635_v36, %v639_v47  ;;  %vm7489_vm0 = vcmp.eq.f32.partialorder %v9165_v25, 0.0 }
  0xf9   : > { %v7450_v35 = vor.u32 %v8488_v42, %v12697_v60  ;;  %8497 = vpow2.f32 %v7538_v20  ;;  %v9415_v31 = vadd.f32 1e-12, %v476_v18  ;;  %v1660_v49 = vcombine.low %v643_v6, %v647_v54 }
  0xfa   : > { %v1667_v40 = vrot.slane %v1657_v13, %v9098_v48  ;;  %vm7496_vm1 = vcmp.lt.f32.partialorder %v9132_v15, 0.0  ;;  %v12698_v60 = vand.u32 2147483648, %v9132_v15  ;;  %8499 = vlog2.f32 %v9397_v41 }
  0xfb   : > { %v1674_v42 = vrot.slane %v1658_v30, %v9098_v48  ;;  %v1681_v63 = vrot.slane %v1659_v56, %v9098_v48  ;;  %vm7442_vm2 = vcmp.lt.f32.partialorder %v9115_v28, 0.0  ;;  %v12699_v20 = vand.u32 2147483648, %v9138_v0  ;;  %v430_v56 = vpop.xlane.xlu1 %429 }
  0xfc   : > { %v7504_v29 = vor.u32 %v8490_v24, %v12698_v60  ;;  %8501 = vpow2.f32 %v7520_v3  ;;  %v9428_v54 = vand.u32 2147483647, %v9399_v12  ;;  %v1688_v37 = vrot.slane %v1660_v49, %v9098_v48  ;;  %v8496_v24 = vpop.eup %8495 }
  0xfd   : > { %v7486_v18 = vor.u32 %v8492_v14, %v12699_v20  ;;  %v9434_v36 = vsel %vm7372_vm9, inf, %v9350_v9  ;;  %vm7478_vm3 = vcmp.lt.f32.partialorder %v9138_v0, 0.0  ;;  %v7574_v30 = vmul.f32 0.33333334, %v8494_v34 }
  0xfe   : > { %12700 = vst [vmem:[#allocation9_spill] sm:$0xff] %v9434_v36  ;;  %8503 = vlog2.f32 %v9412_v51  ;;  %v1689_v47 = vcombine.low %v1667_v40, %v1674_v42  ;;  %v9441_v3 = vsel %vm7426_vm7, inf, %v9357_v26  ;;  %v7421_v6 = vsel %vm7405_vm8, 0.0, %v7420_v11 }
  0xff   : > { %v7474_v17 = vsel %vm7460_vm5, nan, %v7473_v55  ;;  %v1690_v9 = vcombine.low %v1681_v63, %v1688_v37  ;;  %v7452_v34 = vsel %vm7451_vm14, %v9115_v28, %v7450_v35  ;;  %v7537_v13 = vand.u32 2147483648, %v9210_v59 }
 0x100   : > { %v9452_v14 = vand.u32 2147483647, %v9415_v31  ;;  %v1697_v21 = vrot.slane %v1689_v47, %v9098_v48  ;;  %vm7495_vm7 = vcmp.eq.f32.partialorder %v9132_v15, 0.0  ;;  %v7506_v33 = vsel %vm7505_vm15, %v9132_v15, %v7504_v29 }
 0x101   : > { %v7488_v26 = vsel %vm7487_vm6, %v9138_v0, %v7486_v18  ;;  %8505 = vlog2.f32 %v9428_v54  ;;  %v1704_v11 = vrot.slane %v1690_v9, %v9098_v48  ;;  %v9466_v55 = vsel %vm7408_vm11, inf, %v7421_v6 }
 0x102   : > { %12701 = vst [vmem:[#allocation10_spill] sm:$0xff] %v9466_v55  ;;  %v7475_v35 = vsel %vm7459_vm4, 0.0, %v7474_v17  ;;  %vm7441_vm5 = vcmp.eq.f32.partialorder %v9115_v28, 0.0  ;;  %vm7541_vm9 = vweird.f32 %v9250_v16  ;;  %8507 = vpow2.f32 %v7574_v30 }
 0x103   : > { %v12702_v49 = vand.u32 2147483648, %v9115_v28  ;;  %vm7477_vm8 = vcmp.eq.f32.partialorder %v9138_v0, 0.0  ;;  %v7556_v60 = vmul.f32 0.33333334, %v8496_v24  ;;  %v479_v29 = vmul.f32 0.00390625, %v430_v56  ;;  %v8498_v37 = vpop.eup %8497 }
 0x104   : > { %v1705_v32 = vcombine.low %v1697_v21, %v1704_v11  ;;  %v12703_v42 = vand.u32 2147483648, %v9132_v15  ;;  %v12704_v63 = vmov %v12699_v20  ;;  %v7519_v18 = vand.u32 2147483648, %v9235_v61  ;;  %v8500_v17 = vpop.eup %8499 }
 0x105   : > { %v7455_v40 = vsel %vm7453_vm10, %v12702_v49, %v7452_v34  ;;  %v7491_v20 = vsel %vm7489_vm0, %v12704_v63, %v7488_v26  ;;  %8509 = vlog2.f32 %v9452_v14  ;;  %v9489_v30 = vsel %vm7462_vm13, inf, %v7475_v35  ;;  %v427_v35 = vpop.xlane.xlu0 %426 }
 0x106   : > { %v7509_v22 = vsel %vm7507_vm12, %v12703_v42, %v7506_v33  ;;  %12705 = vst [vmem:[#allocation11_spill] sm:$0xff] %v9489_v30  ;;  %vm7498_vm15 = vcmp.eq.f32.partialorder %v9157_v4, inf  ;;  %vm7523_vm4 = vweird.f32 %v9277_v1  ;;  %3180 = vperm.xlu1 %8424, %v1705_v32   ;;  %v651_v6 = vrot.slane %v9195_v19, %v9061_v58  ;;  %v8502_v21 = vpop.eup %8501 }
 0x107   : > { %vm7444_vm14 = vcmp.eq.f32.partialorder %v9136_v7, inf  ;;  %v7456_v39 = vsel %vm7442_vm2, nan, %v7455_v40  ;;  %vm7543_vm6 = vcmp.eq.f32.partialorder %v9250_v16, 0.0  ;;  %v655_v9 = vrot.slane %v9195_v19, %v9067_v44 }
 0x108   : > { %v659_v34 = vrot.slane %v9195_v19, %v9070_v45  ;;  %v663_v56 = vrot.slane %v9195_v19, %v9073_v46  ;;  %v7510_v33 = vsel %vm7496_vm1, nan, %v7509_v22  ;;  %vm7480_vm11 = vcmp.eq.f32.partialorder %v9165_v25, inf  ;;  %v8504_v49 = vpop.eup %8503 }
 0x109   : > { %v7492_v26 = vsel %vm7478_vm3, nan, %v7491_v20  ;;  %8511 = vpow2.f32 %v7556_v60  ;;  %v9512_v11 = vadd.f32 1e-12, %v479_v29  ;;  %vm7525_vm12 = vcmp.eq.f32.partialorder %v9277_v1, 0.0 }
 0x10a   : > { %vm7577_vm13 = vweird.f32 %v9308_v38  ;;  %v667_v40 = vrot.slane %v9195_v19, %v9080_v52  ;;  %v671_v32 = vrot.slane %v9195_v19, %v9083_v53  ;;  %v675_v42 = vrot.slane %v9195_v19, %v9087_v10 }
 0x10b   : > { %v679_v60 = vrot.slane %v9195_v19, %v9090_v43  ;;  %v7540_v29 = vor.u32 %v8498_v37, %v7537_v13  ;;  %v7610_v22 = vmul.f32 0.33333334, %v8500_v17  ;;  %v1706_v63 = vcombine.low %v651_v6, %v655_v9  ;;  %v8506_v2 = vpop.eup %8505 }
 0x10c   : > { %v1707_v20 = vcombine.low %v659_v34, %v663_v56  ;;  %vm7532_vm10 = vcmp.lt.f32.partialorder %v9210_v59, 0.0  ;;  %v7522_v24 = vor.u32 %v8502_v21, %v7519_v18  ;;  %v478_v47 = vmul.f32 0.00390625, %v427_v35  ;;  %v8508_v17 = vpop.eup %8507 }
 0x10d   : > { %v1708_v55 = vcombine.low %v667_v40, %v671_v32  ;;  %v1709_v36 = vcombine.low %v675_v42, %v679_v60  ;;  %v7457_v30 = vsel %vm7441_vm5, 0.0, %v7456_v39  ;;  %vm7579_vm0 = vcmp.eq.f32.partialorder %v9308_v38, 0.0  ;;  %v436_v32 = vpop.xlane.xlu1 %435 }
 0x10e   : > { %v7592_v19 = vmul.f32 0.33333334, %v8504_v49  ;;  %v1716_v37 = vrot.slane %v1706_v63, %v9098_v48  ;;  %v1723_v6 = vrot.slane %v1707_v20, %v9098_v48  ;;  %v7511_v9 = vsel %vm7495_vm7, 0.0, %v7510_v33 }
 0x10f   : > { %v7493_v34 = vsel %vm7477_vm8, 0.0, %v7492_v26  ;;  %vm7514_vm1 = vcmp.lt.f32.partialorder %v9235_v61, 0.0  ;;  %v1730_v56 = vrot.slane %v1708_v55, %v9098_v48  ;;  %v1737_v28 = vrot.slane %v1709_v36, %v9098_v48  ;;  %v8510_v15 = vpop.eup %8509 }
 0x110   : > { %v7542_v39 = vsel %vm7541_vm9, %v9210_v59, %v7540_v29  ;;  %8513 = vpow2.f32 %v7610_v22  ;;  %v9545_v21 = vand.u32 2147483647, %v9512_v11  ;;  %v1738_v35 = vcombine.low %v1716_v37, %v1723_v6  ;;  %v433_v29 = vpop.xlane.xlu0 %432 }
 0x111   : > { %vm7531_vm2 = vcmp.eq.f32.partialorder %v9210_v59, 0.0  ;;  %v7524_v0 = vsel %vm7523_vm4, %v9235_v61, %v7522_v24  ;;  %v7646_v33 = vmul.f32 0.33333334, %v8506_v2  ;;  %v9551_v55 = vadd.f32 1e-12, %v478_v47 }
 0x112   : > { %v1739_v36 = vcombine.low %v1730_v56, %v1737_v28  ;;  %v9555_v26 = vsel %vm7444_vm14, inf, %v7457_v30  ;;  %vm7568_vm3 = vcmp.lt.f32.partialorder %v9283_v50, 0.0  ;;  %v12707_v49 = vand.u32 2147483648, %v9283_v50 }
 0x113   : > { %12706 = vst [vmem:[#allocation12_spill] sm:$0xff] %v9555_v26  ;;  %8515 = vpow2.f32 %v7592_v19  ;;  %v1746_v42 = vrot.slane %v1738_v35, %v9098_v48  ;;  %v9563_v24 = vsel %vm7498_vm15, inf, %v7511_v9  ;;  %v9567_v2 = vsel %vm7480_vm11, inf, %v7493_v34  ;;  %v8512_v47 = vpop.eup %8511 }
 0x114   : > { %v7576_v40 = vor.u32 %v8508_v17, %v12707_v49  ;;  %12708 = vst [vmem:[#allocation13_spill] sm:$0xff] %v9567_v2  ;;  %v7609_v7 = vand.u32 2147483648, %v9360_v27  ;;  %v1753_v30 = vrot.slane %v1739_v36, %v9098_v48  ;;  %v7545_v60 = vsel %vm7543_vm6, %v7537_v13, %v7542_v39 }
 0x115   : > { %vm7513_vm7 = vcmp.eq.f32.partialorder %v9235_v61, 0.0  ;;  %v7527_v4 = vsel %vm7525_vm12, %v7519_v18, %v7524_v0  ;;  %vm7559_vm5 = vweird.f32 %v9333_v8  ;;  %v7628_v25 = vmul.f32 0.33333334, %v8510_v15 }
 0x116   : > { %8517 = vlog2.f32 %v9545_v21  ;;  %vm7534_vm9 = vcmp.eq.f32.partialorder %v9250_v16, inf  ;;  %v9584_v22 = vand.u32 2147483647, %v9551_v55  ;;  %v481_v13 = vmul.f32 0.00390625, %v436_v32 }
 0x117   : > { %8519 = vpow2.f32 %v7646_v33  ;;  %v1754_v63 = vcombine.low %v1746_v42, %v1753_v30  ;;  %vm7567_vm8 = vcmp.eq.f32.partialorder %v9283_v50, 0.0  ;;  %v7578_v18 = vsel %vm7577_vm13, %v9283_v50, %v7576_v40 }
 0x118   : > { %v683_v20 = vrot.slane %v9205_v23, %v9061_v58  ;;  %v687_v19 = vrot.slane %v9205_v23, %v9067_v44  ;;  %v691_v37 = vrot.slane %v9205_v23, %v9070_v45  ;;  %vm7516_vm15 = vcmp.eq.f32.partialorder %v9277_v1, inf }
 0x119   : > { %vm7613_vm4 = vweird.f32 %v9397_v41  ;;  %v7591_v6 = vand.u32 2147483648, %v9375_v5  ;;  %v480_v17 = vmul.f32 0.00390625, %v433_v29  ;;  %3183 = vperm.xlu1 %8424, %v1754_v63   ;;  %v695_v9 = vrot.slane %v9205_v23, %v9073_v46 }
 0x11a   : > { %v699_v34 = vrot.slane %v9205_v23, %v9080_v52  ;;  %v7546_v56 = vsel %vm7532_vm10, nan, %v7545_v60  ;;  %v7528_v28 = vsel %vm7514_vm1, nan, %v7527_v4  ;;  %v12709_v39 = vand.u32 2147483648, %v9310_v62 }
 0x11b   : > { %vm7561_vm14 = vcmp.eq.f32.partialorder %v9333_v8, 0.0  ;;  %8521 = vpow2.f32 %v7628_v25  ;;  %v12710_v15 = vmov %v12707_v49  ;;  %v703_v33 = vrot.slane %v9205_v23, %v9083_v53  ;;  %v8514_v49 = vpop.eup %8513 }
 0x11c   : > { %v7558_v35 = vor.u32 %v8512_v47, %v12709_v39  ;;  %v7581_v0 = vsel %vm7579_vm0, %v12710_v15, %v7578_v18  ;;  %8523 = vlog2.f32 %v9584_v22  ;;  %v707_v36 = vrot.slane %v9205_v23, %v9087_v10 }
 0x11d   : > { %vm7570_vm6 = vcmp.eq.f32.partialorder %v9308_v38, inf  ;;  %vm7615_vm11 = vcmp.eq.f32.partialorder %v9397_v41, 0.0  ;;  %vm7595_vm12 = vweird.f32 %v9412_v51  ;;  %v9622_v40 = vadd.f32 1e-12, %v481_v13  ;;  %v8516_v25 = vpop.eup %8515 }
 0x11e   : > { %v711_v32 = vrot.slane %v9205_v23, %v9090_v43  ;;  %v1755_v42 = vcombine.low %v683_v20, %v687_v19  ;;  %v1756_v30 = vcombine.low %v691_v37, %v695_v9  ;;  %v7645_v47 = vand.u32 2147483648, %v9399_v12 }
 0x11f   : > { %vm7649_vm13 = vweird.f32 %v9428_v54  ;;  %v9628_v60 = vadd.f32 1e-12, %v480_v17  ;;  %v1757_v4 = vcombine.low %v699_v34, %v703_v33  ;;  %v7547_v29 = vsel %vm7531_vm2, 0.0, %v7546_v56 }
 0x120   : > { %vm7550_vm10 = vcmp.lt.f32.partialorder %v9310_v62, 0.0  ;;  %v1758_v13 = vcombine.low %v707_v36, %v711_v32  ;;  %v1765_v63 = vrot.slane %v1755_v42, %v9098_v48  ;;  %v1772_v23 = vrot.slane %v1756_v30, %v9098_v48  ;;  %v8518_v37 = vpop.eup %8517  ;;  %v442_v36 = vpop.xlane.xlu1 %441 }
 0x121   : > { %v7529_v18 = vsel %vm7513_vm7, 0.0, %v7528_v28  ;;  %v7582_v20 = vsel %vm7568_vm3, nan, %v7581_v0  ;;  %v7560_v19 = vsel %vm7559_vm5, %v9310_v62, %v7558_v35  ;;  %vm7597_vm0 = vcmp.eq.f32.partialorder %v9412_v51, 0.0  ;;  %v8520_v56 = vpop.eup %8519 }
 0x122   : > { %v1779_v59 = vrot.slane %v1757_v4, %v9098_v48  ;;  %v7612_v17 = vor.u32 %v8514_v49, %v7609_v7  ;;  %v9647_v9 = vand.u32 2147483647, %v9622_v40  ;;  %v1786_v61 = vrot.slane %v1758_v13, %v9098_v48 }
 0x123   : > { %v1787_v34 = vcombine.low %v1765_v63, %v1772_v23  ;;  %v7594_v28 = vor.u32 %v8516_v25, %v7591_v6  ;;  %v12658_v39 = vand.u32 2147483648, %v9415_v31  ;;  %v9655_v15 = vand.u32 2147483647, %v9628_v60 }
 0x124   : > { %v9659_v0 = vsel %vm7534_vm9, inf, %v7547_v29  ;;  %v9663_v33 = vsel %vm7516_vm15, inf, %v7529_v18  ;;  %vm7651_vm1 = vcmp.eq.f32.partialorder %v9428_v54, 0.0  ;;  %v1788_v49 = vcombine.low %v1779_v59, %v1786_v61 }
 0x125   : > { %12711 = vst [vmem:[#allocation14_spill] sm:$0xff] %v9663_v33  ;;  %v1795_v32 = vrot.slane %v1787_v34, %v9098_v48  ;;  %v7583_v42 = vsel %vm7567_vm8, 0.0, %v7582_v20  ;;  %v12712_v30 = vand.u32 2147483648, %v9310_v62  ;;  %v7682_v4 = vmul.f32 0.33333334, %v8518_v37  ;;  %v8522_v1 = vpop.eup %8521 }
 0x126   : > { %v7614_v29 = vsel %vm7613_vm4, %v9360_v27, %v7612_v17  ;;  %v7648_v13 = vor.u32 %v8520_v56, %v7645_v47  ;;  %8525 = vlog2.f32 %v9647_v9  ;;  %v1802_v50 = vrot.slane %v1788_v49, %v9098_v48  ;;  %v8524_v63 = vpop.eup %8523 }
 0x127   : > { %v7563_v16 = vsel %vm7561_vm14, %v12712_v30, %v7560_v19  ;;  %v7596_v23 = vsel %vm7595_vm12, %v9375_v5, %v7594_v28  ;;  %vm7631_vm2 = vweird.f32 %v9452_v14  ;;  %8527 = vlog2.f32 %v9655_v15  ;;  %v439_v28 = vpop.xlane.xlu0 %438 }
 0x128   : > { %v483_v18 = vmul.f32 0.00390625, %v442_v36  ;;  %v875_v20 = vrot.slane %v9441_v3, %v9061_v58  ;;  %v1803_v19 = vcombine.low %v1795_v32, %v1802_v50  ;;  %v879_v59 = vrot.slane %v9441_v3, %v9067_v44 }
 0x129   : > { %v883_v37 = vrot.slane %v9441_v3, %v9070_v45  ;;  %v887_v17 = vrot.slane %v9441_v3, %v9073_v46  ;;  %v9696_v61 = vsel %vm7570_vm6, inf, %v7583_v42  ;;  %v9700_v34 = vsel %vm7550_vm10, nan, %v7563_v16 }
 0x12a   : > { %12713 = vst [vmem:[#allocation15_spill] sm:$0xff] %v9696_v61  ;;  %v9706_v56 = vsel %vm7615_vm11, %v7609_v7, %v7614_v29  ;;  %8529 = vpow2.f32 %v7682_v4  ;;  %v9712_v36 = vsel %vm7597_vm0, %v7591_v6, %v7596_v23  ;;  %v7650_v38 = vsel %vm7649_vm13, %v9399_v12, %v7648_v13  ;;  %3186 = vperm.xlu1 %8424, %v1803_v19  }
 0x12b   : > { %v7630_v49 = vor.u32 %v8522_v1, %v12658_v39  ;;  %v7664_v32 = vmul.f32 0.33333334, %v8524_v63  ;;  %v9719_v42 = vadd.f32 1e-12, %v483_v18  ;;  %v891_v7 = vrot.slane %v9441_v3, %v9080_v52 }
 0x12c   : > { %v895_v30 = vrot.slane %v9441_v3, %v9083_v53  ;;  %v899_v6 = vrot.slane %v9441_v3, %v9087_v10  ;;  %vm7604_vm3 = vcmp.lt.f32.partialorder %v9360_v27, 0.0  ;;  %v482_v16 = vmul.f32 0.00390625, %v439_v28 }
 0x12d   : > { %v903_v4 = vrot.slane %v9441_v3, %v9090_v43  ;;  %v2049_v1 = vcombine.low %v875_v20, %v879_v59  ;;  %v2050_v29 = vcombine.low %v883_v37, %v887_v17  ;;  %vm7549_vm7 = vcmp.eq.f32.partialorder %v9310_v62, 0.0 }
 0x12e   : > { %vm7640_vm5 = vcmp.lt.f32.partialorder %v9399_v12, 0.0  ;;  %v2051_v13 = vcombine.low %v891_v7, %v895_v30  ;;  %v715_v50 = vrot.slane %v9338_v57, %v9061_v58  ;;  %v719_v63 = vrot.slane %v9338_v57, %v9067_v44 }
 0x12f   : > { %v723_v23 = vrot.slane %v9338_v57, %v9070_v45  ;;  %vm7633_vm9 = vcmp.eq.f32.partialorder %v9452_v14, 0.0  ;;  %v2052_v18 = vcombine.low %v899_v6, %v903_v4  ;;  %v2059_v3 = vrot.slane %v2049_v1, %v9098_v48  ;;  %v448_v6 = vpop.xlane.xlu1 %447 }
 0x130   : > { %v2066_v20 = vrot.slane %v2050_v29, %v9098_v48  ;;  %v727_v19 = vrot.slane %v9338_v57, %v9073_v46  ;;  %vm7586_vm8 = vcmp.lt.f32.partialorder %v9375_v5, 0.0  ;;  %v7653_v59 = vsel %vm7651_vm1, %v7645_v47, %v7650_v38  ;;  %v8526_v7 = vpop.eup %8525 }
 0x131   : > { %v2073_v37 = vrot.slane %v2051_v13, %v9098_v48  ;;  %v731_v17 = vrot.slane %v9338_v57, %v9080_v52  ;;  %v735_v28 = vrot.slane %v9338_v57, %v9083_v53  ;;  %vm7603_vm15 = vcmp.eq.f32.partialorder %v9360_v27, 0.0  ;;  %v8528_v38 = vpop.eup %8527 }
 0x132   : > { %v7632_v30 = vsel %vm7631_vm2, %v9415_v31, %v7630_v49  ;;  %v2080_v4 = vrot.slane %v2052_v18, %v9098_v48  ;;  %v2081_v1 = vcombine.low %v2059_v3, %v2066_v20  ;;  %v739_v47 = vrot.slane %v9338_v57, %v9087_v10  ;;  %v445_v3 = vpop.xlane.xlu0 %444 }
 0x133   : > { %vm7552_vm4 = vcmp.eq.f32.partialorder %v9333_v8, inf  ;;  %vm7639_vm14 = vcmp.eq.f32.partialorder %v9399_v12, 0.0  ;;  %vm7622_vm6 = vcmp.lt.f32.partialorder %v9415_v31, 0.0  ;;  %v9764_v29 = vand.u32 2147483647, %v9719_v42  ;;  %v454_v12 = vpop.xlane.xlu1 %453 }
 0x134   : > { %v743_v49 = vrot.slane %v9338_v57, %v9090_v43  ;;  %v1804_v13 = vcombine.low %v715_v50, %v719_v63  ;;  %v1805_v25 = vcombine.low %v723_v23, %v727_v19  ;;  %vm7685_vm11 = vweird.f32 %v9545_v21  ;;  %v8530_v39 = vpop.eup %8529 }
 0x135   : > { %8531 = vpow2.f32 %v7664_v32  ;;  %v9769_v18 = vadd.f32 1e-12, %v482_v16  ;;  %v2082_v20 = vcombine.low %v2073_v37, %v2080_v4  ;;  %v2089_v35 = vrot.slane %v2081_v1, %v9098_v48 }
 0x136   : > { %vm7585_vm12 = vcmp.eq.f32.partialorder %v9375_v5, 0.0  ;;  %v485_v33 = vmul.f32 0.00390625, %v448_v6  ;;  %v1806_v2 = vcombine.low %v731_v17, %v735_v28  ;;  %v1807_v26 = vcombine.low %v739_v47, %v743_v49 }
 0x137   : > { %v1814_v61 = vrot.slane %v1804_v13, %v9098_v48  ;;  %vm7606_vm13 = vcmp.eq.f32.partialorder %v9397_v41, inf  ;;  %vm7642_vm10 = vcmp.eq.f32.partialorder %v9428_v54, inf  ;;  %vm7621_vm0 = vcmp.eq.f32.partialorder %v9415_v31, 0.0 }
 0x138   : > { %v7718_v57 = vmul.f32 0.33333334, %v8526_v7  ;;  %v7700_v32 = vmul.f32 0.33333334, %v8528_v38  ;;  %v2096_v16 = vrot.slane %v2082_v20, %v9098_v48  ;;  %v1821_v50 = vrot.slane %v1805_v25, %v9098_v48  ;;  %v12717_v20 = vld [vmem:[#allocation11_spill] sm:$0xff] }
 0x139   : > { %8533 = vlog2.f32 %v9764_v29  ;;  %v484_v63 = vmul.f32 0.00390625, %v445_v3  ;;  %v1828_v23 = vrot.slane %v1806_v2, %v9098_v48  ;;  %v1835_v19 = vrot.slane %v1807_v26, %v9098_v48 }
 0x13a   : > { %v7565_v37 = vsel %vm7549_vm7, 0.0, %v9700_v34  ;;  %vm7588_vm2 = vcmp.eq.f32.partialorder %v9412_v51, inf  ;;  %v9788_v17 = vand.u32 2147483647, %v9769_v18  ;;  %v2097_v28 = vcombine.low %v2089_v35, %v2096_v16 }
 0x13b   : > { %v1836_v25 = vcombine.low %v1814_v61, %v1821_v50  ;;  %v7618_v7 = vsel %vm7604_vm3, nan, %v9706_v56  ;;  %vm7624_vm1 = vcmp.eq.f32.partialorder %v9452_v14, inf  ;;  %v12714_v2 = vand.u32 2147483648, %v9415_v31 }
 0x13c   : > { %v9798_v62 = vadd.f32 1e-12, %v485_v33  ;;  %v1837_v34 = vcombine.low %v1828_v23, %v1835_v19  ;;  %v7600_v6 = vsel %vm7586_vm8, nan, %v9712_v36  ;;  %v7654_v35 = vsel %vm7640_vm5, nan, %v7653_v59  ;;  %3204 = vperm.xlu0 %8423, %v2097_v28  }
 0x13d   : > { %v7635_v26 = vsel %vm7633_vm9, %v12714_v2, %v7632_v30  ;;  %8535 = vpow2.f32 %v7718_v57  ;;  %v1844_v61 = vrot.slane %v1836_v25, %v9098_v48  ;;  %v12715_v56 = vand.u32 2147483648, %v9512_v11 }
 0x13e   : > { %8537 = vpow2.f32 %v7700_v32  ;;  %v9808_v1 = vadd.f32 1e-12, %v484_v63  ;;  %v1851_v33 = vrot.slane %v1837_v34, %v9098_v48  ;;  %v9813_v30 = vsel %vm7552_vm4, inf, %v7565_v37 }
 0x13f   : > { %v7684_v4 = vor.u32 %v8530_v39, %v12715_v56  ;;  %12716 = vst [vmem:[#allocation16_spill] sm:$0xff] %v9813_v30  ;;  %v7636_v36 = vsel %vm7622_vm6, nan, %v7635_v26  ;;  %v7717_v59 = vand.u32 2147483648, %v9622_v40  ;;  %8539 = vlog2.f32 %v9788_v17  ;;  %v8532_v13 = vpop.eup %8531 }
 0x140   : > { %v7619_v47 = vsel %vm7603_vm15, 0.0, %v7618_v7  ;;  %v7699_v39 = vand.u32 2147483648, %v9628_v60  ;;  %v9823_v38 = vand.u32 2147483647, %v9798_v62  ;;  %v1852_v49 = vcombine.low %v1844_v61, %v1851_v33 }
 0x141   : > { %v7601_v8 = vsel %vm7585_vm12, 0.0, %v7600_v6  ;;  %v7655_v3 = vsel %vm7639_vm14, 0.0, %v7654_v35  ;;  %v939_v57 = vrot.slane %v12717_v20, %v9061_v58  ;;  %v943_v27 = vrot.slane %v12717_v20, %v9067_v44  ;;  %v451_v6 = vpop.xlane.xlu0 %450 }
 0x142   : > { %v7637_v32 = vsel %vm7621_vm0, 0.0, %v7636_v36  ;;  %v7686_v16 = vsel %vm7685_vm11, %v9512_v11, %v7684_v4  ;;  %v9839_v50 = vand.u32 2147483647, %v9808_v1  ;;  %3189 = vperm.xlu1 %8424, %v1852_v49   ;;  %v947_v5 = vrot.slane %v12717_v20, %v9070_v45 }
 0x143   : > { %v951_v63 = vrot.slane %v12717_v20, %v9073_v46  ;;  %v955_v23 = vrot.slane %v12717_v20, %v9080_v52  ;;  %v959_v31 = vrot.slane %v12717_v20, %v9083_v53  ;;  %v963_v19 = vrot.slane %v12717_v20, %v9087_v10  ;;  %v8534_v37 = vpop.eup %8533 }
 0x144   : > { %v9853_v28 = vsel %vm7606_vm13, inf, %v7619_v47  ;;  %v9857_v25 = vsel %vm7588_vm2, inf, %v7601_v8  ;;  %v9861_v7 = vsel %vm7642_vm10, inf, %v7655_v3  ;;  %8541 = vlog2.f32 %v9823_v38 }
 0x145   : > { %12718 = vst [vmem:[#allocation11_spill] sm:$0xff] %v9857_v25  ;;  %v9866_v2 = vsel %vm7624_vm1, inf, %v7637_v32  ;;  %vm7676_vm3 = vcmp.lt.f32.partialorder %v9512_v11, 0.0  ;;  %v12720_v41 = vmov %v12715_v56  ;;  %vm12721_vm7 = vcmp.eq.f32.partialorder %v9545_v21, 0.0 }
 0x146   : > { %12719 = vst [vmem:[#allocation17_spill] sm:$0xff] %v9866_v2  ;;  %v7689_v26 = vsel %vm12721_vm7, %v12720_v41, %v7686_v16  ;;  %v967_v51 = vrot.slane %v12717_v20, %v9090_v43  ;;  %v2147_v34 = vcombine.low %v939_v57, %v943_v27  ;;  %vm7721_vm5 = vweird.f32 %v9647_v9  ;;  %v12723_v20 = vld [vmem:[#allocation7_spill] sm:$0xff] }
 0x147   : > { %8543 = vlog2.f32 %v9839_v50  ;;  %v487_v54 = vmul.f32 0.00390625, %v454_v12  ;;  %v2148_v14 = vcombine.low %v947_v5, %v951_v63  ;;  %v2149_v35 = vcombine.low %v955_v23, %v959_v31  ;;  %v8536_v61 = vpop.eup %8535 }
 0x148   : > { %v12722_v56 = vand.u32 2147483648, %v9551_v55  ;;  %vm7667_vm9 = vweird.f32 %v9584_v22  ;;  %v7754_v33 = vmul.f32 0.33333334, %v8534_v37  ;;  %v2150_v36 = vcombine.low %v963_v19, %v967_v51  ;;  %v8538_v49 = vpop.eup %8537 }
 0x149   : > { %v2157_v47 = vrot.slane %v2147_v34, %v9098_v48  ;;  %v2164_v8 = vrot.slane %v2148_v14, %v9098_v48  ;;  %v2171_v3 = vrot.slane %v2149_v35, %v9098_v48  ;;  %v747_v57 = vrot.slane %v12723_v20, %v9061_v58  ;;  %v8540_v32 = vpop.eup %8539 }
 0x14a   : > { %v7666_v4 = vor.u32 %v8532_v13, %v12722_v56  ;;  %v751_v27 = vrot.slane %v12723_v20, %v9067_v44  ;;  %vm7703_vm8 = vweird.f32 %v9655_v15  ;;  %v486_v13 = vmul.f32 0.00390625, %v451_v6 }
 0x14b   : > { %v2178_v16 = vrot.slane %v2150_v36, %v9098_v48  ;;  %v755_v5 = vrot.slane %v12723_v20, %v9070_v45  ;;  %v759_v12 = vrot.slane %v12723_v20, %v9073_v46  ;;  %v9893_v63 = vadd.f32 1e-12, %v487_v54 }
 0x14c   : > { %v2179_v23 = vcombine.low %v2157_v47, %v2164_v8  ;;  %v763_v31 = vrot.slane %v12723_v20, %v9080_v52  ;;  %v767_v19 = vrot.slane %v12723_v20, %v9083_v53  ;;  %v7720_v37 = vor.u32 %v8536_v61, %v7717_v59 }
 0x14d   : > { %v2180_v41 = vcombine.low %v2171_v3, %v2178_v16  ;;  %v771_v51 = vrot.slane %v12723_v20, %v9087_v10  ;;  %v775_v34 = vrot.slane %v12723_v20, %v9090_v43  ;;  %vm7669_vm15 = vcmp.eq.f32.partialorder %v9584_v22, 0.0  ;;  %v3786_v20 = vpop.xlane.xlu0 %3785 }
 0x14e   : > { %vm7723_vm4 = vcmp.eq.f32.partialorder %v9647_v9, 0.0  ;;  %v7702_v54 = vor.u32 %v8538_v49, %v7699_v39  ;;  %v7736_v6 = vmul.f32 0.33333334, %v8540_v32  ;;  %v2187_v14 = vrot.slane %v2179_v23, %v9098_v48  ;;  %v8542_v47 = vpop.eup %8541  ;;  %v3783_v49 = vpop.xlane.xlu1 %3782 }
 0x14f   : > { %v1853_v35 = vcombine.low %v747_v57, %v751_v27  ;;  %8545 = vpow2.f32 %v7754_v33  ;;  %v2194_v61 = vrot.slane %v2180_v41, %v9098_v48  ;;  %v1854_v56 = vcombine.low %v755_v5, %v759_v12 }
 0x150   : > { %v1855_v36 = vcombine.low %v763_v31, %v767_v19  ;;  %vm7675_vm14 = vcmp.eq.f32.partialorder %v9512_v11, 0.0  ;;  %vm7705_vm6 = vcmp.eq.f32.partialorder %v9655_v15, 0.0  ;;  %v9914_v8 = vand.u32 2147483647, %v9893_v63 }
 0x151   : > { %v9916_v3 = vadd.f32 1e-12, %v486_v13  ;;  %v1856_v32 = vcombine.low %v771_v51, %v775_v34  ;;  %v1863_v57 = vrot.slane %v1853_v35, %v9098_v48  ;;  %vm7712_vm11 = vcmp.lt.f32.partialorder %v9622_v40, 0.0  ;;  %v8544_v12 = vpop.eup %8543 }
 0x152   : > { %v3877_v33 = vmul.f32 0.00390625, %v3783_v49  ;;  %v2195_v27 = vcombine.low %v2187_v14, %v2194_v61  ;;  %v1870_v16 = vrot.slane %v1854_v56, %v9098_v48  ;;  %v1877_v5 = vrot.slane %v1855_v36, %v9098_v48 }
 0x153   : > { %v7690_v23 = vsel %vm7676_vm3, nan, %v7689_v26  ;;  %vm7658_vm12 = vcmp.lt.f32.partialorder %v9551_v55, 0.0  ;;  %v7668_v13 = vsel %vm7667_vm9, %v9551_v55, %v7666_v4  ;;  %8547 = vpow2.f32 %v7736_v6 }
 0x154   : > { %v1884_v31 = vrot.slane %v1856_v32, %v9098_v48  ;;  %v7722_v19 = vsel %vm7721_vm5, %v9622_v40, %v7720_v37  ;;  %v7790_v41 = vmul.f32 0.33333334, %v8542_v47  ;;  %v3878_v51 = vmul.f32 0.00390625, %v3786_v20  ;;  %3210 = vperm.xlu0 %8423, %v2195_v27  }
 0x155   : > { %v1885_v34 = vcombine.low %v1863_v57, %v1870_v16  ;;  %vm7711_vm13 = vcmp.eq.f32.partialorder %v9622_v40, 0.0  ;;  %vm7694_vm10 = vcmp.lt.f32.partialorder %v9628_v60, 0.0  ;;  %v7704_v26 = vsel %vm7703_vm8, %v9628_v60, %v7702_v54 }
 0x156   : > { %8549 = vlog2.f32 %v9914_v8  ;;  %v9939_v4 = vand.u32 2147483647, %v9916_v3  ;;  %v1886_v6 = vcombine.low %v1877_v5, %v1884_v31  ;;  %vm7678_vm0 = vcmp.eq.f32.partialorder %v9545_v21, inf }
 0x157   : > { %vm7657_vm1 = vcmp.eq.f32.partialorder %v9551_v55, 0.0  ;;  %v7772_v37 = vmul.f32 0.33333334, %v8544_v12  ;;  %v9943_v14 = vadd.f32 1e-12, %v3877_v33  ;;  %v1893_v35 = vrot.slane %v1885_v34, %v9098_v48 }
 0x158   : > { %v1003_v61 = vrot.slane %v9563_v24, %v9061_v58  ;;  %v1900_v54 = vrot.slane %v1886_v6, %v9098_v48  ;;  %v1007_v56 = vrot.slane %v9563_v24, %v9067_v44  ;;  %v1011_v36 = vrot.slane %v9563_v24, %v9070_v45 }
 0x159   : > { %v1015_v47 = vrot.slane %v9563_v24, %v9073_v46  ;;  %v12724_v49 = vand.u32 2147483648, %v9551_v55  ;;  %vm7714_vm2 = vcmp.eq.f32.partialorder %v9647_v9, inf  ;;  %vm7693_vm3 = vcmp.eq.f32.partialorder %v9628_v60, 0.0  ;;  %v8546_v5 = vpop.eup %8545 }
 0x15a   : > { %v7753_v32 = vand.u32 2147483648, %v9719_v42  ;;  %8551 = vpow2.f32 %v7790_v41  ;;  %v9962_v57 = vadd.f32 1e-12, %v3878_v51  ;;  %vm7660_vm7 = vcmp.eq.f32.partialorder %v9584_v22, inf }
 0x15b   : > { %v7671_v20 = vsel %vm7669_vm15, %v12724_v49, %v7668_v13  ;;  %8553 = vlog2.f32 %v9939_v4  ;;  %v1901_v33 = vcombine.low %v1893_v35, %v1900_v54  ;;  %v1019_v27 = vrot.slane %v9563_v24, %v9080_v52 }
 0x15c   : > { %v1023_v16 = vrot.slane %v9563_v24, %v9083_v53  ;;  %v7725_v12 = vsel %vm7723_vm4, %v7717_v59, %v7722_v19  ;;  %v7707_v13 = vsel %vm7705_vm6, %v7699_v39, %v7704_v26  ;;  %8555 = vpow2.f32 %v7772_v37 }
 0x15d   : > { %v9979_v31 = vand.u32 2147483647, %v9943_v14  ;;  %vm7696_vm5 = vcmp.eq.f32.partialorder %v9655_v15, inf  ;;  %3192 = vperm.xlu1 %8424, %v1901_v33   ;;  %v1027_v41 = vrot.slane %v9563_v24, %v9087_v10  ;;  %v1031_v51 = vrot.slane %v9563_v24, %v9090_v43  ;;  %v8548_v37 = vpop.eup %8547 }
 0x15e   : > { %v2245_v34 = vcombine.low %v1003_v61, %v1007_v56  ;;  %v2246_v59 = vcombine.low %v1011_v36, %v1015_v47  ;;  %v7691_v19 = vsel %vm7675_vm14, 0.0, %v7690_v23  ;;  %v7672_v39 = vsel %vm7658_vm12, nan, %v7671_v20 }
 0x15f   : > { %v9991_v26 = vand.u32 2147483647, %v9962_v57  ;;  %v2247_v6 = vcombine.low %v1019_v27, %v1023_v16  ;;  %v7726_v35 = vsel %vm7712_vm11, nan, %v7725_v12  ;;  %v2248_v54 = vcombine.low %v1027_v41, %v1031_v51 }
 0x160   : > { %v2255_v49 = vrot.slane %v2245_v34, %v9098_v48  ;;  %v2262_v24 = vrot.slane %v2246_v59, %v9098_v48  ;;  %v7708_v11 = vsel %vm7694_vm10, nan, %v7707_v13  ;;  %v7735_v23 = vand.u32 2147483648, %v9769_v18  ;;  %v8550_v56 = vpop.eup %8549  ;;  %v3792_v59 = vpop.xlane.xlu1 %3791 }
 0x161   : > { %8557 = vlog2.f32 %v9979_v31  ;;  %v2269_v61 = vrot.slane %v2247_v6, %v9098_v48  ;;  %v7673_v36 = vsel %vm7657_vm1, 0.0, %v7672_v39  ;;  %v7756_v47 = vor.u32 %v8546_v5, %v7753_v32 }
 0x162   : > { %v2276_v20 = vrot.slane %v2248_v54, %v9098_v48  ;;  %v2277_v33 = vcombine.low %v2255_v49, %v2262_v24  ;;  %v7727_v27 = vsel %vm7711_vm13, 0.0, %v7726_v35  ;;  %vm7757_vm9 = vweird.f32 %v9764_v29 }
 0x163   : > { %v7738_v16 = vor.u32 %v8548_v37, %v7735_v23  ;;  %8559 = vlog2.f32 %v9991_v26  ;;  %v10013_v12 = vsel %vm7678_vm0, inf, %v7691_v19  ;;  %v7709_v55 = vsel %vm7693_vm3, 0.0, %v7708_v11  ;;  %v3789_v19 = vpop.xlane.xlu0 %3788 }
 0x164   : > { %vm7748_vm8 = vcmp.lt.f32.partialorder %v9719_v42, 0.0  ;;  %v2278_v5 = vcombine.low %v2269_v61, %v2276_v20  ;;  %v2285_v13 = vrot.slane %v2277_v33, %v9098_v48  ;;  %v8552_v41 = vpop.eup %8551  ;;  %v10021_v40 = vsel %vm7660_vm7, inf, %v7673_v36 }
 0x165   : > { %12725 = vst [vmem:[#allocation7_spill] sm:$0xff] %v10021_v40  ;;  %vm7759_vm15 = vcmp.eq.f32.partialorder %v9764_v29, 0.0  ;;  %vm7739_vm4 = vweird.f32 %v9788_v17  ;;  %vm7741_vm14 = vcmp.eq.f32.partialorder %v9788_v17, 0.0  ;;  %v8554_v21 = vpop.eup %8553  ;;  %v10028_v60 = vsel %vm7714_vm2, inf, %v7727_v27 }
 0x166   : > { %v7758_v51 = vsel %vm7757_vm9, %v9719_v42, %v7756_v47  ;;  %v7789_v34 = vand.u32 2147483648, %v9798_v62  ;;  %v2292_v22 = vrot.slane %v2278_v5, %v9098_v48  ;;  %v8556_v39 = vpop.eup %8555  ;;  %v10035_v6 = vsel %vm7696_vm5, inf, %v7709_v55  ;;  %v3798_v55 = vpop.xlane.xlu1 %3797 }
 0x167   : > { %12726 = vst [vmem:[#allocation18_spill] sm:$0xff] %v10035_v6  ;;  %vm7730_vm6 = vcmp.lt.f32.partialorder %v9769_v18, 0.0  ;;  %v7740_v37 = vsel %vm7739_vm4, %v9769_v18, %v7738_v16  ;;  %v7826_v9 = vmul.f32 0.33333334, %v8550_v56  ;;  %v3880_v35 = vmul.f32 0.00390625, %v3792_v59 }
 0x168   : > { %vm7747_vm11 = vcmp.eq.f32.partialorder %v9719_v42, 0.0  ;;  %vm7793_vm12 = vweird.f32 %v9823_v38  ;;  %v7771_v54 = vand.u32 2147483648, %v9808_v1  ;;  %v2293_v49 = vcombine.low %v2285_v13, %v2292_v22 }
 0x169   : > { %v1067_v24 = vrot.slane %v9659_v0, %v9061_v58  ;;  %v7761_v15 = vsel %vm7759_vm15, %v7753_v32, %v7758_v51  ;;  %vm7775_vm13 = vweird.f32 %v9839_v50  ;;  %v7808_v11 = vmul.f32 0.33333334, %v8554_v21 }
 0x16a   : > { %v3879_v61 = vmul.f32 0.00390625, %v3789_v19  ;;  %v1071_v56 = vrot.slane %v9659_v0, %v9067_v44  ;;  %v7743_v36 = vsel %vm7741_vm14, %v7735_v23, %v7740_v37  ;;  %vm7795_vm10 = vcmp.eq.f32.partialorder %v9823_v38, 0.0  ;;  %3216 = vperm.xlu0 %8423, %v2293_v49  }
 0x16b   : > { %v1075_v47 = vrot.slane %v9659_v0, %v9070_v45  ;;  %v1079_v20 = vrot.slane %v9659_v0, %v9073_v46  ;;  %v1083_v32 = vrot.slane %v9659_v0, %v9080_v52  ;;  %v8558_v33 = vpop.eup %8557  ;;  %vm7729_vm0 = vcmp.eq.f32.partialorder %v9769_v18, 0.0 }
 0x16c   : > { %v7792_v27 = vor.u32 %v8552_v41, %v7789_v34  ;;  %v7774_v23 = vor.u32 %v8556_v39, %v7771_v54  ;;  %8561 = vpow2.f32 %v7826_v9  ;;  %v10065_v16 = vadd.f32 1e-12, %v3880_v35 }
 0x16d   : > { %v1087_v5 = vrot.slane %v9659_v0, %v9083_v53  ;;  %v1091_v13 = vrot.slane %v9659_v0, %v9087_v10  ;;  %v1095_v21 = vrot.slane %v9659_v0, %v9090_v43  ;;  %v2343_v51 = vcombine.low %v1067_v24, %v1071_v56  ;;  %v8560_v59 = vpop.eup %8559  ;;  %v3795_v24 = vpop.xlane.xlu0 %3794 }
 0x16e   : > { %vm7750_vm1 = vcmp.eq.f32.partialorder %v9764_v29, inf  ;;  %8563 = vpow2.f32 %v7808_v11  ;;  %v10074_v41 = vadd.f32 1e-12, %v3879_v61  ;;  %v3882_v19 = vmul.f32 0.00390625, %v3798_v55 }
 0x16f   : > { %v2344_v22 = vcombine.low %v1075_v47, %v1079_v20  ;;  %vm7784_vm2 = vcmp.lt.f32.partialorder %v9798_v62, 0.0  ;;  %v7844_v39 = vmul.f32 0.33333334, %v8558_v33  ;;  %v2345_v37 = vcombine.low %v1083_v32, %v1087_v5 }
 0x170   : > { %v2346_v9 = vcombine.low %v1091_v13, %v1095_v21  ;;  %v2353_v35 = vrot.slane %v2343_v51, %v9098_v48  ;;  %v7762_v49 = vsel %vm7748_vm8, nan, %v7761_v15  ;;  %vm7777_vm3 = vcmp.eq.f32.partialorder %v9839_v50, 0.0 }
 0x171   : > { %v10082_v0 = vand.u32 2147483647, %v10065_v16  ;;  %v2360_v11 = vrot.slane %v2344_v22, %v9098_v48  ;;  %vm7732_vm7 = vcmp.eq.f32.partialorder %v9788_v17, inf  ;;  %v7744_v61 = vsel %vm7730_vm6, nan, %v7743_v36 }
 0x172   : > { %vm7766_vm5 = vcmp.lt.f32.partialorder %v9808_v1, 0.0  ;;  %v7862_v56 = vmul.f32 0.33333334, %v8560_v59  ;;  %v2367_v47 = vrot.slane %v2345_v37, %v9098_v48  ;;  %v2374_v15 = vrot.slane %v2346_v9, %v9098_v48  ;;  %v12727_v9 = vld [vmem:[#allocation15_spill] sm:$0xff] }
 0x173   : > { %v7794_v20 = vsel %vm7793_vm12, %v9798_v62, %v7792_v27  ;;  %v10095_v32 = vand.u32 2147483647, %v10074_v41  ;;  %v10097_v33 = vadd.f32 1e-12, %v3882_v19  ;;  %v2375_v55 = vcombine.low %v2353_v35, %v2360_v11 }
 0x174   : > { %v7776_v36 = vsel %vm7775_vm13, %v9808_v1, %v7774_v23  ;;  %8565 = vpow2.f32 %v7844_v39  ;;  %v3881_v5 = vmul.f32 0.00390625, %v3795_v24  ;;  %v2376_v13 = vcombine.low %v2367_v47, %v2374_v15 }
 0x175   : > { %v7763_v21 = vsel %vm7747_vm11, 0.0, %v7762_v49  ;;  %vm7783_vm9 = vcmp.eq.f32.partialorder %v9798_v62, 0.0  ;;  %v12663_v27 = vand.u32 2147483648, %v9893_v63  ;;  %8567 = vlog2.f32 %v10082_v0 }
 0x176   : > { %v2383_v51 = vrot.slane %v2375_v55, %v9098_v48  ;;  %v7745_v59 = vsel %vm7729_vm0, 0.0, %v7744_v61  ;;  %vm7829_vm8 = vweird.f32 %v9914_v8  ;;  %8569 = vpow2.f32 %v7862_v56  ;;  %v8562_v19 = vpop.eup %8561 }
 0x177   : > { %v2390_v23 = vrot.slane %v2376_v13, %v9098_v48  ;;  %v7797_v42 = vsel %vm7795_vm10, %v7789_v34, %v7794_v20  ;;  %v7779_v22 = vsel %vm7777_vm3, %v7771_v54, %v7776_v36  ;;  %8571 = vlog2.f32 %v10095_v32 }
 0x178   : > { %v10122_v18 = vand.u32 2147483647, %v10097_v33  ;;  %vm7786_vm15 = vcmp.eq.f32.partialorder %v9823_v38, inf  ;;  %vm7765_vm4 = vcmp.eq.f32.partialorder %v9808_v1, 0.0  ;;  %v10126_v39 = vadd.f32 1e-12, %v3881_v5  ;;  %v8564_v49 = vpop.eup %8563 }
 0x179   : > { %v2391_v37 = vcombine.low %v2383_v51, %v2390_v23  ;;  %v1131_v34 = vrot.slane %v12727_v9, %v9061_v58  ;;  %v1135_v35 = vrot.slane %v12727_v9, %v9067_v44  ;;  %vm7820_vm14 = vcmp.lt.f32.partialorder %v9893_v63, 0.0  ;;  %v3804_v51 = vpop.xlane.xlu1 %3803 }
 0x17a   : > { %v1139_v54 = vrot.slane %v12727_v9, %v9070_v45  ;;  %v1143_v24 = vrot.slane %v12727_v9, %v9073_v46  ;;  %v1147_v11 = vrot.slane %v12727_v9, %v9080_v52  ;;  %v1151_v61 = vrot.slane %v12727_v9, %v9083_v53 }
 0x17b   : > { %v10143_v56 = vsel %vm7750_vm1, inf, %v7763_v21  ;;  %v7828_v47 = vor.u32 %v8562_v19, %v12663_v27  ;;  %vm7831_vm6 = vcmp.eq.f32.partialorder %v9914_v8, 0.0  ;;  %v7807_v15 = vand.u32 2147483648, %v9916_v3  ;;  %3222 = vperm.xlu0 %8423, %v2391_v37  }
 0x17c   : > { %v10151_v20 = vsel %vm7732_vm7, inf, %v7745_v59  ;;  %v7798_v55 = vsel %vm7784_vm2, nan, %v7797_v42  ;;  %vm7768_vm11 = vcmp.eq.f32.partialorder %v9839_v50, inf  ;;  %v7780_v29 = vsel %vm7766_vm5, nan, %v7779_v22 }
 0x17d   : > { %12728 = vst [vmem:[#allocation15_spill] sm:$0xff] %v10151_v20  ;;  %vm7811_vm12 = vweird.f32 %v9939_v4  ;;  %v10160_v36 = vand.u32 2147483647, %v10126_v39  ;;  %v1155_v5 = vrot.slane %v12727_v9, %v9087_v10  ;;  %v1159_v17 = vrot.slane %v12727_v9, %v9090_v43 }
 0x17e   : > { %v2441_v13 = vcombine.low %v1131_v34, %v1135_v35  ;;  %vm7819_vm13 = vcmp.eq.f32.partialorder %v9893_v63, 0.0  ;;  %v7810_v21 = vor.u32 %v8564_v49, %v7807_v15  ;;  %8573 = vlog2.f32 %v10122_v18  ;;  %v8566_v19 = vpop.eup %8565 }
 0x17f   : > { %v2442_v59 = vcombine.low %v1139_v54, %v1143_v24  ;;  %v2443_v23 = vcombine.low %v1147_v11, %v1151_v61  ;;  %v7830_v42 = vsel %vm7829_vm8, %v9893_v63, %v7828_v47  ;;  %v3884_v22 = vmul.f32 0.00390625, %v3804_v51  ;;  %v8568_v20 = vpop.eup %8567  ;;  %v3801_v51 = vpop.xlane.xlu0 %3800 }
 0x180   : > { %v2444_v37 = vcombine.low %v1155_v5, %v1159_v17  ;;  %v2451_v27 = vrot.slane %v2441_v13, %v9098_v48  ;;  %vm7802_vm10 = vcmp.lt.f32.partialorder %v9916_v3, 0.0  ;;  %vm7813_vm0 = vcmp.eq.f32.partialorder %v9939_v4, 0.0  ;;  %v8570_v49 = vpop.eup %8569 }
 0x181   : > { %v7843_v9 = vand.u32 2147483648, %v9943_v14  ;;  %v2458_v34 = vrot.slane %v2442_v59, %v9098_v48  ;;  %v2465_v35 = vrot.slane %v2443_v23, %v9098_v48  ;;  %v7799_v54 = vsel %vm7783_vm9, 0.0, %v7798_v55  ;;  %v8572_v11 = vpop.eup %8571 }
 0x182   : > { %vm7847_vm1 = vweird.f32 %v9979_v31  ;;  %8575 = vlog2.f32 %v10160_v36  ;;  %v2472_v24 = vrot.slane %v2444_v37, %v9098_v48  ;;  %v7781_v61 = vsel %vm7765_vm4, 0.0, %v7780_v29 }
 0x183   : > { %v12729_v47 = vand.u32 2147483648, %v9893_v63  ;;  %v7812_v62 = vsel %vm7811_vm12, %v9916_v3, %v7810_v21  ;;  %v2473_v55 = vcombine.low %v2451_v27, %v2458_v34  ;;  %vm7849_vm2 = vcmp.eq.f32.partialorder %v9979_v31, 0.0  ;;  %v3810_v34 = vpop.xlane.xlu1 %3809 }
 0x184   : > { %v7898_v17 = vmul.f32 0.33333334, %v8568_v20  ;;  %v10192_v13 = vadd.f32 1e-12, %v3884_v22  ;;  %v2474_v59 = vcombine.low %v2465_v35, %v2472_v24  ;;  %v10196_v1 = vsel %vm7786_vm15, inf, %v7799_v54 }
 0x185   : > { %v7833_v5 = vsel %vm7831_vm6, %v12729_v47, %v7830_v42  ;;  %vm7801_vm3 = vcmp.eq.f32.partialorder %v9916_v3, 0.0  ;;  %v7861_v29 = vand.u32 2147483648, %v9962_v57  ;;  %vm7865_vm7 = vweird.f32 %v9991_v26 }
 0x186   : > { %v2481_v21 = vrot.slane %v2473_v55, %v9098_v48  ;;  %v10204_v27 = vsel %vm7768_vm11, inf, %v7781_v61  ;;  %vm7822_vm5 = vcmp.eq.f32.partialorder %v9914_v8, inf  ;;  %v7834_v20 = vsel %vm7820_vm14, nan, %v7833_v5 }
 0x187   : > { %12730 = vst [vmem:[#allocation19_spill] sm:$0xff] %v10204_v27  ;;  %v7815_v38 = vsel %vm7813_vm0, %v7807_v15, %v7812_v62  ;;  %v2488_v23 = vrot.slane %v2474_v59, %v9098_v48  ;;  %vm7838_vm9 = vcmp.lt.f32.partialorder %v9943_v14, 0.0  ;;  %v7846_v42 = vor.u32 %v8566_v19, %v7843_v9  ;;  %v3807_v59 = vpop.xlane.xlu0 %3806 }
 0x188   : > { %v7864_v22 = vor.u32 %v8570_v49, %v7861_v29  ;;  %vm7867_vm8 = vcmp.eq.f32.partialorder %v9991_v26, 0.0  ;;  %v7880_v50 = vmul.f32 0.33333334, %v8572_v11  ;;  %v3883_v37 = vmul.f32 0.00390625, %v3801_v51  ;;  %v8574_v15 = vpop.eup %8573 }
 0x189   : > { %8577 = vpow2.f32 %v7898_v17  ;;  %v10217_v35 = vand.u32 2147483647, %v10192_v13  ;;  %v3886_v54 = vmul.f32 0.00390625, %v3810_v34  ;;  %v2489_v24 = vcombine.low %v2481_v21, %v2488_v23 }
 0x18a   : > { %vm7804_vm15 = vcmp.eq.f32.partialorder %v9939_v4, inf  ;;  %v1195_v61 = vrot.slane %v9853_v28, %v9061_v58  ;;  %v1199_v19 = vrot.slane %v9853_v28, %v9067_v44  ;;  %v1203_v49 = vrot.slane %v9853_v28, %v9070_v45 }
 0x18b   : > { %v1207_v11 = vrot.slane %v9853_v28, %v9073_v46  ;;  %v7835_v47 = vsel %vm7819_vm13, 0.0, %v7834_v20  ;;  %v7816_v5 = vsel %vm7802_vm10, nan, %v7815_v38  ;;  %vm7837_vm4 = vcmp.eq.f32.partialorder %v9943_v14, 0.0  ;;  %3228 = vperm.xlu0 %8423, %v2489_v24  }
 0x18c   : > { %vm7856_vm14 = vcmp.lt.f32.partialorder %v9962_v57, 0.0  ;;  %v1211_v62 = vrot.slane %v9853_v28, %v9080_v52  ;;  %v1215_v55 = vrot.slane %v9853_v28, %v9083_v53  ;;  %v7848_v17 = vsel %vm7847_vm1, %v9943_v14, %v7846_v42  ;;  %v8576_v21 = vpop.eup %8575 }
 0x18d   : > { %v7866_v63 = vsel %vm7865_vm7, %v9962_v57, %v7864_v22  ;;  %8579 = vpow2.f32 %v7880_v50  ;;  %v10244_v51 = vadd.f32 1e-12, %v3883_v37  ;;  %v7934_v20 = vmul.f32 0.33333334, %v8574_v15 }
 0x18e   : > { %8581 = vlog2.f32 %v10217_v35  ;;  %v1219_v38 = vrot.slane %v9853_v28, %v9087_v10  ;;  %v1223_v23 = vrot.slane %v9853_v28, %v9090_v43  ;;  %vm7840_vm6 = vcmp.eq.f32.partialorder %v9979_v31, inf }
 0x18f   : > { %vm7855_vm11 = vcmp.eq.f32.partialorder %v9962_v57, 0.0  ;;  %v10253_v42 = vadd.f32 1e-12, %v3886_v54  ;;  %v2539_v22 = vcombine.low %v1195_v61, %v1199_v19  ;;  %v2540_v50 = vcombine.low %v1203_v49, %v1207_v11 }
 0x190   : > { %v2541_v37 = vcombine.low %v1211_v62, %v1215_v55  ;;  %v7817_v34 = vsel %vm7801_vm3, 0.0, %v7816_v5  ;;  %v7851_v24 = vsel %vm7849_vm2, %v7843_v9, %v7848_v17  ;;  %v3885_v15 = vmul.f32 0.00390625, %v3807_v59 }
 0x191   : > { %v2542_v27 = vcombine.low %v1219_v38, %v1223_v23  ;;  %v7916_v28 = vmul.f32 0.33333334, %v8576_v21  ;;  %v2549_v6 = vrot.slane %v2539_v22, %v9098_v48  ;;  %v2556_v40 = vrot.slane %v2540_v50, %v9098_v48  ;;  %v3831_v21 = vpop.xlane.xlu1 %3830 }
 0x192   : > { %v2563_v54 = vrot.slane %v2541_v37, %v9098_v48  ;;  %vm7858_vm12 = vcmp.eq.f32.partialorder %v9991_v26, inf  ;;  %v7869_v3 = vsel %vm7867_vm8, %v7861_v29, %v7866_v63  ;;  %8583 = vpow2.f32 %v7934_v20 }
 0x193   : > { %v10268_v61 = vand.u32 2147483647, %v10244_v51  ;;  %v2570_v9 = vrot.slane %v2542_v27, %v9098_v48  ;;  %v10273_v19 = vsel %vm7822_vm5, inf, %v7835_v47  ;;  %v7897_v49 = vand.u32 2147483648, %v10065_v16  ;;  %v8578_v62 = vpop.eup %8577 }
 0x194   : > { %v10277_v11 = vand.u32 2147483647, %v10253_v42  ;;  %v2571_v5 = vcombine.low %v2549_v6, %v2556_v40  ;;  %v10281_v29 = vsel %vm7804_vm15, inf, %v7817_v34  ;;  %v7852_v55 = vsel %vm7838_vm9, nan, %v7851_v24 }
 0x195   : > { %12731 = vst [vmem:[#allocation20_spill] sm:$0xff] %v10281_v29  ;;  %v10285_v17 = vadd.f32 1e-12, %v3885_v15  ;;  %v2572_v27 = vcombine.low %v2563_v54, %v2570_v9  ;;  %v7870_v8 = vsel %vm7856_vm14, nan, %v7869_v3  ;;  %vm7901_vm13 = vweird.f32 %v10082_v0  ;;  %v3813_v9 = vpop.xlane.xlu0 %3812 }
 0x196   : > { %8585 = vpow2.f32 %v7916_v28  ;;  %v2579_v47 = vrot.slane %v2571_v5, %v9098_v48  ;;  %vm7903_vm10 = vcmp.eq.f32.partialorder %v10082_v0, 0.0  ;;  %v7879_v4 = vand.u32 2147483648, %v10074_v41 }
 0x197   : > { %8587 = vlog2.f32 %v10268_v61  ;;  %v2586_v40 = vrot.slane %v2572_v27, %v9098_v48  ;;  %v8580_v6 = vpop.eup %8579  ;;  %v7853_v63 = vsel %vm7837_vm4, 0.0, %v7852_v55  ;;  %vm7892_vm0 = vcmp.lt.f32.partialorder %v10065_v16, 0.0 }
 0x198   : > { %v7900_v59 = vor.u32 %v8578_v62, %v7897_v49  ;;  %vm7883_vm1 = vweird.f32 %v10095_v32  ;;  %8589 = vlog2.f32 %v10277_v11  ;;  %v8582_v20 = vpop.eup %8581  ;;  %v7871_v38 = vsel %vm7855_vm11, 0.0, %v7870_v8 }
 0x199   : > { %v10303_v23 = vand.u32 2147483647, %v10285_v17  ;;  %v3893_v22 = vmul.f32 0.00390625, %v3831_v21  ;;  %v2587_v50 = vcombine.low %v2579_v47, %v2586_v40  ;;  %v1259_v14 = vrot.slane %v9861_v7, %v9061_v58 }
 0x19a   : > { %v1263_v37 = vrot.slane %v9861_v7, %v9067_v44  ;;  %v1267_v34 = vrot.slane %v9861_v7, %v9070_v45  ;;  %v1271_v24 = vrot.slane %v9861_v7, %v9073_v46  ;;  %v10315_v57 = vsel %vm7840_vm6, inf, %v7853_v63 }
 0x19b   : > { %12732 = vst [vmem:[#allocation21_spill] sm:$0xff] %v10315_v57  ;;  %vm7891_vm2 = vcmp.eq.f32.partialorder %v10065_v16, 0.0  ;;  %v7882_v15 = vor.u32 %v8580_v6, %v7879_v4  ;;  %vm7885_vm3 = vcmp.eq.f32.partialorder %v10095_v32, 0.0  ;;  %3234 = vperm.xlu0 %8423, %v2587_v50   ;;  %v1275_v28 = vrot.slane %v9861_v7, %v9080_v52 }
 0x19c   : > { %v10325_v54 = vsel %vm7858_vm12, inf, %v7871_v38  ;;  %v7902_v31 = vsel %vm7901_vm13, %v10065_v16, %v7900_v59  ;;  %v7933_v3 = vand.u32 2147483648, %v10097_v33  ;;  %vm7937_vm7 = vweird.f32 %v10122_v18  ;;  %v8584_v5 = vpop.eup %8583 }
 0x19d   : > { %vm7874_vm5 = vcmp.lt.f32.partialorder %v10074_v41, 0.0  ;;  %v7970_v62 = vmul.f32 0.33333334, %v8582_v20  ;;  %v10333_v55 = vadd.f32 1e-12, %v3893_v22  ;;  %v1279_v26 = vrot.slane %v9861_v7, %v9083_v53 }
 0x19e   : > { %v1283_v27 = vrot.slane %v9861_v7, %v9087_v10  ;;  %8591 = vlog2.f32 %v10303_v23  ;;  %v1287_v8 = vrot.slane %v9861_v7, %v9090_v43  ;;  %v2637_v47 = vcombine.low %v1259_v14, %v1263_v37 }
 0x19f   : > { %v2638_v40 = vcombine.low %v1267_v34, %v1271_v24  ;;  %v7905_v6 = vsel %vm7903_vm10, %v7897_v49, %v7902_v31  ;;  %v7884_v63 = vsel %vm7883_vm1, %v10074_v41, %v7882_v15  ;;  %v3887_v59 = vmul.f32 0.00390625, %v3813_v9 }
 0x1a0   : > { %v2639_v21 = vcombine.low %v1275_v28, %v1279_v26  ;;  %v8586_v20 = vpop.eup %8585  ;;  %vm7894_vm9 = vcmp.eq.f32.partialorder %v10082_v0, inf  ;;  %v7936_v38 = vor.u32 %v8584_v5, %v7933_v3  ;;  %v2640_v22 = vcombine.low %v1283_v27, %v1287_v8 }
 0x1a1   : > { %v2647_v50 = vrot.slane %v2637_v47, %v9098_v48  ;;  %v2654_v7 = vrot.slane %v2638_v40, %v9098_v48  ;;  %v8588_v14 = vpop.eup %8587  ;;  %v7915_v37 = vand.u32 2147483648, %v10126_v39  ;;  %8593 = vpow2.f32 %v7970_v62 }
 0x1a2   : > { %v10352_v49 = vand.u32 2147483647, %v10333_v55  ;;  %v2661_v34 = vrot.slane %v2639_v21, %v9098_v48  ;;  %v8590_v24 = vpop.eup %8589  ;;  %vm7873_vm8 = vcmp.eq.f32.partialorder %v10074_v41, 0.0  ;;  %vm7928_vm15 = vcmp.lt.f32.partialorder %v10097_v33, 0.0  ;;  %v3834_v21 = vpop.xlane.xlu0 %3833 }
 0x1a3   : > { %vm7939_vm4 = vcmp.eq.f32.partialorder %v10122_v18, 0.0  ;;  %v2668_v15 = vrot.slane %v2640_v22, %v9098_v48  ;;  %v2669_v28 = vcombine.low %v2647_v50, %v2654_v7  ;;  %v7906_v31 = vsel %vm7892_vm0, nan, %v7905_v6 }
 0x1a4   : > { %v7887_v9 = vsel %vm7885_vm3, %v7879_v4, %v7884_v63  ;;  %v7918_v5 = vor.u32 %v8586_v20, %v7915_v37  ;;  %v10365_v62 = vadd.f32 1e-12, %v3887_v59  ;;  %v7938_v26 = vsel %vm7937_vm7, %v10097_v33, %v7936_v38  ;;  %v3837_v4 = vpop.xlane.xlu1 %3836 }
 0x1a5   : > { %v7952_v27 = vmul.f32 0.33333334, %v8588_v14  ;;  %v2670_v8 = vcombine.low %v2661_v34, %v2668_v15  ;;  %v2677_v47 = vrot.slane %v2669_v28, %v9098_v48  ;;  %vm7927_vm14 = vcmp.eq.f32.partialorder %v10097_v33, 0.0 }
 0x1a6   : > { %vm7919_vm6 = vweird.f32 %v10160_v36  ;;  %vm7921_vm11 = vcmp.eq.f32.partialorder %v10160_v36, 0.0  ;;  %v8006_v40 = vmul.f32 0.33333334, %v8590_v24  ;;  %8595 = vlog2.f32 %v10352_v49 }
 0x1a7   : > { %v7907_v6 = vsel %vm7891_vm2, 0.0, %v7906_v31  ;;  %v7888_v63 = vsel %vm7874_vm5, nan, %v7887_v9  ;;  %v3895_v59 = vmul.f32 0.00390625, %v3837_v4  ;;  %v2684_v20 = vrot.slane %v2670_v8, %v9098_v48 }
 0x1a8   : > { %vm7876_vm12 = vcmp.eq.f32.partialorder %v10095_v32, inf  ;;  %v7941_v38 = vsel %vm7939_vm4, %v7933_v3, %v7938_v26  ;;  %v7920_v22 = vsel %vm7919_vm6, %v10126_v39, %v7918_v5  ;;  %v7969_v50 = vand.u32 2147483648, %v10192_v13  ;;  %v8592_v16 = vpop.eup %8591 }
 0x1a9   : > { %v10386_v7 = vand.u32 2147483647, %v10365_v62  ;;  %vm7910_vm13 = vcmp.lt.f32.partialorder %v10126_v39, 0.0  ;;  %8597 = vpow2.f32 %v7952_v27  ;;  %v2685_v14 = vcombine.low %v2677_v47, %v2684_v20 }
 0x1aa   : > { %v1323_v34 = vrot.slane %v10013_v12, %v9061_v58  ;;  %v1327_v24 = vrot.slane %v10013_v12, %v9067_v44  ;;  %vm7930_vm10 = vcmp.eq.f32.partialorder %v10122_v18, inf  ;;  %8599 = vpow2.f32 %v8006_v40 }
 0x1ab   : > { %v3894_v3 = vmul.f32 0.00390625, %v3834_v21  ;;  %v1331_v15 = vrot.slane %v10013_v12, %v9070_v45  ;;  %v1335_v28 = vrot.slane %v10013_v12, %v9073_v46  ;;  %v10398_v31 = vadd.f32 1e-12, %v3895_v59  ;;  %3240 = vperm.xlu0 %8423, %v2685_v14   ;;  %v8594_v27 = vpop.eup %8593 }
 0x1ac   : > { %v1339_v9 = vrot.slane %v10013_v12, %v9080_v52  ;;  %v1343_v5 = vrot.slane %v10013_v12, %v9083_v53  ;;  %v1347_v26 = vrot.slane %v10013_v12, %v9087_v10  ;;  %v10408_v8 = vsel %vm7894_vm9, inf, %v7907_v6 }
 0x1ad   : > { %12733 = vst [vmem:[#allocation22_spill] sm:$0xff] %v10408_v8  ;;  %v7889_v47 = vsel %vm7873_vm8, 0.0, %v7888_v63  ;;  %v7988_v40 = vmul.f32 0.33333334, %v8592_v16  ;;  %8601 = vlog2.f32 %v10386_v7  ;;  %v7942_v4 = vsel %vm7928_vm15, nan, %v7941_v38 }
 0x1ae   : > { %vm7909_vm0 = vcmp.eq.f32.partialorder %v10126_v39, 0.0  ;;  %vm7973_vm1 = vweird.f32 %v10217_v35  ;;  %v1351_v59 = vrot.slane %v10013_v12, %v9090_v43  ;;  %v2735_v21 = vcombine.low %v1323_v34, %v1327_v24 }
 0x1af   : > { %v7923_v0 = vsel %vm7921_vm11, %v7915_v37, %v7920_v22  ;;  %v10421_v6 = vadd.f32 1e-12, %v3894_v3  ;;  %v2736_v41 = vcombine.low %v1331_v15, %v1335_v28  ;;  %v2737_v63 = vcombine.low %v1339_v9, %v1343_v5  ;;  %v3843_v15 = vpop.xlane.xlu1 %3842 }
 0x1b0   : > { %vm7964_vm2 = vcmp.lt.f32.partialorder %v10192_v13, 0.0  ;;  %v7972_v20 = vor.u32 %v8594_v27, %v7969_v50  ;;  %v10427_v38 = vand.u32 2147483647, %v10398_v31  ;;  %v2738_v16 = vcombine.low %v1347_v26, %v1351_v59  ;;  %v8596_v12 = vpop.eup %8595 }
 0x1b1   : > { %v2745_v14 = vrot.slane %v2735_v21, %v9098_v48  ;;  %vm7975_vm3 = vcmp.eq.f32.partialorder %v10217_v35, 0.0  ;;  %8603 = vpow2.f32 %v7988_v40  ;;  %v2752_v37 = vrot.slane %v2736_v41, %v9098_v48 }
 0x1b2   : > { %v2759_v22 = vrot.slane %v2737_v63, %v9098_v48  ;;  %v10435_v34 = vsel %vm7876_vm12, inf, %v7889_v47  ;;  %v7943_v24 = vsel %vm7927_vm14, 0.0, %v7942_v4  ;;  %vm7912_vm7 = vcmp.eq.f32.partialorder %v10160_v36, inf }
 0x1b3   : > { %12734 = vst [vmem:[#allocation23_spill] sm:$0xff] %v10435_v34  ;;  %v12668_v3 = vand.u32 2147483648, %v10253_v42  ;;  %v2766_v28 = vrot.slane %v2738_v16, %v9098_v48  ;;  %v7924_v9 = vsel %vm7910_vm13, nan, %v7923_v0  ;;  %v10445_v5 = vand.u32 2147483647, %v10421_v6  ;;  %v8598_v27 = vpop.eup %8597 }
 0x1b4   : > { %v3897_v26 = vmul.f32 0.00390625, %v3843_v15  ;;  %v2767_v32 = vcombine.low %v2745_v14, %v2752_v37  ;;  %v7974_v33 = vsel %vm7973_vm1, %v10192_v13, %v7972_v20  ;;  %v8132_v47 = vmul.f32 0.33333334, %v8596_v12  ;;  %v8600_v4 = vpop.eup %8599  ;;  %v3840_v12 = vpop.xlane.xlu0 %3839 }
 0x1b5   : > { %8605 = vlog2.f32 %v10427_v38  ;;  %v2768_v40 = vcombine.low %v2759_v22, %v2766_v28  ;;  %vm7963_vm5 = vcmp.eq.f32.partialorder %v10192_v13, 0.0  ;;  %v7951_v59 = vand.u32 2147483648, %v10244_v51 }
 0x1b6   : > { %vm7955_vm9 = vweird.f32 %v10268_v61  ;;  %vm8009_vm8 = vweird.f32 %v10277_v11  ;;  %v2775_v21 = vrot.slane %v2767_v32, %v9098_v48  ;;  %v10458_v0 = vsel %vm7930_vm10, inf, %v7943_v24 }
 0x1b7   : > { %12735 = vst [vmem:[#allocation24_spill] sm:$0xff] %v10458_v0  ;;  %vm8011_vm15 = vcmp.eq.f32.partialorder %v10277_v11, 0.0  ;;  %v2782_v63 = vrot.slane %v2768_v40, %v9098_v48  ;;  %v8602_v20 = vpop.eup %8601  ;;  %v7925_v16 = vsel %vm7909_vm0, 0.0, %v7924_v9  ;;  %v7977_v14 = vsel %vm7975_vm3, %v7969_v50, %v7974_v33 }
 0x1b8   : > { %vm7957_vm4 = vcmp.eq.f32.partialorder %v10268_v61, 0.0  ;;  %8607 = vlog2.f32 %v10445_v5  ;;  %v10471_v18 = vadd.f32 1e-12, %v3897_v26  ;;  %vm7966_vm14 = vcmp.eq.f32.partialorder %v10217_v35, inf  ;;  %v3846_v8 = vpop.xlane.xlu0 %3845 }
 0x1b9   : > { %v7954_v37 = vor.u32 %v8598_v27, %v7951_v59  ;;  %v8008_v22 = vor.u32 %v8600_v4, %v12668_v3  ;;  %8609 = vpow2.f32 %v8132_v47  ;;  %v2783_v39 = vcombine.low %v2775_v21, %v2782_v63  ;;  %v3849_v63 = vpop.xlane.xlu1 %3848 }
 0x1ba   : > { %vm8000_vm6 = vcmp.lt.f32.partialorder %v10253_v42, 0.0  ;;  %vm7991_vm11 = vweird.f32 %v10303_v23  ;;  %v1387_v50 = vrot.slane %v10028_v60, %v9061_v58  ;;  %v1391_v24 = vrot.slane %v10028_v60, %v9067_v44 }
 0x1bb   : > { %v1395_v15 = vrot.slane %v10028_v60, %v9070_v45  ;;  %v1399_v28 = vrot.slane %v10028_v60, %v9073_v46  ;;  %v8024_v9 = vmul.f32 0.33333334, %v8602_v20  ;;  %v3896_v26 = vmul.f32 0.00390625, %v3840_v12  ;;  %3246 = vperm.xlu0 %8423, %v2783_v39   ;;  %v8604_v33 = vpop.eup %8603 }
 0x1bc   : > { %v1403_v32 = vrot.slane %v10028_v60, %v9080_v52  ;;  %v1407_v27 = vrot.slane %v10028_v60, %v9083_v53  ;;  %v10492_v47 = vsel %vm7912_vm7, inf, %v7925_v16  ;;  %v7978_v40 = vsel %vm7964_vm2, nan, %v7977_v14 }
 0x1bd   : > { %vm7946_vm12 = vcmp.lt.f32.partialorder %v10244_v51, 0.0  ;;  %v10499_v21 = vand.u32 2147483647, %v10471_v18  ;;  %v7956_v20 = vsel %vm7955_vm9, %v10244_v51, %v7954_v37  ;;  %v8010_v36 = vsel %vm8009_vm8, %v10253_v42, %v8008_v22  ;;  %v3855_v13 = vpop.xlane.xlu1 %3854 }
 0x1be   : > { %vm7993_vm13 = vcmp.eq.f32.partialorder %v10303_v23, 0.0  ;;  %v1411_v16 = vrot.slane %v10028_v60, %v9087_v10  ;;  %v1415_v14 = vrot.slane %v10028_v60, %v9090_v43  ;;  %vm7999_vm10 = vcmp.eq.f32.partialorder %v10253_v42, 0.0 }
 0x1bf   : > { %v3899_v12 = vmul.f32 0.00390625, %v3849_v63  ;;  %v2833_v39 = vcombine.low %v1387_v50, %v1391_v24  ;;  %v2834_v4 = vcombine.low %v1395_v15, %v1399_v28  ;;  %v2835_v3 = vcombine.low %v1403_v32, %v1407_v27  ;;  %v8606_v41 = vpop.eup %8605 }
 0x1c0   : > { %v12736_v37 = vand.u32 2147483648, %v10285_v17  ;;  %8611 = vpow2.f32 %v8024_v9  ;;  %v10515_v22 = vadd.f32 1e-12, %v3896_v26  ;;  %v2836_v34 = vcombine.low %v1411_v16, %v1415_v14 }
 0x1c1   : > { %vm7945_vm0 = vcmp.eq.f32.partialorder %v10244_v51, 0.0  ;;  %8613 = vlog2.f32 %v10499_v21  ;;  %v2843_v60 = vrot.slane %v2833_v39, %v9098_v48  ;;  %v2850_v63 = vrot.slane %v2834_v4, %v9098_v48  ;;  %v3816_v29 = vpop.xlane.xlu1 %3815 }
 0x1c2   : > { %v7990_v0 = vor.u32 %v8604_v33, %v12736_v37  ;;  %v2857_v50 = vrot.slane %v2835_v3, %v9098_v48  ;;  %v7979_v24 = vsel %vm7963_vm5, 0.0, %v7978_v40  ;;  %v7959_v15 = vsel %vm7957_vm4, %v7951_v59, %v7956_v20  ;;  %v8608_v32 = vpop.eup %8607 }
 0x1c3   : > { %v12737_v28 = vand.u32 2147483648, %v10253_v42  ;;  %vm7982_vm1 = vcmp.lt.f32.partialorder %v10285_v17, 0.0  ;;  %v2864_v26 = vrot.slane %v2836_v34, %v9098_v48  ;;  %v8168_v27 = vmul.f32 0.33333334, %v8606_v41  ;;  %v8610_v40 = vpop.eup %8609 }
 0x1c4   : > { %v10532_v33 = vadd.f32 1e-12, %v3899_v12  ;;  %v3898_v3 = vmul.f32 0.00390625, %v3846_v8  ;;  %v2865_v4 = vcombine.low %v2843_v60, %v2850_v63  ;;  %v7992_v59 = vsel %vm7991_vm11, %v10285_v17, %v7990_v0 }
 0x1c5   : > { %v8013_v9 = vsel %vm8011_vm15, %v12737_v28, %v8010_v36  ;;  %v10538_v20 = vand.u32 2147483647, %v10515_v22  ;;  %v2866_v36 = vcombine.low %v2857_v50, %v2864_v26  ;;  %v3901_v16 = vmul.f32 0.00390625, %v3855_v13 }
 0x1c6   : > { %v10542_v34 = vsel %vm7966_vm14, inf, %v7979_v24  ;;  %vm8135_vm2 = vweird.f32 %v10352_v49  ;;  %v8023_v8 = vand.u32 2147483648, %v10365_v62  ;;  %v2873_v41 = vrot.slane %v2865_v4, %v9098_v48 }
 0x1c7   : > { %12738 = vst [vmem:[#allocation25_spill] sm:$0xff] %v10542_v34  ;;  %v7960_v14 = vsel %vm7946_vm12, nan, %v7959_v15  ;;  %vm8002_vm3 = vcmp.eq.f32.partialorder %v10277_v11, inf  ;;  %v8014_v0 = vsel %vm8000_vm6, nan, %v8013_v9  ;;  %v8150_v12 = vmul.f32 0.33333334, %v8608_v32 }
 0x1c8   : > { %v2880_v39 = vrot.slane %v2866_v36, %v9098_v48  ;;  %vm7948_vm7 = vcmp.eq.f32.partialorder %v10268_v61, inf  ;;  %v12739_v35 = vmov %v12736_v37  ;;  %vm8137_vm5 = vcmp.eq.f32.partialorder %v10352_v49, 0.0  ;;  %v3852_v36 = vpop.xlane.xlu0 %3851 }
 0x1c9   : > { %v7995_v37 = vsel %vm7993_vm13, %v12739_v35, %v7992_v59  ;;  %8615 = vpow2.f32 %v8168_v27  ;;  %v10560_v60 = vand.u32 2147483647, %v10532_v33  ;;  %v10562_v63 = vadd.f32 1e-12, %v3898_v3 }
 0x1ca   : > { %vm7981_vm9 = vcmp.eq.f32.partialorder %v10285_v17, 0.0  ;;  %v12740_v50 = vand.u32 2147483648, %v10333_v55  ;;  %8617 = vlog2.f32 %v10538_v20  ;;  %v2881_v15 = vcombine.low %v2873_v41, %v2880_v39  ;;  %v8612_v3 = vpop.eup %8611 }
 0x1cb   : > { %v10568_v28 = vadd.f32 1e-12, %v3901_v16  ;;  %v1451_v9 = vrot.slane %v10143_v56, %v9061_v58  ;;  %v1455_v26 = vrot.slane %v10143_v56, %v9067_v44  ;;  %v1459_v32 = vrot.slane %v10143_v56, %v9070_v45 }
 0x1cc   : > { %v8134_v24 = vor.u32 %v8610_v40, %v12740_v50  ;;  %v1463_v27 = vrot.slane %v10143_v56, %v9073_v46  ;;  %v7961_v4 = vsel %vm7945_vm0, 0.0, %v7960_v14  ;;  %v8015_v13 = vsel %vm7999_vm10, 0.0, %v8014_v0  ;;  %3252 = vperm.xlu0 %8423, %v2881_v15   ;;  %v8614_v40 = vpop.eup %8613 }
 0x1cd   : > { %vm8126_vm8 = vcmp.lt.f32.partialorder %v10333_v55, 0.0  ;;  %vm8027_vm15 = vweird.f32 %v10386_v7  ;;  %8619 = vpow2.f32 %v8150_v12  ;;  %vm7984_vm4 = vcmp.eq.f32.partialorder %v10303_v23, inf }
 0x1ce   : > { %v7996_v59 = vsel %vm7982_vm1, nan, %v7995_v37  ;;  %8621 = vlog2.f32 %v10560_v60  ;;  %v10589_v51 = vand.u32 2147483647, %v10562_v63  ;;  %v1467_v42 = vrot.slane %v10143_v56, %v9080_v52 }
 0x1cf   : > { %v10594_v16 = vand.u32 2147483647, %v10568_v28  ;;  %v1471_v41 = vrot.slane %v10143_v56, %v9083_v53  ;;  %v1475_v14 = vrot.slane %v10143_v56, %v9087_v10  ;;  %v1479_v0 = vrot.slane %v10143_v56, %v9090_v43 }
 0x1d0   : > { %vm8125_vm14 = vcmp.eq.f32.partialorder %v10333_v55, 0.0  ;;  %v8136_v12 = vsel %vm8135_vm2, %v10333_v55, %v8134_v24  ;;  %v8026_v39 = vor.u32 %v8612_v3, %v8023_v8  ;;  %vm8029_vm6 = vcmp.eq.f32.partialorder %v10386_v7, 0.0 }
 0x1d1   : > { %v2931_v35 = vcombine.low %v1451_v9, %v1455_v26  ;;  %v2932_v37 = vcombine.low %v1459_v32, %v1463_v27  ;;  %v8204_v50 = vmul.f32 0.33333334, %v8614_v40  ;;  %v3900_v15 = vmul.f32 0.00390625, %v3852_v36 }
 0x1d2   : > { %v2933_v34 = vcombine.low %v1467_v42, %v1471_v41  ;;  %v2934_v57 = vcombine.low %v1475_v14, %v1479_v0  ;;  %8623 = vlog2.f32 %v10589_v51  ;;  %v3888_v25 = vmul.f32 0.00390625, %v3816_v29 }
 0x1d3   : > { %v2941_v56 = vrot.slane %v2931_v35, %v9098_v48  ;;  %v2948_v2 = vrot.slane %v2932_v37, %v9098_v48  ;;  %v10614_v24 = vsel %vm7948_vm7, inf, %v7961_v4  ;;  %vm8018_vm11 = vcmp.lt.f32.partialorder %v10365_v62, 0.0  ;;  %v8616_v32 = vpop.eup %8615 }
 0x1d4   : > { %8625 = vlog2.f32 %v10594_v16  ;;  %v2955_v9 = vrot.slane %v2933_v34, %v9098_v48  ;;  %v2962_v26 = vrot.slane %v2934_v57, %v9098_v48  ;;  %v10622_v27 = vsel %vm8002_vm3, inf, %v8015_v13  ;;  %v8618_v4 = vpop.eup %8617  ;;  %v3858_v13 = vpop.xlane.xlu0 %3857 }
 0x1d5   : > { %12741 = vst [vmem:[#allocation26_spill] sm:$0xff] %v10622_v27  ;;  %v7997_v29 = vsel %vm7981_vm9, 0.0, %v7996_v59  ;;  %v8167_v61 = vand.u32 2147483648, %v10398_v31  ;;  %v2963_v3 = vcombine.low %v2941_v56, %v2948_v2  ;;  %v12742_v40 = vand.u32 2147483648, %v10333_v55 }
 0x1d6   : > { %8627 = vpow2.f32 %v8204_v50  ;;  %v10631_v34 = vadd.f32 1e-12, %v3900_v15  ;;  %v2964_v57 = vcombine.low %v2955_v9, %v2962_v26  ;;  %vm8128_vm12 = vcmp.eq.f32.partialorder %v10352_v49, inf }
 0x1d7   : > { %v8139_v36 = vsel %vm8137_vm5, %v12742_v40, %v8136_v12  ;;  %v8028_v11 = vsel %vm8027_vm15, %v10365_v62, %v8026_v39  ;;  %vm8171_vm13 = vweird.f32 %v10427_v38  ;;  %v2971_v2 = vrot.slane %v2963_v3, %v9098_v48  ;;  %v8620_v59 = vpop.eup %8619 }
 0x1d8   : > { %v10639_v17 = vadd.f32 1e-12, %v3888_v25  ;;  %v10643_v42 = vsel %vm7984_vm4, inf, %v7997_v29  ;;  %vm8162_vm10 = vcmp.lt.f32.partialorder %v10398_v31, 0.0  ;;  %vm8173_vm0 = vcmp.eq.f32.partialorder %v10427_v38, 0.0  ;;  %v8622_v0 = vpop.eup %8621 }
 0x1d9   : > { %v12677_v41 = vand.u32 2147483648, %v10421_v6  ;;  %v2978_v14 = vrot.slane %v2964_v57, %v9098_v48  ;;  %v8140_v12 = vsel %vm8126_vm8, nan, %v8139_v36  ;;  %v8170_v25 = vor.u32 %v8616_v32, %v8167_v61 }
 0x1da   : > { %vm8153_vm1 = vweird.f32 %v10445_v5  ;;  %v8186_v23 = vmul.f32 0.33333334, %v8618_v4  ;;  %v8031_v35 = vsel %vm8029_vm6, %v8023_v8, %v8028_v11  ;;  %v10658_v37 = vand.u32 2147483647, %v10631_v34 }
 0x1db   : > { %v2979_v50 = vcombine.low %v2971_v2, %v2978_v14  ;;  %v3902_v15 = vmul.f32 0.00390625, %v3858_v13  ;;  %vm8017_vm2 = vcmp.eq.f32.partialorder %v10365_v62, 0.0  ;;  %vm8161_vm3 = vcmp.eq.f32.partialorder %v10398_v31, 0.0 }
 0x1dc   : > { %v10663_v56 = vand.u32 2147483647, %v10639_v17  ;;  %v1515_v9 = vrot.slane %v10196_v1, %v9061_v58  ;;  %v1519_v26 = vrot.slane %v10196_v1, %v9067_v44  ;;  %v1523_v8 = vrot.slane %v10196_v1, %v9070_v45  ;;  %v8624_v40 = vpop.eup %8623 }
 0x1dd   : > { %v8141_v32 = vsel %vm8125_vm14, 0.0, %v8140_v12  ;;  %vm8155_vm7 = vcmp.eq.f32.partialorder %v10445_v5, 0.0  ;;  %v8240_v29 = vmul.f32 0.33333334, %v8622_v0  ;;  %3258 = vperm.xlu0 %8423, %v2979_v50   ;;  %v1527_v3 = vrot.slane %v10196_v1, %v9073_v46 }
 0x1de   : > { %v1531_v4 = vrot.slane %v10196_v1, %v9080_v52  ;;  %v8032_v36 = vsel %vm8018_vm11, nan, %v8031_v35  ;;  %v8172_v57 = vsel %vm8171_vm13, %v10398_v31, %v8170_v25  ;;  %v8152_v55 = vor.u32 %v8620_v59, %v12677_v41  ;;  %v8626_v11 = vpop.eup %8625 }
 0x1df   : > { %8629 = vpow2.f32 %v8186_v23  ;;  %vm8020_vm5 = vcmp.eq.f32.partialorder %v10386_v7, inf  ;;  %vm8164_vm9 = vcmp.eq.f32.partialorder %v10427_v38, inf  ;;  %v10688_v2 = vadd.f32 1e-12, %v3902_v15 }
 0x1e0   : > { %8631 = vlog2.f32 %v10658_v37  ;;  %v1535_v13 = vrot.slane %v10196_v1, %v9083_v53  ;;  %v1539_v14 = vrot.slane %v10196_v1, %v9087_v10  ;;  %vm8144_vm8 = vcmp.lt.f32.partialorder %v10421_v6, 0.0  ;;  %v8628_v25 = vpop.eup %8627 }
 0x1e1   : > { %8633 = vlog2.f32 %v10663_v56  ;;  %v1543_v59 = vrot.slane %v10196_v1, %v9090_v43  ;;  %v3029_v0 = vcombine.low %v1515_v9, %v1519_v26  ;;  %v3030_v12 = vcombine.low %v1523_v8, %v1527_v3 }
 0x1e2   : > { %v8175_v23 = vsel %vm8173_vm0, %v8167_v61, %v8172_v57  ;;  %8635 = vpow2.f32 %v8240_v29  ;;  %v8222_v35 = vmul.f32 0.33333334, %v8624_v40  ;;  %v3031_v50 = vcombine.low %v1531_v4, %v1535_v13  ;;  %v3819_v4 = vpop.xlane.xlu1 %3818 }
 0x1e3   : > { %v8276_v15 = vmul.f32 0.33333334, %v8626_v11  ;;  %v3032_v41 = vcombine.low %v1539_v14, %v1543_v59  ;;  %v3039_v39 = vrot.slane %v3029_v0, %v9098_v48  ;;  %v3046_v27 = vrot.slane %v3030_v12, %v9098_v48 }
 0x1e4   : > { %v10704_v30 = vsel %vm8128_vm12, inf, %v8141_v32  ;;  %vm8143_vm15 = vcmp.eq.f32.partialorder %v10421_v6, 0.0  ;;  %v8154_v1 = vsel %vm8153_vm1, %v10421_v6, %v8152_v55  ;;  %vm8198_vm4 = vcmp.lt.f32.partialorder %v10471_v18, 0.0 }
 0x1e5   : > { %v10712_v61 = vand.u32 2147483647, %v10688_v2  ;;  %v3053_v9 = vrot.slane %v3031_v50, %v9098_v48  ;;  %v8176_v26 = vsel %vm8162_vm10, nan, %v8175_v23  ;;  %v12743_v49 = vand.u32 2147483648, %v10471_v18 }
 0x1e6   : > { %v3060_v32 = vrot.slane %v3032_v41, %v9098_v48  ;;  %v3061_v29 = vcombine.low %v3039_v39, %v3046_v27  ;;  %v8033_v3 = vsel %vm8017_vm2, 0.0, %v8032_v36  ;;  %vm8207_vm14 = vweird.f32 %v10499_v21 }
 0x1e7   : > { %v8206_v8 = vor.u32 %v8628_v25, %v12743_v49  ;;  %vm8209_vm6 = vcmp.eq.f32.partialorder %v10499_v21, 0.0  ;;  %8637 = vpow2.f32 %v8222_v35  ;;  %v12744_v40 = vand.u32 2147483648, %v10421_v6 }
 0x1e8   : > { %8639 = vpow2.f32 %v8276_v15  ;;  %v3062_v55 = vcombine.low %v3053_v9, %v3060_v32  ;;  %v3069_v11 = vrot.slane %v3061_v29, %v9098_v48  ;;  %v8177_v27 = vsel %vm8161_vm3, 0.0, %v8176_v26 }
 0x1e9   : > { %v8157_v57 = vsel %vm8155_vm7, %v12744_v40, %v8154_v1  ;;  %vm8197_vm11 = vcmp.eq.f32.partialorder %v10471_v18, 0.0  ;;  %v8185_v62 = vand.u32 2147483648, %v10515_v22  ;;  %vm8189_vm12 = vweird.f32 %v10538_v20  ;;  %v8630_v41 = vpop.eup %8629 }
 0x1ea   : > { %8641 = vlog2.f32 %v10712_v61  ;;  %v10737_v39 = vsel %vm8020_vm5, inf, %v8033_v3  ;;  %v8208_v36 = vsel %vm8207_vm14, %v10471_v18, %v8206_v8  ;;  %v3076_v13 = vrot.slane %v3062_v55, %v9098_v48  ;;  %v8632_v31 = vpop.eup %8631 }
 0x1eb   : > { %v3889_v14 = vmul.f32 0.00390625, %v3819_v4  ;;  %vm8146_vm13 = vcmp.eq.f32.partialorder %v10445_v5, inf  ;;  %v8158_v59 = vsel %vm8144_vm8, nan, %v8157_v57  ;;  %vm8191_vm10 = vcmp.eq.f32.partialorder %v10538_v20, 0.0  ;;  %v8634_v7 = vpop.eup %8633 }
 0x1ec   : > { %v8239_v0 = vand.u32 2147483648, %v10532_v33  ;;  %vm8243_vm0 = vweird.f32 %v10560_v60  ;;  %v10749_v12 = vsel %vm8164_vm9, inf, %v8177_v27  ;;  %v3077_v25 = vcombine.low %v3069_v11, %v3076_v13  ;;  %v8636_v50 = vpop.eup %8635 }
 0x1ed   : > { %v1579_v23 = vrot.slane %v10273_v19, %v9061_v58  ;;  %v1583_v35 = vrot.slane %v10273_v19, %v9067_v44  ;;  %v12745_v15 = vmov %v12743_v49  ;;  %v8188_v9 = vor.u32 %v8630_v41, %v8185_v62 }
 0x1ee   : > { %v8211_v1 = vsel %vm8209_vm6, %v12745_v15, %v8208_v36  ;;  %v1587_v26 = vrot.slane %v10273_v19, %v9070_v45  ;;  %v1591_v38 = vrot.slane %v10273_v19, %v9073_v46  ;;  %v8159_v49 = vsel %vm8143_vm15, 0.0, %v8158_v59  ;;  %3264 = vperm.xlu0 %8423, %v3077_v25   ;;  %v3861_v25 = vpop.xlane.xlu0 %3860 }
 0x1ef   : > { %vm8200_vm1 = vcmp.eq.f32.partialorder %v10499_v21, inf  ;;  %v8221_v8 = vand.u32 2147483648, %v10562_v63  ;;  %v8258_v32 = vmul.f32 0.33333334, %v8632_v31  ;;  %v10767_v29 = vadd.f32 1e-12, %v3889_v14 }
 0x1f0   : > { %vm8245_vm2 = vcmp.eq.f32.partialorder %v10560_v60, 0.0  ;;  %v8275_v3 = vand.u32 2147483648, %v10568_v28  ;;  %v8042_v4 = vmul.f32 0.33333334, %v8634_v7  ;;  %v1595_v40 = vrot.slane %v10273_v19, %v9080_v52 }
 0x1f1   : > { %v1599_v6 = vrot.slane %v10273_v19, %v9083_v53  ;;  %v8212_v57 = vsel %vm8198_vm4, nan, %v8211_v1  ;;  %vm8180_vm3 = vcmp.lt.f32.partialorder %v10515_v22, 0.0  ;;  %v1603_v55 = vrot.slane %v10273_v19, %v9087_v10  ;;  %v8638_v41 = vpop.eup %8637 }
 0x1f2   : > { %v1607_v11 = vrot.slane %v10273_v19, %v9090_v43  ;;  %v3127_v27 = vcombine.low %v1579_v23, %v1583_v35  ;;  %v8190_v36 = vsel %vm8189_vm12, %v10515_v22, %v8188_v9  ;;  %v8242_v13 = vor.u32 %v8636_v50, %v8239_v0  ;;  %v8640_v59 = vpop.eup %8639 }
 0x1f3   : > { %v3128_v14 = vcombine.low %v1587_v26, %v1591_v38  ;;  %v3129_v31 = vcombine.low %v1595_v40, %v1599_v6  ;;  %8643 = vpow2.f32 %v8258_v32  ;;  %v10788_v7 = vand.u32 2147483647, %v10767_v29 }
 0x1f4   : > { %v3130_v15 = vcombine.low %v1603_v55, %v1607_v11  ;;  %v3137_v19 = vrot.slane %v3127_v27, %v9098_v48  ;;  %v8642_v23 = vpop.eup %8641  ;;  %vm8234_vm7 = vcmp.lt.f32.partialorder %v10532_v33, 0.0  ;;  %vm8225_vm5 = vweird.f32 %v10589_v51 }
 0x1f5   : > { %8645 = vpow2.f32 %v8042_v4  ;;  %v3144_v35 = vrot.slane %v3128_v14, %v9098_v48  ;;  %v3151_v50 = vrot.slane %v3129_v31, %v9098_v48  ;;  %v10797_v1 = vsel %vm8146_vm13, inf, %v8159_v49 }
 0x1f6   : > { %v8213_v9 = vsel %vm8197_vm11, 0.0, %v8212_v57  ;;  %v8193_v26 = vsel %vm8191_vm10, %v8185_v62, %v8190_v36  ;;  %v3158_v38 = vrot.slane %v3130_v15, %v9098_v48  ;;  %vm8179_vm9 = vcmp.eq.f32.partialorder %v10515_v22, 0.0 }
 0x1f7   : > { %v8244_v32 = vsel %vm8243_vm0, %v10532_v33, %v8242_v13  ;;  %v8224_v4 = vor.u32 %v8638_v41, %v8221_v8  ;;  %v3903_v5 = vmul.f32 0.00390625, %v3861_v25  ;;  %v3159_v49 = vcombine.low %v3137_v19, %v3144_v35 }
 0x1f8   : > { %vm8227_vm8 = vcmp.eq.f32.partialorder %v10589_v51, 0.0  ;;  %v8278_v18 = vor.u32 %v8640_v59, %v8275_v3  ;;  %v8294_v40 = vmul.f32 0.33333334, %v8642_v23  ;;  %8647 = vlog2.f32 %v10788_v7 }
 0x1f9   : > { %v3160_v62 = vcombine.low %v3151_v50, %v3158_v38  ;;  %vm8233_vm15 = vcmp.eq.f32.partialorder %v10532_v33, 0.0  ;;  %v3167_v6 = vrot.slane %v3159_v49, %v9098_v48  ;;  %v4040_v57 = vrot.slane %v10325_v54, %v9061_v58 }
 0x1fa   : > { %v4044_v55 = vrot.slane %v10325_v54, %v9067_v44  ;;  %v4048_v11 = vrot.slane %v10325_v54, %v9070_v45  ;;  %vm8182_vm4 = vcmp.eq.f32.partialorder %v10538_v20, inf  ;;  %vm8270_vm14 = vcmp.lt.f32.partialorder %v10568_v28, 0.0 }
 0x1fb   : > { %v3174_v27 = vrot.slane %v3160_v62, %v9098_v48  ;;  %v4052_v41 = vrot.slane %v10325_v54, %v9073_v46  ;;  %v4056_v36 = vrot.slane %v10325_v54, %v9080_v52  ;;  %v4060_v13 = vrot.slane %v10325_v54, %v9083_v53 }
 0x1fc   : > { %v10833_v14 = vsel %vm8200_vm1, inf, %v8213_v9  ;;  %v8194_v31 = vsel %vm8180_vm3, nan, %v8193_v26  ;;  %vm8216_vm6 = vcmp.lt.f32.partialorder %v10562_v63, 0.0  ;;  %vm8279_vm11 = vweird.f32 %v10594_v16  ;;  %v3864_v26 = vpop.xlane.xlu0 %3863 }
 0x1fd   : > { %vm8281_vm12 = vcmp.eq.f32.partialorder %v10594_v16, 0.0  ;;  %v8247_v59 = vsel %vm8245_vm2, %v8239_v0, %v8244_v32  ;;  %v8041_v25 = vand.u32 2147483648, %v10639_v17  ;;  %v3175_v15 = vcombine.low %v3167_v6, %v3174_v27  ;;  %v8644_v9 = vpop.eup %8643 }
 0x1fe   : > { %v4064_v21 = vrot.slane %v10325_v54, %v9087_v10  ;;  %vm8236_vm13 = vcmp.eq.f32.partialorder %v10560_v60, inf  ;;  %v8226_v19 = vsel %vm8225_vm5, %v10562_v63, %v8224_v4  ;;  %v10851_v23 = vadd.f32 1e-12, %v3903_v5 }
 0x1ff   : > { %v4068_v35 = vrot.slane %v10325_v54, %v9090_v43  ;;  %v5078_v50 = vcombine.low %v4040_v57, %v4044_v55  ;;  %vm8269_vm10 = vcmp.eq.f32.partialorder %v10568_v28, 0.0  ;;  %v8280_v0 = vsel %vm8279_vm11, %v10568_v28, %v8278_v18  ;;  %3270 = vperm.xlu0 %8423, %v3175_v15   ;;  %v8646_v49 = vpop.eup %8645 }
 0x200   : > { %8649 = vpow2.f32 %v8294_v40  ;;  %v5079_v38 = vcombine.low %v4048_v11, %v4052_v41  ;;  %v5080_v32 = vcombine.low %v4056_v36, %v4060_v13  ;;  %vm8215_vm0 = vcmp.eq.f32.partialorder %v10562_v63, 0.0  ;;  %v3867_v20 = vpop.xlane.xlu0 %3866 }
 0x201   : > { %v8257_v4 = vand.u32 2147483648, %v10631_v34  ;;  %vm8261_vm1 = vweird.f32 %v10658_v37  ;;  %v5081_v5 = vcombine.low %v4064_v21, %v4068_v35  ;;  %v5088_v54 = vrot.slane %v5078_v50, %v9098_v48 }
 0x202   : > { %v8195_v62 = vsel %vm8179_vm9, 0.0, %v8194_v31  ;;  %v8248_v18 = vsel %vm8234_vm7, nan, %v8247_v59  ;;  %vm8263_vm2 = vcmp.eq.f32.partialorder %v10658_v37, 0.0  ;;  %v5095_v40 = vrot.slane %v5079_v38, %v9098_v48  ;;  %v8648_v27 = vpop.eup %8647 }
 0x203   : > { %v5102_v6 = vrot.slane %v5080_v32, %v9098_v48  ;;  %v8229_v57 = vsel %vm8227_vm8, %v8221_v8, %v8226_v19  ;;  %v8283_v22 = vsel %vm8281_vm12, %v8275_v3, %v8280_v0  ;;  %v10877_v55 = vand.u32 2147483647, %v10851_v23 }
 0x204   : > { %v5109_v11 = vrot.slane %v5081_v5, %v9098_v48  ;;  %vm8272_vm3 = vcmp.eq.f32.partialorder %v10594_v16, inf  ;;  %v8260_v41 = vor.u32 %v8644_v9, %v8257_v4  ;;  %v8044_v36 = vor.u32 %v8646_v49, %v8041_v25 }
 0x205   : > { %v3904_v13 = vmul.f32 0.00390625, %v3864_v26  ;;  %v5110_v31 = vcombine.low %v5088_v54, %v5095_v40  ;;  %v10885_v8 = vsel %vm8182_vm4, inf, %v8195_v62  ;;  %vm8218_vm7 = vcmp.eq.f32.partialorder %v10589_v51, inf }
 0x206   : > { %vm8036_vm5 = vcmp.lt.f32.partialorder %v10639_v17, 0.0  ;;  %vm8045_vm9 = vweird.f32 %v10663_v56  ;;  %v5111_v3 = vcombine.low %v5102_v6, %v5109_v11  ;;  %v8249_v59 = vsel %vm8233_vm15, 0.0, %v8248_v18 }
 0x207   : > { %v8230_v15 = vsel %vm8216_vm6, nan, %v8229_v57  ;;  %vm8047_vm8 = vcmp.eq.f32.partialorder %v10663_v56, 0.0  ;;  %v5118_v21 = vrot.slane %v5110_v31, %v9098_v48  ;;  %v8284_v19 = vsel %vm8270_vm14, nan, %v8283_v22  ;;  %v3870_v22 = vpop.xlane.xlu0 %3869 }
 0x208   : > { %vm8252_vm4 = vcmp.lt.f32.partialorder %v10631_v34, 0.0  ;;  %v8060_v35 = vmul.f32 0.33333334, %v8648_v27  ;;  %8651 = vlog2.f32 %v10877_v55  ;;  %v5125_v50 = vrot.slane %v5111_v3, %v9098_v48 }
 0x209   : > { %v8262_v33 = vsel %vm8261_vm1, %v10631_v34, %v8260_v41  ;;  %v8046_v9 = vsel %vm8045_vm9, %v10639_v17, %v8044_v36  ;;  %v10905_v0 = vadd.f32 1e-12, %v3904_v13  ;;  %v4136_v26 = vrot.slane %v10492_v47, %v9061_v58 }
 0x20a   : > { %vm8035_vm15 = vcmp.eq.f32.partialorder %v10639_v17, 0.0  ;;  %v5126_v38 = vcombine.low %v5118_v21, %v5125_v50  ;;  %v4140_v32 = vrot.slane %v10492_v47, %v9067_v44  ;;  %v4144_v49 = vrot.slane %v10492_v47, %v9070_v45  ;;  %v8650_v54 = vpop.eup %8649 }
 0x20b   : > { %v4148_v5 = vrot.slane %v10492_v47, %v9073_v46  ;;  %v10918_v62 = vsel %vm8236_vm13, inf, %v8249_v59  ;;  %v8231_v18 = vsel %vm8215_vm0, 0.0, %v8230_v15  ;;  %v8293_v40 = vand.u32 2147483648, %v10688_v2 }
 0x20c   : > { %vm8297_vm14 = vweird.f32 %v10712_v61  ;;  %v8285_v6 = vsel %vm8269_vm10, 0.0, %v8284_v19  ;;  %vm8251_vm6 = vcmp.eq.f32.partialorder %v10631_v34, 0.0  ;;  %v8265_v57 = vsel %vm8263_vm2, %v8257_v4, %v8262_v33  ;;  %6601 = vperm.xlu0 %8423, %v5126_v38  }
 0x20d   : > { %v8049_v60 = vsel %vm8047_vm8, %v8041_v25, %v8046_v9  ;;  %vm8299_vm11 = vcmp.eq.f32.partialorder %v10712_v61, 0.0  ;;  %8653 = vpow2.f32 %v8060_v35  ;;  %v10935_v63 = vand.u32 2147483647, %v10905_v0 }
 0x20e   : > { %v4152_v28 = vrot.slane %v10492_v47, %v9080_v52  ;;  %v4156_v11 = vrot.slane %v10492_v47, %v9083_v53  ;;  %v4160_v4 = vrot.slane %v10492_v47, %v9087_v10  ;;  %v8296_v27 = vor.u32 %v8650_v54, %v8293_v40 }
 0x20f   : > { %v4164_v25 = vrot.slane %v10492_v47, %v9090_v43  ;;  %v5225_v41 = vcombine.low %v4136_v26, %v4140_v32  ;;  %v5226_v36 = vcombine.low %v4144_v49, %v4148_v5  ;;  %v10947_v13 = vsel %vm8218_vm7, inf, %v8231_v18  ;;  %v3873_v49 = vpop.xlane.xlu0 %3872 }
 0x210   : > { %vm8038_vm12 = vcmp.eq.f32.partialorder %v10663_v56, inf  ;;  %v8059_v31 = vand.u32 2147483648, %v10767_v29  ;;  %v3905_v3 = vmul.f32 0.00390625, %v3867_v20  ;;  %v5227_v59 = vcombine.low %v4152_v28, %v4156_v11 }
 0x211   : > { %v10953_v15 = vsel %vm8272_vm3, inf, %v8285_v6  ;;  %vm8254_vm13 = vcmp.eq.f32.partialorder %v10658_v37, inf  ;;  %v5228_v21 = vcombine.low %v4160_v4, %v4164_v25  ;;  %v5235_v47 = vrot.slane %v5225_v41, %v9098_v48 }
 0x212   : > { %v5242_v19 = vrot.slane %v5226_v36, %v9098_v48  ;;  %v8266_v51 = vsel %vm8252_vm4, nan, %v8265_v57  ;;  %v8050_v35 = vsel %vm8036_vm5, nan, %v8049_v60  ;;  %8655 = vlog2.f32 %v10935_v63  ;;  %v8652_v16 = vpop.eup %8651 }
 0x213   : > { %v5249_v20 = vrot.slane %v5227_v59, %v9098_v48  ;;  %vm8288_vm10 = vcmp.lt.f32.partialorder %v10688_v2, 0.0  ;;  %v8298_v50 = vsel %vm8297_vm14, %v10688_v2, %v8296_v27  ;;  %v3906_v33 = vmul.f32 0.00390625, %v3870_v22 }
 0x214   : > { %v5256_v9 = vrot.slane %v5228_v21, %v9098_v48  ;;  %v5257_v26 = vcombine.low %v5235_v47, %v5242_v19  ;;  %vm8063_vm0 = vweird.f32 %v10788_v7  ;;  %v8311_v38 = vand.u32 2147483648, %v10851_v23 }
 0x215   : > { %v10971_v32 = vadd.f32 1e-12, %v3905_v3  ;;  %v4200_v5 = vrot.slane %v10614_v24, %v9061_v58  ;;  %v4204_v54 = vrot.slane %v10614_v24, %v9067_v44  ;;  %v4208_v57 = vrot.slane %v10614_v24, %v9070_v45 }
 0x216   : > { %v5258_v18 = vcombine.low %v5249_v20, %v5256_v9  ;;  %v5265_v6 = vrot.slane %v5257_v26, %v9098_v48  ;;  %v4212_v60 = vrot.slane %v10614_v24, %v9073_v46  ;;  %v8267_v22 = vsel %vm8251_vm6, 0.0, %v8266_v51 }
 0x217   : > { %v8051_v28 = vsel %vm8035_vm15, 0.0, %v8050_v35  ;;  %v8301_v11 = vsel %vm8299_vm11, %v8293_v40, %v8298_v50  ;;  %v8312_v4 = vmul.f32 0.33333334, %v8652_v16  ;;  %v8654_v27 = vpop.eup %8653  ;;  %v10988_v25 = vadd.f32 1e-12, %v3906_v33  ;;  %v11010_v33 = vpop.xlane.xlu0 %7013 }
 0x218   : > { %v5272_v41 = vrot.slane %v5258_v18, %v9098_v48  ;;  %v4216_v36 = vrot.slane %v10614_v24, %v9080_v52  ;;  %v4220_v3 = vrot.slane %v10614_v24, %v9083_v53  ;;  %vm8065_vm1 = vcmp.eq.f32.partialorder %v10788_v7, 0.0 }
 0x219   : > { %v10997_v34 = vand.u32 2147483647, %v10971_v32  ;;  %v4224_v17 = vrot.slane %v10614_v24, %v9087_v10  ;;  %v4228_v40 = vrot.slane %v10614_v24, %v9090_v43  ;;  %v5323_v59 = vcombine.low %v4200_v5, %v4204_v54 }
 0x21a   : > { %v5273_v21 = vcombine.low %v5265_v6, %v5272_v41  ;;  %v3907_v47 = vmul.f32 0.00390625, %v3873_v49  ;;  %v5324_v19 = vcombine.low %v4208_v57, %v4212_v60  ;;  %v5325_v51 = vcombine.low %v4216_v36, %v4220_v3 }
 0x21b   : > { %v11005_v35 = vsel %vm8254_vm13, inf, %v8267_v22  ;;  %vm8287_vm2 = vcmp.eq.f32.partialorder %v10688_v2, 0.0  ;;  %v5326_v16 = vcombine.low %v4224_v17, %v4228_v40  ;;  %v5333_v50 = vrot.slane %v5323_v59, %v9098_v48 }
 0x21c   : > { %v11014_v24 = vsel %vm8038_vm12, inf, %v8051_v28  ;;  %v8062_v9 = vor.u32 %v8654_v27, %v8059_v31  ;;  %6610 = vperm.xlu0 %8423, %v5273_v21   ;;  %v5340_v37 = vrot.slane %v5324_v19, %v9098_v48  ;;  %v5347_v26 = vrot.slane %v5325_v51, %v9098_v48  ;;  %v8656_v49 = vpop.eup %8655 }
 0x21d   : > { %v8302_v5 = vsel %vm8288_vm10, nan, %v8301_v11  ;;  %8657 = vpow2.f32 %v8312_v4  ;;  %v11023_v54 = vand.u32 2147483647, %v10988_v25  ;;  %v5354_v56 = vrot.slane %v5326_v16, %v9098_v48  ;;  %v12746_v16 = vld [vmem:[#allocation4_spill] sm:$0xff] }
 0x21e   : > { %8659 = vlog2.f32 %v10997_v34  ;;  %v11027_v18 = vadd.f32 1e-12, %v3907_v47  ;;  %v5355_v6 = vcombine.low %v5333_v50, %v5340_v37  ;;  %v7016_v57 = vrot.slane %v11010_v33, 1 }
 0x21f   : > { %vm8054_vm3 = vcmp.lt.f32.partialorder %v10767_v29, 0.0  ;;  %v5356_v60 = vcombine.low %v5347_v26, %v5354_v56  ;;  %v4264_v22 = vrot.slane %v10643_v42, %v9061_v58  ;;  %v4268_v28 = vrot.slane %v10643_v42, %v9067_v44 }
 0x220   : > { %v4272_v11 = vrot.slane %v10643_v42, %v9070_v45  ;;  %v8064_v4 = vsel %vm8063_vm0, %v10767_v29, %v8062_v9  ;;  %v8330_v27 = vmul.f32 0.33333334, %v8656_v49  ;;  %v5363_v41 = vrot.slane %v5355_v6, %v9098_v48 }
 0x221   : > { %v4276_v36 = vrot.slane %v10643_v42, %v9073_v46  ;;  %8661 = vlog2.f32 %v11023_v54  ;;  %v5370_v3 = vrot.slane %v5356_v60, %v9098_v48  ;;  %v4280_v17 = vrot.slane %v10643_v42, %v9080_v52 }
 0x222   : > { %v4284_v40 = vrot.slane %v10643_v42, %v9083_v53  ;;  %v11050_v59 = vand.u32 2147483647, %v11027_v18  ;;  %v4288_v21 = vrot.slane %v10643_v42, %v9087_v10  ;;  %v4292_v47 = vrot.slane %v10643_v42, %v9090_v43  ;;  %v12747_v42 = vld [vmem:[#allocation5_spill] sm:$0xff] }
 0x223   : > { %v5421_v19 = vcombine.low %v4264_v22, %v4268_v28  ;;  %v5371_v51 = vcombine.low %v5363_v41, %v5370_v3  ;;  %v11057_v50 = vsub.f32 %v12746_v16, %v7016_v57  ;;  %v5422_v9 = vcombine.low %v4272_v11, %v4276_v36  ;;  %v12749_v3 = vld [vmem:[#allocation2_spill] sm:$0xff] }
 0x224   : > { %v5423_v37 = vcombine.low %v4280_v17, %v4284_v40  ;;  %v8303_v26 = vsel %vm8287_vm2, 0.0, %v8302_v5  ;;  %v8067_v49 = vsel %vm8065_vm1, %v8059_v31, %v8064_v4  ;;  %v5424_v56 = vcombine.low %v4288_v21, %v4292_v47 }
 0x225   : > { %v5431_v6 = vrot.slane %v5421_v19, %v9098_v48  ;;  %vm8290_vm7 = vcmp.eq.f32.partialorder %v10712_v61, inf  ;;  %vm8053_vm5 = vcmp.eq.f32.partialorder %v10767_v29, 0.0  ;;  %8663 = vpow2.f32 %v8330_v27  ;;  %6616 = vperm.xlu0 %8423, %v5371_v51  }
 0x226   : > { %v11069_v60 = vsub.f32 %v12747_v42, %v7016_v57  ;;  %v5438_v2 = vrot.slane %v5422_v9, %v9098_v48  ;;  %v5445_v5 = vrot.slane %v5423_v37, %v9098_v48  ;;  %8665 = vlog2.f32 %v11050_v59 }
 0x227   : > { %v5452_v31 = vrot.slane %v5424_v56, %v9098_v48  ;;  %v4328_v22 = vrot.slane %v10737_v39, %v9061_v58  ;;  %v4332_v28 = vrot.slane %v10737_v39, %v9067_v44  ;;  %v8658_v11 = vpop.eup %8657  ;;  %vm8315_vm9 = vweird.f32 %v10877_v55 }
 0x228   : > { %12748 = vst [vmem:[#allocation4_spill] sm:$0xff] %v11069_v60  ;;  %v7027_v57 = vrot.slane %v11057_v50, 7  ;;  %v5453_v4 = vcombine.low %v5431_v6, %v5438_v2  ;;  %v4336_v27 = vrot.slane %v10737_v39, %v9070_v45  ;;  %v4340_v41 = vrot.slane %v10737_v39, %v9073_v46  ;;  %v8660_v36 = vpop.eup %8659 }
 0x229   : > { %vm8056_vm8 = vcmp.eq.f32.partialorder %v10788_v7, inf  ;;  %v11088_v17 = vsub.f32 %v12749_v3, %v11010_v33  ;;  %v5454_v40 = vcombine.low %v5445_v5, %v5452_v31  ;;  %v4344_v21 = vrot.slane %v10737_v39, %v9080_v52  ;;  %v12750_v5 = vld [vmem:[#allocation3_spill] sm:$0xff] }
 0x22a   : > { %v4348_v47 = vrot.slane %v10737_v39, %v9083_v53  ;;  %v7029_v19 = vrot.slane %v11069_v60, 7  ;;  %v5461_v51 = vrot.slane %v5453_v4, %v9098_v48  ;;  %v4352_v16 = vrot.slane %v10737_v39, %v9087_v10 }
 0x22b   : > { %v4356_v9 = vrot.slane %v10737_v39, %v9090_v43  ;;  %v8068_v37 = vsel %vm8054_vm3, nan, %v8067_v49  ;;  %v5468_v56 = vrot.slane %v5454_v40, %v9098_v48  ;;  %v5519_v6 = vcombine.low %v4328_v22, %v4332_v28  ;;  %v8662_v2 = vpop.eup %8661  ;;  %v3822_v39 = vpop.xlane.xlu1 %3821 }
 0x22c   : > { %v5520_v42 = vcombine.low %v4336_v27, %v4340_v41  ;;  %vm8317_vm4 = vcmp.eq.f32.partialorder %v10877_v55, 0.0  ;;  %v11106_v31 = vsub.f32 %v12750_v5, %v11010_v33  ;;  %v5521_v4 = vcombine.low %v4344_v21, %v4348_v47 }
 0x22d   : > { %v5522_v3 = vcombine.low %v4352_v16, %v4356_v9  ;;  %vm12751_vm15 = vcmask 1041409   ;;  %v8314_v49 = vor.u32 %v8658_v11, %v8311_v38  ;;  %v5469_v60 = vcombine.low %v5461_v51, %v5468_v56 }
 0x22e   : > { %v7028_v20 = vsel %vm12751_vm15, %v7027_v57, %v11088_v17  ;;  %v5529_v22 = vrot.slane %v5519_v6, %v9098_v48  ;;  %v5536_v28 = vrot.slane %v5520_v42, %v9098_v48  ;;  %v5543_v27 = vrot.slane %v5521_v4, %v9098_v48  ;;  %vm12752_vm14 = vmmov %vm12751_vm15 }
 0x22f   : > { %v5550_v41 = vrot.slane %v5522_v3, %v9098_v48  ;;  %v7030_v33 = vsel %vm12752_vm14, %v7029_v19, %v11106_v31  ;;  %vm12753_vm6 = vcmask 1041408   ;;  %v11121_v57 = vsel %vm8290_vm7, inf, %v8303_v26  ;;  %6622 = vperm.xlu0 %8423, %v5469_v60   ;;  %v8664_v51 = vpop.eup %8663 }
 0x230   : > { %v7033_v40 = vsel %vm12753_vm6, %v7028_v20, -inf  ;;  %v5551_v11 = vcombine.low %v5529_v22, %v5536_v28  ;;  %vm12754_vm11 = vmmov %vm12753_vm6  ;;  %v3890_v47 = vmul.f32 0.00390625, %v3822_v39  ;;  %v8348_v9 = vmul.f32 0.33333334, %v8660_v36  ;;  %v8666_v42 = vpop.eup %8665  ;;  %v12755_v36 = vld [vmem:[#allocation9_spill] sm:$0xff] }
 0x231   : > { %v7034_v21 = vsel %vm12754_vm11, %v7030_v33, -inf  ;;  %v5552_v56 = vcombine.low %v5543_v27, %v5550_v41  ;;  %v8069_v19 = vsel %vm8053_vm5, 0.0, %v8068_v37  ;;  %v8316_v61 = vsel %vm8315_vm9, %v10851_v23, %v8314_v49 }
 0x232   : > { %v7035_v6 = vmax.f32 %v7033_v40, %v7034_v21  ;;  %v8366_v20 = vmul.f32 0.33333334, %v8662_v2  ;;  %v5559_v26 = vrot.slane %v5551_v11, %v9098_v48  ;;  %v11132_v5 = vadd.f32 1e-12, %v3890_v47 }
 0x233   : > { %v5566_v60 = vrot.slane %v5552_v56, %v9098_v48  ;;  %v779_v4 = vrot.slane %v12755_v36, %v9061_v58  ;;  %v783_v3 = vrot.slane %v12755_v36, %v9067_v44  ;;  %v787_v29 = vrot.slane %v12755_v36, %v9070_v45 }
 0x234   : > { %7036 = vmax.xlane.f32.xlu1 %v7035_v6  ;;  %v791_v37 = vrot.slane %v12755_v36, %v9073_v46  ;;  %v795_v2 = vrot.slane %v12755_v36, %v9080_v52  ;;  %v799_v39 = vrot.slane %v12755_v36, %v9083_v53  ;;  %v8070_v49 = vsel %vm8056_vm8, inf, %v8069_v19 }
 0x235   : > { %8667 = vpow2.f32 %v8348_v9  ;;  %v5567_v22 = vcombine.low %v5559_v26, %v5566_v60  ;;  %v803_v28 = vrot.slane %v12755_v36, %v9087_v10  ;;  %v11154_v27 = vsel %vm8317_vm4, %v8311_v38, %v8316_v61 }
 0x236   : > { %v12756_v41 = vand.u32 2147483648, %v10905_v0  ;;  %8669 = vpow2.f32 %v8366_v20  ;;  %v8384_v7 = vmul.f32 0.33333334, %v8666_v42  ;;  %v11162_v11 = vand.u32 2147483647, %v11132_v5 }
 0x237   : > { %6628 = vperm.xlu0 %8423, %v5567_v22   ;;  %v807_v21 = vrot.slane %v12755_v36, %v9090_v43  ;;  %v1902_v47 = vcombine.low %v779_v4, %v783_v3  ;;  %v1903_v9 = vcombine.low %v787_v29, %v791_v37  ;;  %v1904_v56 = vcombine.low %v795_v2, %v799_v39 }
 0x238   : > { %v11158_v33 = vor.u32 %v8664_v51, %v12756_v41  ;;  %v4392_v38 = vrot.slane %v8070_v49, %v9061_v58  ;;  %v4396_v6 = vrot.slane %v8070_v49, %v9067_v44  ;;  %v4400_v61 = vrot.slane %v8070_v49, %v9070_v45 }
 0x239   : > { %v1905_v51 = vcombine.low %v803_v28, %v807_v21  ;;  %v1912_v19 = vrot.slane %v1902_v47, %v9098_v48  ;;  %v4404_v42 = vrot.slane %v8070_v49, %v9073_v46  ;;  %v1919_v20 = vrot.slane %v1903_v9, %v9098_v48  ;;  %v12757_v28 = vld [vmem:[#allocation8_spill] sm:$0xff] }
 0x23a   : > { %v1926_v26 = vrot.slane %v1904_v56, %v9098_v48  ;;  %v4408_v60 = vrot.slane %v8070_v49, %v9080_v52  ;;  %v4412_v36 = vrot.slane %v8070_v49, %v9083_v53  ;;  %v4416_v3 = vrot.slane %v8070_v49, %v9087_v10 }
 0x23b   : > { %v1933_v4 = vrot.slane %v1905_v51, %v9098_v48  ;;  %v4420_v29 = vrot.slane %v8070_v49, %v9090_v43  ;;  %v5617_v37 = vcombine.low %v4392_v38, %v4396_v6  ;;  %v1934_v2 = vcombine.low %v1912_v19, %v1919_v20 }
 0x23c   : > { %v5618_v39 = vcombine.low %v4400_v61, %v4404_v42  ;;  %v5619_v22 = vcombine.low %v4408_v60, %v4412_v36  ;;  %v811_v41 = vrot.slane %v12757_v28, %v9061_v58  ;;  %v815_v56 = vrot.slane %v12757_v28, %v9067_v44 }
 0x23d   : > { %v1935_v21 = vcombine.low %v1926_v26, %v1933_v4  ;;  %v5620_v47 = vcombine.low %v4416_v3, %v4420_v29  ;;  %v5627_v9 = vrot.slane %v5617_v37, %v9098_v48  ;;  %v1942_v51 = vrot.slane %v1934_v2, %v9098_v48 }
 0x23e   : > { %v5634_v40 = vrot.slane %v5618_v39, %v9098_v48  ;;  %v5641_v49 = vrot.slane %v5619_v22, %v9098_v48  ;;  %v819_v38 = vrot.slane %v12757_v28, %v9070_v45  ;;  %v823_v42 = vrot.slane %v12757_v28, %v9073_v46 }
 0x23f   : > { %v11188_v6 = vpop.eup %8667  ;;  %v1949_v19 = vrot.slane %v1935_v21, %v9098_v48  ;;  %v5648_v61 = vrot.slane %v5620_v47, %v9098_v48  ;;  %v827_v20 = vrot.slane %v12757_v28, %v9080_v52  ;;  %v831_v36 = vrot.slane %v12757_v28, %v9083_v53 }
 0x240   : > { %v11196_v26 = vpop.eup %8669  ;;  %v5649_v60 = vcombine.low %v5627_v9, %v5634_v40  ;;  %v835_v4 = vrot.slane %v12757_v28, %v9087_v10  ;;  %v839_v3 = vrot.slane %v12757_v28, %v9090_v43  ;;  %8671 = vpow2.f32 %v8384_v7 }
 0x241   : > { %v1950_v29 = vcombine.low %v1942_v51, %v1949_v19  ;;  %v5650_v37 = vcombine.low %v5641_v49, %v5648_v61  ;;  %v1951_v2 = vcombine.low %v811_v41, %v815_v56  ;;  %v1952_v22 = vcombine.low %v819_v38, %v823_v42 }
 0x242   : > { %v5657_v39 = vrot.slane %v5649_v60, %v9098_v48  ;;  %v1953_v21 = vcombine.low %v827_v20, %v831_v36  ;;  %v1954_v47 = vcombine.low %v835_v4, %v839_v3  ;;  %vm8306_vm12 = vcmp.lt.f32.partialorder %v10851_v23, 0.0 }
 0x243   : > { %8673 = vlog2.f32 %v11162_v11  ;;  %v5664_v40 = vrot.slane %v5650_v37, %v9098_v48  ;;  %v1961_v9 = vrot.slane %v1951_v2, %v9098_v48  ;;  %v4520_v28 = vrot.slane %v10704_v30, %v9061_v58  ;;  %v12758_v37 = vld [vmem:[#allocation10_spill] sm:$0xff] }
 0x244   : > { %v1968_v7 = vrot.slane %v1952_v22, %v9098_v48  ;;  %v1975_v41 = vrot.slane %v1953_v21, %v9098_v48  ;;  %v1982_v56 = vrot.slane %v1954_v47, %v9098_v48  ;;  %v4524_v51 = vrot.slane %v10704_v30, %v9067_v44 }
 0x245   : > { %3195 = vperm.xlu1 %8424, %v1950_v29   ;;  %v5665_v49 = vcombine.low %v5657_v39, %v5664_v40  ;;  %v4528_v38 = vrot.slane %v10704_v30, %v9070_v45  ;;  %v4532_v19 = vrot.slane %v10704_v30, %v9073_v46  ;;  %v4536_v61 = vrot.slane %v10704_v30, %v9080_v52 }
 0x246   : > { %vm8305_vm13 = vcmp.eq.f32.partialorder %v10851_v23, 0.0  ;;  %vm8333_vm10 = vweird.f32 %v10935_v63  ;;  %v1983_v42 = vcombine.low %v1961_v9, %v1968_v7  ;;  %v1984_v20 = vcombine.low %v1975_v41, %v1982_v56 }
 0x247   : > { %v4540_v60 = vrot.slane %v10704_v30, %v9083_v53  ;;  %v4544_v36 = vrot.slane %v10704_v30, %v9087_v10  ;;  %6634 = vperm.xlu0 %8423, %v5665_v49   ;;  %v4548_v4 = vrot.slane %v10704_v30, %v9090_v43  ;;  %v5813_v3 = vcombine.low %v4520_v28, %v4524_v51  ;;  %v3825_v49 = vpop.xlane.xlu1 %3824 }
 0x248   : > { %v5814_v29 = vcombine.low %v4528_v38, %v4532_v19  ;;  %v843_v2 = vrot.slane %v12758_v37, %v9061_v58  ;;  %v1991_v39 = vrot.slane %v1983_v42, %v9098_v48  ;;  %v1998_v22 = vrot.slane %v1984_v20, %v9098_v48 }
 0x249   : > { %v5815_v21 = vcombine.low %v4536_v61, %v4540_v60  ;;  %v847_v47 = vrot.slane %v12758_v37, %v9067_v44  ;;  %v5816_v40 = vcombine.low %v4544_v36, %v4548_v4  ;;  %v5823_v9 = vrot.slane %v5813_v3, %v9098_v48 }
 0x24a   : > { %v5830_v7 = vrot.slane %v5814_v29, %v9098_v48  ;;  %v851_v30 = vrot.slane %v12758_v37, %v9070_v45  ;;  %vm8308_vm0 = vcmp.eq.f32.partialorder %v10877_v55, inf  ;;  %vm8335_vm1 = vcmp.eq.f32.partialorder %v10935_v63, 0.0  ;;  %v8672_v38 = vpop.eup %8671 }
 0x24b   : > { %v1999_v28 = vcombine.low %v1991_v39, %v1998_v22  ;;  %v5837_v41 = vrot.slane %v5815_v21, %v9098_v48  ;;  %v855_v56 = vrot.slane %v12758_v37, %v9073_v46  ;;  %v859_v51 = vrot.slane %v12758_v37, %v9080_v52 }
 0x24c   : > { %vm8351_vm2 = vweird.f32 %v10997_v34  ;;  %v5844_v19 = vrot.slane %v5816_v40, %v9098_v48  ;;  %v5845_v61 = vcombine.low %v5823_v9, %v5830_v7  ;;  %v863_v42 = vrot.slane %v12758_v37, %v9083_v53 }
 0x24d   : > { %v867_v20 = vrot.slane %v12758_v37, %v9087_v10  ;;  %v8320_v60 = vsel %vm8306_vm12, nan, %v11154_v27  ;;  %3198 = vperm.xlu1 %8424, %v1999_v28   ;;  %v871_v36 = vrot.slane %v12758_v37, %v9090_v43  ;;  %v2000_v4 = vcombine.low %v843_v2, %v847_v47  ;;  %v8674_v29 = vpop.eup %8673 }
 0x24e   : > { %v2001_v3 = vcombine.low %v851_v30, %v855_v56  ;;  %v5846_v39 = vcombine.low %v5837_v41, %v5844_v19  ;;  %v5853_v22 = vrot.slane %v5845_v61, %v9098_v48  ;;  %v2002_v21 = vcombine.low %v859_v51, %v863_v42 }
 0x24f   : > { %v3891_v40 = vmul.f32 0.00390625, %v3825_v49  ;;  %vm8369_vm3 = vweird.f32 %v11023_v54  ;;  %v2003_v9 = vcombine.low %v867_v20, %v871_v36  ;;  %v2010_v7 = vrot.slane %v2000_v4, %v9098_v48 }
 0x250   : > { %v2017_v16 = vrot.slane %v2001_v3, %v9098_v48  ;;  %v8321_v27 = vsel %vm8305_vm13, 0.0, %v8320_v60  ;;  %v8334_v37 = vsel %vm8333_vm10, %v10905_v0, %v11158_v33  ;;  %v5860_v2 = vrot.slane %v5846_v39, %v9098_v48 }
 0x251   : > { %v2024_v47 = vrot.slane %v2002_v21, %v9098_v48  ;;  %v12759_v30 = vand.u32 2147483648, %v10971_v32  ;;  %v12760_v41 = vand.u32 2147483648, %v10988_v25  ;;  %v2031_v23 = vrot.slane %v2003_v9, %v9098_v48 }
 0x252   : > { %v2032_v51 = vcombine.low %v2010_v7, %v2017_v16  ;;  %v8383_v49 = vand.u32 2147483648, %v11027_v18  ;;  %v5861_v19 = vcombine.low %v5853_v22, %v5860_v2  ;;  %v11278_v61 = vadd.f32 1e-12, %v3891_v40 }
 0x253   : > { %v8350_v28 = vor.u32 %v11188_v6, %v12759_v30  ;;  %v8368_v56 = vor.u32 %v11196_v26, %v12760_v41  ;;  %v4552_v33 = vrot.slane %v10797_v1, %v9061_v58  ;;  %vm8324_vm7 = vcmp.lt.f32.partialorder %v10905_v0, 0.0 }
 0x254   : > { %v2033_v42 = vcombine.low %v2024_v47, %v2031_v23  ;;  %v2040_v6 = vrot.slane %v2032_v51, %v9098_v48  ;;  %v4556_v20 = vrot.slane %v10797_v1, %v9067_v44  ;;  %v4560_v26 = vrot.slane %v10797_v1, %v9070_v45  ;;  %6646 = vperm.xlu0 %8423, %v5861_v19  }
 0x255   : > { %v11290_v16 = vsel %vm8308_vm0, inf, %v8321_v27  ;;  %v12761_v60 = vand.u32 2147483648, %v10905_v0  ;;  %v4564_v4 = vrot.slane %v10797_v1, %v9073_v46  ;;  %v4568_v3 = vrot.slane %v10797_v1, %v9080_v52 }
 0x256   : > { %v8352_v39 = vsel %vm8351_vm2, %v10971_v32, %v8350_v28  ;;  %vm8353_vm5 = vcmp.eq.f32.partialorder %v10997_v34, 0.0  ;;  %v8370_v55 = vsel %vm8369_vm3, %v10988_v25, %v8368_v56  ;;  %vm8371_vm9 = vcmp.eq.f32.partialorder %v11023_v54, 0.0  ;;  %v12762_v28 = vld [vmem:[#allocation12_spill] sm:$0xff] }
 0x257   : > { %v8337_v36 = vsel %vm8335_vm1, %v12761_v60, %v8334_v37  ;;  %v8386_v22 = vor.u32 %v8672_v38, %v8383_v49  ;;  %v2047_v21 = vrot.slane %v2033_v42, %v9098_v48  ;;  %vm8387_vm8 = vweird.f32 %v11050_v59 }
 0x258   : > { %v8078_v40 = vmul.f32 0.33333334, %v8674_v29  ;;  %v11313_v9 = vand.u32 2147483647, %v11278_v61  ;;  %v4572_v7 = vrot.slane %v10797_v1, %v9083_v53  ;;  %v4576_v27 = vrot.slane %v10797_v1, %v9087_v10 }
 0x259   : > { %v2048_v37 = vcombine.low %v2040_v6, %v2047_v21  ;;  %v4580_v2 = vrot.slane %v10797_v1, %v9090_v43  ;;  %v5862_v47 = vcombine.low %v4552_v33, %v4556_v20  ;;  %v5863_v38 = vcombine.low %v4560_v26, %v4564_v4 }
 0x25a   : > { %v5864_v30 = vcombine.low %v4568_v3, %v4572_v7  ;;  %v907_v41 = vrot.slane %v12762_v28, %v9061_v58  ;;  %v911_v29 = vrot.slane %v12762_v28, %v9067_v44  ;;  %v915_v56 = vrot.slane %v12762_v28, %v9070_v45 }
 0x25b   : > { %vm8323_vm4 = vcmp.eq.f32.partialorder %v10905_v0, 0.0  ;;  %3201 = vperm.xlu1 %8424, %v2048_v37   ;;  %v5865_v23 = vcombine.low %v4576_v27, %v4580_v2  ;;  %v5872_v51 = vrot.slane %v5862_v47, %v9098_v48  ;;  %v5879_v1 = vrot.slane %v5863_v38, %v9098_v48 }
 0x25c   : > { %v919_v19 = vrot.slane %v12762_v28, %v9073_v46  ;;  %vm8342_vm15 = vcmp.lt.f32.partialorder %v10971_v32, 0.0  ;;  %vm8360_vm14 = vcmp.lt.f32.partialorder %v10988_v25, 0.0  ;;  %vm8389_vm6 = vcmp.eq.f32.partialorder %v11050_v59, 0.0 }
 0x25d   : > { %v5886_v33 = vrot.slane %v5864_v30, %v9098_v48  ;;  %v923_v42 = vrot.slane %v12762_v28, %v9080_v52  ;;  %v927_v6 = vrot.slane %v12762_v28, %v9083_v53  ;;  %v931_v20 = vrot.slane %v12762_v28, %v9087_v10  ;;  %v3828_v30 = vpop.xlane.xlu1 %3827 }
 0x25e   : > { %v5893_v26 = vrot.slane %v5865_v23, %v9098_v48  ;;  %v5894_v60 = vcombine.low %v5872_v51, %v5879_v1  ;;  %v935_v4 = vrot.slane %v12762_v28, %v9090_v43  ;;  %v2098_v3 = vcombine.low %v907_v41, %v911_v29 }
 0x25f   : > { %v8338_v21 = vsel %vm8324_vm7, nan, %v8337_v36  ;;  %8675 = vlog2.f32 %v11313_v9  ;;  %v2099_v7 = vcombine.low %v915_v56, %v919_v19  ;;  %v2100_v27 = vcombine.low %v923_v42, %v927_v6 }
 0x260   : > { %v5895_v37 = vcombine.low %v5886_v33, %v5893_v26  ;;  %v5902_v2 = vrot.slane %v5894_v60, %v9098_v48  ;;  %v2101_v47 = vcombine.low %v931_v20, %v935_v4  ;;  %v2108_v38 = vrot.slane %v2098_v3, %v9098_v48 }
 0x261   : > { %v12763_v23 = vand.u32 2147483648, %v10971_v32  ;;  %v12764_v41 = vand.u32 2147483648, %v10988_v25  ;;  %v2115_v29 = vrot.slane %v2099_v7, %v9098_v48  ;;  %v2122_v56 = vrot.slane %v2100_v27, %v9098_v48 }
 0x262   : > { %v8388_v51 = vsel %vm8387_vm8, %v11027_v18, %v8386_v22  ;;  %8677 = vpow2.f32 %v8078_v40  ;;  %v5909_v1 = vrot.slane %v5895_v37, %v9098_v48  ;;  %v2129_v19 = vrot.slane %v2101_v47, %v9098_v48 }
 0x263   : > { %v8355_v28 = vsel %vm8353_vm5, %v12763_v23, %v8352_v39  ;;  %v8373_v36 = vsel %vm8371_vm9, %v12764_v41, %v8370_v55  ;;  %v2130_v33 = vcombine.low %v2108_v38, %v2115_v29  ;;  %v3892_v39 = vmul.f32 0.00390625, %v3828_v30 }
 0x264   : > { %v4584_v42 = vrot.slane %v10749_v12, %v9061_v58  ;;  %v4588_v55 = vrot.slane %v10749_v12, %v9067_v44  ;;  %v5910_v6 = vcombine.low %v5902_v2, %v5909_v1  ;;  %v2131_v20 = vcombine.low %v2122_v56, %v2129_v19 }
 0x265   : > { %v4592_v26 = vrot.slane %v10749_v12, %v9070_v45  ;;  %v4596_v22 = vrot.slane %v10749_v12, %v9073_v46  ;;  %v11375_v40 = vsel %vm8323_vm4, 0.0, %v8338_v21  ;;  %v2138_v60 = vrot.slane %v2130_v33, %v9098_v48 }
 0x266   : > { %v4600_v4 = vrot.slane %v10749_v12, %v9080_v52  ;;  %v4604_v3 = vrot.slane %v10749_v12, %v9083_v53  ;;  %vm8341_vm11 = vcmp.eq.f32.partialorder %v10971_v32, 0.0  ;;  %v8356_v7 = vsel %vm8342_vm15, nan, %v8355_v28  ;;  %6649 = vperm.xlu0 %8423, %v5910_v6  }
 0x267   : > { %v8374_v27 = vsel %vm8360_vm14, nan, %v8373_v36  ;;  %v8391_v0 = vsel %vm8389_vm6, %v8383_v49, %v8388_v51  ;;  %v2145_v21 = vrot.slane %v2131_v20, %v9098_v48  ;;  %vm8359_vm12 = vcmp.eq.f32.partialorder %v10988_v25, 0.0  ;;  %v12765_v49 = vld [vmem:[#allocation13_spill] sm:$0xff] }
 0x268   : > { %vm8378_vm13 = vcmp.lt.f32.partialorder %v11027_v18, 0.0  ;;  %v11394_v37 = vadd.f32 1e-12, %v3892_v39  ;;  %v4608_v2 = vrot.slane %v10749_v12, %v9087_v10  ;;  %v4612_v47 = vrot.slane %v10749_v12, %v9090_v43 }
 0x269   : > { %v5911_v38 = vcombine.low %v4584_v42, %v4588_v55  ;;  %v2146_v30 = vcombine.low %v2138_v60, %v2145_v21  ;;  %v5912_v23 = vcombine.low %v4592_v26, %v4596_v22  ;;  %v5913_v28 = vcombine.low %v4600_v4, %v4604_v3  ;;  %v8676_v36 = vpop.eup %8675 }
 0x26a   : > { %v971_v41 = vrot.slane %v12765_v49, %v9061_v58  ;;  %vm8326_vm10 = vcmp.eq.f32.partialorder %v10935_v63, inf  ;;  %vm8344_vm0 = vcmp.eq.f32.partialorder %v10997_v34, inf  ;;  %v5914_v29 = vcombine.low %v4608_v2, %v4612_v47 }
 0x26b   : > { %v5921_v56 = vrot.slane %v5911_v38, %v9098_v48  ;;  %v975_v51 = vrot.slane %v12765_v49, %v9067_v44  ;;  %v979_v12 = vrot.slane %v12765_v49, %v9070_v45  ;;  %3207 = vperm.xlu1 %8424, %v2146_v30   ;;  %v5928_v1 = vrot.slane %v5912_v23, %v9098_v48 }
 0x26c   : > { %v5935_v19 = vrot.slane %v5913_v28, %v9098_v48  ;;  %v983_v33 = vrot.slane %v12765_v49, %v9073_v46  ;;  %v987_v39 = vrot.slane %v12765_v49, %v9080_v52  ;;  %vm8362_vm1 = vcmp.eq.f32.partialorder %v11023_v54, inf  ;;  %v8678_v26 = vpop.eup %8677 }
 0x26d   : > { %vm8377_vm2 = vcmp.eq.f32.partialorder %v11027_v18, 0.0  ;;  %v5942_v42 = vrot.slane %v5914_v29, %v9098_v48  ;;  %v991_v55 = vrot.slane %v12765_v49, %v9083_v53  ;;  %v995_v6 = vrot.slane %v12765_v49, %v9087_v10 }
 0x26e   : > { %v999_v20 = vrot.slane %v12765_v49, %v9090_v43  ;;  %v8077_v22 = vand.u32 2147483648, %v11132_v5  ;;  %v5943_v60 = vcombine.low %v5921_v56, %v5928_v1  ;;  %v2196_v4 = vcombine.low %v971_v41, %v975_v51 }
 0x26f   : > { %v2197_v3 = vcombine.low %v979_v12, %v983_v33  ;;  %v8096_v21 = vmul.f32 0.33333334, %v8676_v36  ;;  %v5944_v2 = vcombine.low %v5935_v19, %v5942_v42  ;;  %v2198_v47 = vcombine.low %v987_v39, %v991_v55  ;;  %v3876_v39 = vpop.xlane.xlu1 %3875 }
 0x270   : > { %v2199_v38 = vcombine.low %v995_v6, %v999_v20  ;;  %v11426_v30 = vand.u32 2147483647, %v11394_v37  ;;  %v5951_v23 = vrot.slane %v5943_v60, %v9098_v48  ;;  %v2206_v28 = vrot.slane %v2196_v4, %v9098_v48 }
 0x271   : > { %v2213_v29 = vrot.slane %v2197_v3, %v9098_v48  ;;  %v8357_v49 = vsel %vm8341_vm11, 0.0, %v8356_v7  ;;  %v5958_v56 = vrot.slane %v5944_v2, %v9098_v48  ;;  %v2220_v41 = vrot.slane %v2198_v47, %v9098_v48 }
 0x272   : > { %v2227_v36 = vrot.slane %v2199_v38, %v9098_v48  ;;  %v8375_v51 = vsel %vm8359_vm12, 0.0, %v8374_v27  ;;  %v8392_v12 = vsel %vm8378_vm13, nan, %v8391_v0  ;;  %v8080_v1 = vor.u32 %v8678_v26, %v8077_v22  ;;  %v12766_v38 = vld [vmem:[#allocation14_spill] sm:$0xff] }
 0x273   : > { %v2228_v19 = vcombine.low %v2206_v28, %v2213_v29  ;;  %vm8081_vm3 = vweird.f32 %v11162_v11  ;;  %8679 = vpow2.f32 %v8096_v21  ;;  %v5959_v32 = vcombine.low %v5951_v23, %v5958_v56 }
 0x274   : > { %v2229_v7 = vcombine.low %v2220_v41, %v2227_v36  ;;  %v11446_v33 = vsel %vm8326_vm10, inf, %v11375_v40  ;;  %v11450_v25 = vsel %vm8344_vm0, inf, %v8357_v49  ;;  %8681 = vlog2.f32 %v11426_v30 }
 0x275   : > { %v2236_v27 = vrot.slane %v2228_v19, %v9098_v48  ;;  %vm8380_vm7 = vcmp.eq.f32.partialorder %v11050_v59, inf  ;;  %6652 = vperm.xlu0 %8423, %v5959_v32   ;;  %v4616_v42 = vrot.slane %v10885_v8, %v9061_v58  ;;  %v4620_v63 = vrot.slane %v10885_v8, %v9067_v44 }
 0x276   : > { %v2243_v0 = vrot.slane %v2229_v7, %v9098_v48  ;;  %v4624_v34 = vrot.slane %v10885_v8, %v9070_v45  ;;  %v11464_v40 = vsel %vm8362_vm1, inf, %v8375_v51  ;;  %v8393_v55 = vsel %vm8377_vm2, 0.0, %v8392_v12 }
 0x277   : > { %v8082_v6 = vsel %vm8081_vm3, %v11132_v5, %v8080_v1  ;;  %vm8083_vm5 = vcmp.eq.f32.partialorder %v11162_v11, 0.0  ;;  %v8095_v20 = vand.u32 2147483648, %v11278_v61  ;;  %v4628_v60 = vrot.slane %v10885_v8, %v9073_v46 }
 0x278   : > { %v2244_v26 = vcombine.low %v2236_v27, %v2243_v0  ;;  %v4632_v54 = vrot.slane %v10885_v8, %v9080_v52  ;;  %vm8072_vm9 = vcmp.lt.f32.partialorder %v11132_v5, 0.0  ;;  %v3908_v4 = vmul.f32 0.00390625, %v3876_v39 }
 0x279   : > { %v4636_v18 = vrot.slane %v10885_v8, %v9083_v53  ;;  %v4640_v3 = vrot.slane %v10885_v8, %v9087_v10  ;;  %v4644_v21 = vrot.slane %v10885_v8, %v9090_v43  ;;  %v5960_v2 = vcombine.low %v4616_v42, %v4620_v63 }
 0x27a   : > { %3213 = vperm.xlu1 %8424, %v2244_v26   ;;  %v5961_v47 = vcombine.low %v4624_v34, %v4628_v60  ;;  %v1035_v23 = vrot.slane %v12766_v38, %v9061_v58  ;;  %v1039_v28 = vrot.slane %v12766_v38, %v9067_v44  ;;  %v1043_v56 = vrot.slane %v12766_v38, %v9070_v45 }
 0x27b   : > { %v5962_v29 = vcombine.low %v4632_v54, %v4636_v18  ;;  %v5963_v49 = vcombine.low %v4640_v3, %v4644_v21  ;;  %v1047_v41 = vrot.slane %v12766_v38, %v9073_v46  ;;  %v5970_v36 = vrot.slane %v5960_v2, %v9098_v48 }
 0x27c   : > { %v5977_v8 = vrot.slane %v5961_v47, %v9098_v48  ;;  %v1051_v51 = vrot.slane %v12766_v38, %v9080_v52  ;;  %v1055_v12 = vrot.slane %v12766_v38, %v9083_v53  ;;  %v1059_v32 = vrot.slane %v12766_v38, %v9087_v10 }
 0x27d   : > { %v5984_v1 = vrot.slane %v5962_v29, %v9098_v48  ;;  %v5991_v19 = vrot.slane %v5963_v49, %v9098_v48  ;;  %v1063_v7 = vrot.slane %v12766_v38, %v9090_v43  ;;  %v8680_v27 = vpop.eup %8679  ;;  %v2294_v39 = vcombine.low %v1035_v23, %v1039_v28 }
 0x27e   : > { %v5992_v0 = vcombine.low %v5970_v36, %v5977_v8  ;;  %v2295_v42 = vcombine.low %v1043_v56, %v1047_v41  ;;  %v2296_v63 = vcombine.low %v1051_v51, %v1055_v12  ;;  %v8682_v34 = vpop.eup %8681  ;;  %v11506_v26 = vsel %vm8380_vm7, inf, %v8393_v55 }
 0x27f   : > { %v8085_v60 = vsel %vm8083_vm5, %v8077_v22, %v8082_v6  ;;  %v5993_v54 = vcombine.low %v5984_v1, %v5991_v19  ;;  %v2297_v18 = vcombine.low %v1059_v32, %v1063_v7  ;;  %v2304_v21 = vrot.slane %v2294_v39, %v9098_v48 }
 0x280   : > { %v6000_v3 = vrot.slane %v5992_v0, %v9098_v48  ;;  %v2311_v2 = vrot.slane %v2295_v42, %v9098_v48  ;;  %v2318_v47 = vrot.slane %v2296_v63, %v9098_v48  ;;  %vm8099_vm8 = vweird.f32 %v11313_v9 }
 0x281   : > { %v11517_v59 = vadd.f32 1e-12, %v3908_v4  ;;  %v6007_v55 = vrot.slane %v5993_v54, %v9098_v48  ;;  %v2325_v38 = vrot.slane %v2297_v18, %v9098_v48  ;;  %v8098_v22 = vor.u32 %v8680_v27, %v8095_v20  ;;  %v12767_v54 = vld [vmem:[#allocation16_spill] sm:$0xff] }
 0x282   : > { %v2326_v6 = vcombine.low %v2304_v21, %v2311_v2  ;;  %v4648_v23 = vrot.slane %v10833_v14, %v9061_v58  ;;  %v4652_v28 = vrot.slane %v10833_v14, %v9067_v44  ;;  %vm8071_vm4 = vcmp.eq.f32.partialorder %v11132_v5, 0.0 }
 0x283   : > { %v8114_v29 = vmul.f32 0.33333334, %v8682_v34  ;;  %v6008_v49 = vcombine.low %v6000_v3, %v6007_v55  ;;  %v2327_v4 = vcombine.low %v2318_v47, %v2325_v38  ;;  %v4656_v56 = vrot.slane %v10833_v14, %v9070_v45 }
 0x284   : > { %v8086_v41 = vsel %vm8072_vm9, nan, %v8085_v60  ;;  %vm8101_vm15 = vcmp.eq.f32.partialorder %v11313_v9, 0.0  ;;  %v2334_v36 = vrot.slane %v2326_v6, %v9098_v48  ;;  %v4660_v8 = vrot.slane %v10833_v14, %v9073_v46 }
 0x285   : > { %v11537_v51 = vand.u32 2147483647, %v11517_v59  ;;  %6655 = vperm.xlu0 %8423, %v6008_v49   ;;  %v2341_v12 = vrot.slane %v2327_v4, %v9098_v48  ;;  %v4664_v1 = vrot.slane %v10833_v14, %v9080_v52  ;;  %v4668_v19 = vrot.slane %v10833_v14, %v9083_v53 }
 0x286   : > { %v8100_v32 = vsel %vm8099_vm8, %v11278_v61, %v8098_v22  ;;  %v4672_v7 = vrot.slane %v10833_v14, %v9087_v10  ;;  %v4676_v27 = vrot.slane %v10833_v14, %v9090_v43  ;;  %v6009_v0 = vcombine.low %v4648_v23, %v4652_v28 }
 0x287   : > { %vm8074_vm14 = vcmp.eq.f32.partialorder %v11162_v11, inf  ;;  %8683 = vpow2.f32 %v8114_v29  ;;  %v2342_v39 = vcombine.low %v2334_v36, %v2341_v12  ;;  %v6010_v42 = vcombine.low %v4656_v56, %v4660_v8 }
 0x288   : > { %v6011_v63 = vcombine.low %v4664_v1, %v4668_v19  ;;  %v6012_v34 = vcombine.low %v4672_v7, %v4676_v27  ;;  %v6019_v60 = vrot.slane %v6009_v0, %v9098_v48  ;;  %v1099_v18 = vrot.slane %v12767_v54, %v9061_v58 }
 0x289   : > { %v1103_v3 = vrot.slane %v12767_v54, %v9067_v44  ;;  %vm8089_vm6 = vcmp.eq.f32.partialorder %v11278_v61, 0.0  ;;  %3219 = vperm.xlu1 %8424, %v2342_v39   ;;  %v6026_v14 = vrot.slane %v6010_v42, %v9098_v48  ;;  %v1107_v2 = vrot.slane %v12767_v54, %v9070_v45 }
 0x28a   : > { %v6033_v21 = vrot.slane %v6011_v63, %v9098_v48  ;;  %v1111_v47 = vrot.slane %v12767_v54, %v9073_v46  ;;  %v6040_v55 = vrot.slane %v6012_v34, %v9098_v48  ;;  %v1115_v38 = vrot.slane %v12767_v54, %v9080_v52 }
 0x28b   : > { %v1119_v22 = vrot.slane %v12767_v54, %v9083_v53  ;;  %v1123_v6 = vrot.slane %v12767_v54, %v9087_v10  ;;  %v6041_v23 = vcombine.low %v6019_v60, %v6026_v14  ;;  %v1127_v28 = vrot.slane %v12767_v54, %v9090_v43 }
 0x28c   : > { %v2392_v29 = vcombine.low %v1099_v18, %v1103_v3  ;;  %v2393_v49 = vcombine.low %v1107_v2, %v1111_v47  ;;  %vm8090_vm11 = vcmp.lt.f32.partialorder %v11278_v61, 0.0  ;;  %8685 = vlog2.f32 %v11537_v51 }
 0x28d   : > { %v6042_v4 = vcombine.low %v6033_v21, %v6040_v55  ;;  %v2394_v56 = vcombine.low %v1115_v38, %v1119_v22  ;;  %v6049_v36 = vrot.slane %v6041_v23, %v9098_v48  ;;  %v2395_v8 = vcombine.low %v1123_v6, %v1127_v28 }
 0x28e   : > { %v2402_v12 = vrot.slane %v2392_v29, %v9098_v48  ;;  %v2409_v1 = vrot.slane %v2393_v49, %v9098_v48  ;;  %v8087_v19 = vsel %vm8071_vm4, 0.0, %v8086_v41  ;;  %v8103_v7 = vsel %vm8101_vm15, %v8095_v20, %v8100_v32  ;;  %v12768_v29 = vld [vmem:[#allocation11_spill] sm:$0xff] }
 0x28f   : > { %v6056_v27 = vrot.slane %v6042_v4, %v9098_v48  ;;  %v2416_v0 = vrot.slane %v2394_v56, %v9098_v48  ;;  %v2423_v39 = vrot.slane %v2395_v8, %v9098_v48  ;;  %v4680_v63 = vrot.slane %v10947_v13, %v9061_v58 }
 0x290   : > { %v2424_v42 = vcombine.low %v2402_v12, %v2409_v1  ;;  %v4684_v34 = vrot.slane %v10947_v13, %v9067_v44  ;;  %v8113_v5 = vand.u32 2147483648, %v11394_v37  ;;  %v4688_v60 = vrot.slane %v10947_v13, %v9070_v45 }
 0x291   : > { %v6057_v41 = vcombine.low %v6049_v36, %v6056_v27  ;;  %v4692_v20 = vrot.slane %v10947_v13, %v9073_v46  ;;  %v8684_v32 = vpop.eup %8683  ;;  %v8104_v54 = vsel %vm8090_vm11, nan, %v8103_v7  ;;  %v2425_v18 = vcombine.low %v2416_v0, %v2423_v39 }
 0x292   : > { %v2432_v3 = vrot.slane %v2424_v42, %v9098_v48  ;;  %v4696_v14 = vrot.slane %v10947_v13, %v9080_v52  ;;  %v11603_v21 = vsel %vm8074_vm14, inf, %v8087_v19  ;;  %vm8117_vm12 = vweird.f32 %v11426_v30 }
 0x293   : > { %6658 = vperm.xlu0 %8423, %v6057_v41   ;;  %v4700_v2 = vrot.slane %v10947_v13, %v9083_v53  ;;  %v4704_v47 = vrot.slane %v10947_v13, %v9087_v10  ;;  %v8401_v55 = vand.u32 2147483648, %v11517_v59  ;;  %v2439_v38 = vrot.slane %v2425_v18, %v9098_v48 }
 0x294   : > { %v4708_v22 = vrot.slane %v10947_v13, %v9090_v43  ;;  %v6058_v6 = vcombine.low %v4680_v63, %v4684_v34  ;;  %v11616_v11 = vsel %vm8089_vm6, 0.0, %v8104_v54  ;;  %vm8119_vm13 = vcmp.eq.f32.partialorder %v11426_v30, 0.0 }
 0x295   : > { %v6059_v23 = vcombine.low %v4688_v60, %v4692_v20  ;;  %v6060_v28 = vcombine.low %v4696_v14, %v4700_v2  ;;  %v1163_v49 = vrot.slane %v12768_v29, %v9061_v58  ;;  %v8116_v4 = vor.u32 %v8684_v32, %v8113_v5 }
 0x296   : > { %v2440_v56 = vcombine.low %v2432_v3, %v2439_v38  ;;  %v6061_v36 = vcombine.low %v4704_v47, %v4708_v22  ;;  %v6068_v8 = vrot.slane %v6058_v6, %v9098_v48  ;;  %v8686_v13 = vpop.eup %8685  ;;  %v1167_v1 = vrot.slane %v12768_v29, %v9067_v44 }
 0x297   : > { %v6075_v12 = vrot.slane %v6059_v23, %v9098_v48  ;;  %v6082_v61 = vrot.slane %v6060_v28, %v9098_v48  ;;  %v1171_v19 = vrot.slane %v12768_v29, %v9070_v45  ;;  %v1175_v27 = vrot.slane %v12768_v29, %v9073_v46 }
 0x298   : > { %3225 = vperm.xlu1 %8424, %v2440_v56   ;;  %v6089_v7 = vrot.slane %v6061_v36, %v9098_v48  ;;  %v1179_v0 = vrot.slane %v12768_v29, %v9080_v52  ;;  %v1183_v39 = vrot.slane %v12768_v29, %v9083_v53  ;;  %v1187_v63 = vrot.slane %v12768_v29, %v9087_v10 }
 0x299   : > { %v6090_v42 = vcombine.low %v6068_v8, %v6075_v12  ;;  %v1191_v34 = vrot.slane %v12768_v29, %v9090_v43  ;;  %v2490_v41 = vcombine.low %v1163_v49, %v1167_v1  ;;  %v8402_v60 = vmul.f32 0.33333334, %v8686_v13 }
 0x29a   : > { %v6091_v20 = vcombine.low %v6082_v61, %v6089_v7  ;;  %v2491_v32 = vcombine.low %v1171_v19, %v1175_v27  ;;  %v2492_v54 = vcombine.low %v1179_v0, %v1183_v39  ;;  %vm8092_vm10 = vcmp.eq.f32.partialorder %v11313_v9, inf  ;;  %v12771_v9 = vld [vmem:[#allocation6_spill] sm:$0xff] }
 0x29b   : > { %vm8108_vm0 = vcmp.lt.f32.partialorder %v11394_v37, 0.0  ;;  %v12769_v18 = vlaneseq  ;;  %v6098_v14 = vrot.slane %v6090_v42, %v9098_v48  ;;  %v2493_v2 = vcombine.low %v1187_v63, %v1191_v34  ;;  %v12770_v34 = vld [vmem:[#allocation17_spill] sm:$0xff] }
 0x29c   : > { %v2500_v47 = vrot.slane %v2490_v41, %v9098_v48  ;;  %v8118_v38 = vsel %vm8117_vm12, %v11394_v37, %v8116_v4  ;;  %v6105_v22 = vrot.slane %v6091_v20, %v9098_v48  ;;  %v2507_v6 = vrot.slane %v2491_v32, %v9098_v48 }
 0x29d   : > { %v11644_v3 = vand.u32 127, %v12769_v18  ;;  %v2514_v23 = vrot.slane %v2492_v54, %v9098_v48  ;;  %v2521_v28 = vrot.slane %v2493_v2, %v9098_v48  ;;  %v4712_v29 = vrot.slane %v10918_v62, %v9061_v58 }
 0x29e   : > { %v4716_v49 = vrot.slane %v10918_v62, %v9067_v44  ;;  %v4720_v56 = vrot.slane %v10918_v62, %v9070_v45  ;;  %8687 = vpow2.f32 %v8402_v60  ;;  %v6106_v36 = vcombine.low %v6098_v14, %v6105_v22 }
 0x29f   : > { %v2522_v4 = vcombine.low %v2500_v47, %v2507_v6  ;;  %v4724_v8 = vrot.slane %v10918_v62, %v9073_v46  ;;  %vm8107_vm1 = vcmp.eq.f32.partialorder %v11394_v37, 0.0  ;;  %v2523_v13 = vcombine.low %v2514_v23, %v2521_v28 }
 0x2a0   : > { %v4728_v12 = vrot.slane %v10918_v62, %v9080_v52  ;;  %v4732_v61 = vrot.slane %v10918_v62, %v9083_v53  ;;  %v4736_v1 = vrot.slane %v10918_v62, %v9087_v10  ;;  %v8121_v19 = vsel %vm8119_vm13, %v8113_v5, %v8118_v38  ;;  %6661 = vperm.xlu0 %8423, %v6106_v36  }
 0x2a1   : > { %v2530_v7 = vrot.slane %v2522_v4, %v9098_v48  ;;  %v4740_v27 = vrot.slane %v10918_v62, %v9090_v43  ;;  %v6107_v0 = vcombine.low %v4712_v29, %v4716_v49  ;;  %v2537_v39 = vrot.slane %v2523_v13, %v9098_v48  ;;  %v11705_v13 = vpop.permute.xlu0 %3177 }
 0x2a2   : > { %v6108_v42 = vcombine.low %v4720_v56, %v4724_v8  ;;  %v6109_v63 = vcombine.low %v4728_v12, %v4732_v61  ;;  %v1227_v41 = vrot.slane %v12770_v34, %v9061_v58  ;;  %v1231_v5 = vrot.slane %v12770_v34, %v9067_v44 }
 0x2a3   : > { %v6110_v60 = vcombine.low %v4736_v1, %v4740_v27  ;;  %v6117_v20 = vrot.slane %v6107_v0, %v9098_v48  ;;  %v1235_v32 = vrot.slane %v12770_v34, %v9070_v45  ;;  %v2538_v54 = vcombine.low %v2530_v7, %v2537_v39 }
 0x2a4   : > { %v6124_v62 = vrot.slane %v6108_v42, %v9098_v48  ;;  %v6131_v14 = vrot.slane %v6109_v63, %v9098_v48  ;;  %v1239_v2 = vrot.slane %v12770_v34, %v9073_v46  ;;  %v1243_v38 = vrot.slane %v12770_v34, %v9080_v52 }
 0x2a5   : > { %v6138_v47 = vrot.slane %v6110_v60, %v9098_v48  ;;  %v1247_v22 = vrot.slane %v12770_v34, %v9083_v53  ;;  %v1251_v6 = vrot.slane %v12770_v34, %v9087_v10  ;;  %3231 = vperm.xlu1 %8424, %v2538_v54   ;;  %v1255_v28 = vrot.slane %v12770_v34, %v9090_v43 }
 0x2a6   : > { %v6139_v23 = vcombine.low %v6117_v20, %v6124_v62  ;;  %v2588_v29 = vcombine.low %v1227_v41, %v1231_v5  ;;  %v2589_v49 = vcombine.low %v1235_v32, %v1239_v2  ;;  %v11701_v56 = vsel %vm8092_vm10, inf, %v11616_v11 }
 0x2a7   : > { %v8122_v36 = vsel %vm8108_vm0, nan, %v8121_v19  ;;  %v6140_v4 = vcombine.low %v6131_v14, %v6138_v47  ;;  %v2590_v8 = vcombine.low %v1243_v38, %v1247_v22  ;;  %v2591_v61 = vcombine.low %v1251_v6, %v1255_v28  ;;  %v11736_v47 = vpop.permute.xlu0 %3204 }
 0x2a8   : > { %v6147_v12 = vrot.slane %v6139_v23, %v9098_v48  ;;  %v2598_v1 = vrot.slane %v2588_v29, %v9098_v48  ;;  %v2605_v7 = vrot.slane %v2589_v49, %v9098_v48  ;;  %v8688_v27 = vpop.eup %8687  ;;  %vm8110_vm2 = vcmp.eq.f32.partialorder %v11426_v30, inf  ;;  %v12772_v29 = vld [vmem:[#allocation7_spill] sm:$0xff] }
 0x2a9   : > { %v11713_v11 = vsub.s32 %v11644_v3, %v12771_v9  ;;  %v6154_v19 = vrot.slane %v6140_v4, %v9098_v48  ;;  %v2612_v0 = vrot.slane %v2590_v8, %v9098_v48  ;;  %v4744_v39 = vrot.slane %v11005_v35, %v9061_v58 }
 0x2aa   : > { %vm8405_vm3 = vweird.f32 %v11537_v51  ;;  %v2619_v42 = vrot.slane %v2591_v61, %v9098_v48  ;;  %v2620_v63 = vcombine.low %v2598_v1, %v2605_v7  ;;  %v4748_v34 = vrot.slane %v11005_v35, %v9067_v44 }
 0x2ab   : > { %v4752_v41 = vrot.slane %v11005_v35, %v9070_v45  ;;  %v8123_v60 = vsel %vm8107_vm1, 0.0, %v8122_v36  ;;  %v6155_v20 = vcombine.low %v6147_v12, %v6154_v19  ;;  %v4756_v5 = vrot.slane %v11005_v35, %v9073_v46 }
 0x2ac   : > { %v4760_v32 = vrot.slane %v11005_v35, %v9080_v52  ;;  %v2621_v54 = vcombine.low %v2612_v0, %v2619_v42  ;;  %v2628_v62 = vrot.slane %v2620_v63, %v9098_v48  ;;  %v4764_v14 = vrot.slane %v11005_v35, %v9083_v53 }
 0x2ad   : > { %v4768_v2 = vrot.slane %v11005_v35, %v9087_v10  ;;  %v8404_v37 = vor.u32 %v8688_v27, %v8401_v55  ;;  %vm8407_vm7 = vcmp.eq.f32.partialorder %v11537_v51, 0.0  ;;  %6664 = vperm.xlu0 %8423, %v6155_v20   ;;  %v4772_v38 = vrot.slane %v11005_v35, %v9090_v43 }
 0x2ae   : > { %v6156_v22 = vcombine.low %v4744_v39, %v4748_v34  ;;  %v6157_v6 = vcombine.low %v4752_v41, %v4756_v5  ;;  %v2635_v23 = vrot.slane %v2621_v54, %v9098_v48  ;;  %v6158_v28 = vcombine.low %v4760_v32, %v4764_v14  ;;  %v11766_v5 = vpop.permute.xlu0 %3210 }
 0x2af   : > { %v1291_v49 = vrot.slane %v12772_v29, %v9061_v58  ;;  %v1295_v36 = vrot.slane %v12772_v29, %v9067_v44  ;;  %v6159_v4 = vcombine.low %v4768_v2, %v4772_v38  ;;  %v1299_v61 = vrot.slane %v12772_v29, %v9070_v45 }
 0x2b0   : > { %v6166_v8 = vrot.slane %v6156_v22, %v9098_v48  ;;  %v6173_v12 = vrot.slane %v6157_v6, %v9098_v48  ;;  %v2636_v35 = vcombine.low %v2628_v62, %v2635_v23  ;;  %v6180_v1 = vrot.slane %v6158_v28, %v9098_v48 }
 0x2b1   : > { %v1303_v7 = vrot.slane %v12772_v29, %v9073_v46  ;;  %v1307_v27 = vrot.slane %v12772_v29, %v9080_v52  ;;  %v6187_v19 = vrot.slane %v6159_v4, %v9098_v48  ;;  %v1311_v39 = vrot.slane %v12772_v29, %v9083_v53 }
 0x2b2   : > { %v6188_v0 = vcombine.low %v6166_v8, %v6173_v12  ;;  %v1315_v42 = vrot.slane %v12772_v29, %v9087_v10  ;;  %v3277_v63 = vrot.slane %v11705_v13, %v11713_v11  ;;  %3237 = vperm.xlu1 %8424, %v2636_v35   ;;  %v1319_v34 = vrot.slane %v12772_v29, %v9090_v43 }
 0x2b3   : > { %v2686_v41 = vcombine.low %v1291_v49, %v1295_v36  ;;  %v2687_v20 = vcombine.low %v1299_v61, %v1303_v7  ;;  %v3278_v32 = vadd.s32 4294967288, %v11644_v3  ;;  %v6189_v54 = vcombine.low %v6180_v1, %v6187_v19  ;;  %v3181_v1 = vpop.permute.xlu1 %3180 }
 0x2b4   : > { %v6196_v62 = vrot.slane %v6188_v0, %v9098_v48  ;;  %v2688_v14 = vcombine.low %v1307_v27, %v1311_v39  ;;  %v11772_v2 = vsel %vm8110_vm2, inf, %v8123_v60  ;;  %v2689_v38 = vcombine.low %v1315_v42, %v1319_v34  ;;  %v11802_v0 = vpop.permute.xlu0 %3216 }
 0x2b5   : > { %v2696_v22 = vrot.slane %v2686_v41, %v9098_v48  ;;  %v2703_v6 = vrot.slane %v2687_v20, %v9098_v48  ;;  %vm8396_vm5 = vcmp.lt.f32.partialorder %v11517_v59, 0.0  ;;  %v8406_v23 = vsel %vm8405_vm3, %v11517_v59, %v8404_v37 }
 0x2b6   : > { %v3285_v28 = vadd.s32 4294967280, %v11644_v3  ;;  %v6203_v29 = vrot.slane %v6189_v54, %v9098_v48  ;;  %v2710_v49 = vrot.slane %v2688_v14, %v9098_v48  ;;  %v2717_v30 = vrot.slane %v2689_v38, %v9098_v48  ;;  %v12773_v54 = vld [vmem:[#allocation18_spill] sm:$0xff] }
 0x2b7   : > { %v2718_v60 = vcombine.low %v2696_v22, %v2703_v6  ;;  %v4776_v36 = vrot.slane %v10953_v15, %v9061_v58  ;;  %v4780_v4 = vrot.slane %v10953_v15, %v9067_v44  ;;  %v11789_v8 = vsub.s32 %v3278_v32, %v12771_v9 }
 0x2b8   : > { %v6204_v12 = vcombine.low %v6196_v62, %v6203_v29  ;;  %v4784_v37 = vrot.slane %v10953_v15, %v9070_v45  ;;  %v4788_v61 = vrot.slane %v10953_v15, %v9073_v46  ;;  %v8409_v35 = vsel %vm8407_vm7, %v8401_v55, %v8406_v23 }
 0x2b9   : > { %vm3283_vm9 = vcmask 130112   ;;  %v2719_v7 = vcombine.low %v2710_v49, %v2717_v30  ;;  %v2726_v27 = vrot.slane %v2718_v60, %v9098_v48  ;;  %v4792_v19 = vrot.slane %v10953_v15, %v9080_v52 }
 0x2ba   : > { %vm8395_vm8 = vcmp.eq.f32.partialorder %v11517_v59, 0.0  ;;  %v11806_v39 = vsub.s32 %v3285_v28, %v12771_v9  ;;  %6667 = vperm.xlu0 %8423, %v6204_v12   ;;  %v4796_v42 = vrot.slane %v10953_v15, %v9083_v53  ;;  %v4800_v55 = vrot.slane %v10953_v15, %v9087_v10 }
 0x2bb   : > { %v4804_v34 = vrot.slane %v10953_v15, %v9090_v43  ;;  %v2733_v41 = vrot.slane %v2719_v7, %v9098_v48  ;;  %v6205_v20 = vcombine.low %v4776_v36, %v4780_v4  ;;  %v6206_v32 = vcombine.low %v4784_v37, %v4788_v61  ;;  %v3184_v4 = vpop.permute.xlu1 %3183 }
 0x2bc   : > { %v1355_v62 = vrot.slane %v12773_v54, %v9061_v58  ;;  %v6207_v14 = vcombine.low %v4792_v19, %v4796_v42  ;;  %v1359_v22 = vrot.slane %v12773_v54, %v9067_v44  ;;  %v1363_v6 = vrot.slane %v12773_v54, %v9070_v45 }
 0x2bd   : > { %v6208_v38 = vcombine.low %v4800_v55, %v4804_v34  ;;  %v2734_v23 = vcombine.low %v2726_v27, %v2733_v41  ;;  %v6215_v28 = vrot.slane %v6205_v20, %v9098_v48  ;;  %v6222_v15 = vrot.slane %v6206_v32, %v9098_v48  ;;  %v11835_v27 = vpop.permute.xlu0 %3222 }
 0x2be   : > { %v1367_v29 = vrot.slane %v12773_v54, %v9073_v46  ;;  %v6229_v49 = vrot.slane %v6207_v14, %v9098_v48  ;;  %v1371_v60 = vrot.slane %v12773_v54, %v9080_v52  ;;  %v1375_v36 = vrot.slane %v12773_v54, %v9083_v53 }
 0x2bf   : > { %v6236_v30 = vrot.slane %v6208_v38, %v9098_v48  ;;  %3243 = vperm.xlu1 %8424, %v2734_v23   ;;  %v6237_v12 = vcombine.low %v6215_v28, %v6222_v15  ;;  %v1379_v37 = vrot.slane %v12773_v54, %v9087_v10  ;;  %v1383_v61 = vrot.slane %v12773_v54, %v9090_v43 }
 0x2c0   : > { %v2784_v7 = vcombine.low %v1355_v62, %v1359_v22  ;;  %v3282_v19 = vrot.slane %v3181_v1, %v11789_v8  ;;  %v2785_v55 = vcombine.low %v1363_v6, %v1367_v29  ;;  %v2786_v34 = vcombine.low %v1371_v60, %v1375_v36 }
 0x2c1   : > { %v6238_v42 = vcombine.low %v6229_v49, %v6236_v30  ;;  %v8410_v41 = vsel %vm8396_vm5, nan, %v8409_v35  ;;  %v6245_v20 = vrot.slane %v6237_v12, %v9098_v48  ;;  %v2787_v32 = vcombine.low %v1379_v37, %v1383_v61 }
 0x2c2   : > { %v2794_v14 = vrot.slane %v2784_v7, %v9098_v48  ;;  %v3289_v38 = vrot.slane %v3184_v4, %v11806_v39  ;;  %v2801_v62 = vrot.slane %v2785_v55, %v9098_v48  ;;  %v2808_v22 = vrot.slane %v2786_v34, %v9098_v48  ;;  %v11865_v4 = vpop.permute.xlu0 %3228  ;;  %v12774_v34 = vld [vmem:[#allocation15_spill] sm:$0xff] }
 0x2c3   : > { %v6252_v54 = vrot.slane %v6238_v42, %v9098_v48  ;;  %vm3290_vm4 = vcmask 195712   ;;  %v2815_v1 = vrot.slane %v2787_v32, %v9098_v48  ;;  %v4840_v6 = vrot.slane %v11290_v16, %v9061_v58 }
 0x2c4   : > { %v4844_v35 = vrot.slane %v11290_v16, %v9067_v44  ;;  %v3284_v23 = vsel %vm3283_vm9, %v3282_v19, %v3277_v63  ;;  %v2816_v15 = vcombine.low %v2794_v14, %v2801_v62  ;;  %v4848_v29 = vrot.slane %v11290_v16, %v9070_v45 }
 0x2c5   : > { %v6253_v28 = vcombine.low %v6245_v20, %v6252_v54  ;;  %v11859_v49 = vsel %vm8395_vm8, 0.0, %v8410_v41  ;;  %v2817_v30 = vcombine.low %v2808_v22, %v2815_v1  ;;  %v4852_v60 = vrot.slane %v11290_v16, %v9073_v46 }
 0x2c6   : > { %v4856_v36 = vrot.slane %v11290_v16, %v9080_v52  ;;  %v11868_v13 = vsel %vm3290_vm4, %v3289_v38, %v3284_v23  ;;  %v2824_v63 = vrot.slane %v2816_v15, %v9098_v48  ;;  %v4860_v59 = vrot.slane %v11290_v16, %v9083_v53  ;;  %v11899_v15 = vpop.permute.xlu0 %3234 }
 0x2c7   : > { %6670 = vperm.xlu0 %8423, %v6253_v28   ;;  %v4864_v12 = vrot.slane %v11290_v16, %v9087_v10  ;;  %v3292_v37 = vadd.s32 4294967272, %v11644_v3  ;;  %v2831_v61 = vrot.slane %v2817_v30, %v9098_v48  ;;  %v4868_v7 = vrot.slane %v11290_v16, %v9090_v43 }
 0x2c8   : > { %v6303_v19 = vcombine.low %v4840_v6, %v4844_v35  ;;  %v6304_v42 = vcombine.low %v4848_v29, %v4852_v60  ;;  %v6305_v55 = vcombine.low %v4856_v36, %v4860_v59  ;;  %v1419_v41 = vrot.slane %v12774_v34, %v9061_v58 }
 0x2c9   : > { %v1423_v20 = vrot.slane %v12774_v34, %v9067_v44  ;;  %v2832_v32 = vcombine.low %v2824_v63, %v2831_v61  ;;  %v6306_v14 = vcombine.low %v4864_v12, %v4868_v7  ;;  %v1427_v54 = vrot.slane %v12774_v34, %v9070_v45  ;;  %v3187_v63 = vpop.permute.xlu1 %3186 }
 0x2ca   : > { %v6313_v38 = vrot.slane %v6303_v19, %v9098_v48  ;;  %v6320_v62 = vrot.slane %v6304_v42, %v9098_v48  ;;  %v6327_v16 = vrot.slane %v6305_v55, %v9098_v48  ;;  %v1431_v22 = vrot.slane %v12774_v34, %v9073_v46 }
 0x2cb   : > { %v1435_v1 = vrot.slane %v12774_v34, %v9080_v52  ;;  %3249 = vperm.xlu1 %8424, %v2832_v32   ;;  %v6334_v6 = vrot.slane %v6306_v14, %v9098_v48  ;;  %v1439_v35 = vrot.slane %v12774_v34, %v9083_v53  ;;  %v1443_v23 = vrot.slane %v12774_v34, %v9087_v10 }
 0x2cc   : > { %v1447_v28 = vrot.slane %v12774_v34, %v9090_v43  ;;  %v11902_v29 = vsub.s32 %v3292_v37, %v12771_v9  ;;  %v6335_v30 = vcombine.low %v6313_v38, %v6320_v62  ;;  %v2882_v60 = vcombine.low %v1419_v41, %v1423_v20 }
 0x2cd   : > { %v2883_v36 = vcombine.low %v1427_v54, %v1431_v22  ;;  %vm8398_vm15 = vcmp.eq.f32.partialorder %v11537_v51, inf  ;;  %vm3297_vm14 = vcmask 261312   ;;  %v6336_v59 = vcombine.low %v6327_v16, %v6334_v6  ;;  %v11924_v6 = vpop.permute.xlu0 %3240 }
 0x2ce   : > { %v2884_v12 = vcombine.low %v1435_v1, %v1439_v35  ;;  %v2885_v61 = vcombine.low %v1443_v23, %v1447_v28  ;;  %v6343_v7 = vrot.slane %v6335_v30, %v9098_v48  ;;  %v2892_v19 = vrot.slane %v2882_v60, %v9098_v48 }
 0x2cf   : > { %v2899_v42 = vrot.slane %v2883_v36, %v9098_v48  ;;  %v4872_v37 = vrot.slane %v11446_v33, %v9061_v58  ;;  %v6350_v55 = vrot.slane %v6336_v59, %v9098_v48  ;;  %v4876_v20 = vrot.slane %v11446_v33, %v9067_v44  ;;  %v12775_v59 = vld [vmem:[#allocation19_spill] sm:$0xff] }
 0x2d0   : > { %v2906_v34 = vrot.slane %v2884_v12, %v9098_v48  ;;  %v2913_v41 = vrot.slane %v2885_v61, %v9098_v48  ;;  %v3296_v32 = vrot.slane %v3187_v63, %v11902_v29  ;;  %v4880_v38 = vrot.slane %v11446_v33, %v9070_v45 }
 0x2d1   : > { %v2914_v14 = vcombine.low %v2892_v19, %v2899_v42  ;;  %v4884_v54 = vrot.slane %v11446_v33, %v9073_v46  ;;  %v6351_v62 = vcombine.low %v6343_v7, %v6350_v55  ;;  %v4888_v22 = vrot.slane %v11446_v33, %v9080_v52 }
 0x2d2   : > { %v2915_v16 = vcombine.low %v2906_v34, %v2913_v41  ;;  %v4892_v1 = vrot.slane %v11446_v33, %v9083_v53  ;;  %v4896_v23 = vrot.slane %v11446_v33, %v9087_v10  ;;  %v4900_v28 = vrot.slane %v11446_v33, %v9090_v43 }
 0x2d3   : > { %v2922_v35 = vrot.slane %v2914_v14, %v9098_v48  ;;  %v6352_v30 = vcombine.low %v4872_v37, %v4876_v20  ;;  %6676 = vperm.xlu0 %8423, %v6351_v62   ;;  %v6353_v36 = vcombine.low %v4880_v38, %v4884_v54  ;;  %v1483_v12 = vrot.slane %v12775_v59, %v9061_v58 }
 0x2d4   : > { %v2929_v60 = vrot.slane %v2915_v16, %v9098_v48  ;;  %v6354_v63 = vcombine.low %v4888_v22, %v4892_v1  ;;  %v6355_v61 = vcombine.low %v4896_v23, %v4900_v28  ;;  %v1487_v19 = vrot.slane %v12775_v59, %v9067_v44  ;;  %v11952_v1 = vpop.permute.xlu0 %3246 }
 0x2d5   : > { %v6362_v7 = vrot.slane %v6352_v30, %v9098_v48  ;;  %v1491_v42 = vrot.slane %v12775_v59, %v9070_v45  ;;  %v6369_v33 = vrot.slane %v6353_v36, %v9098_v48  ;;  %v1495_v34 = vrot.slane %v12775_v59, %v9073_v46 }
 0x2d6   : > { %v2930_v55 = vcombine.low %v2922_v35, %v2929_v60  ;;  %v6376_v37 = vrot.slane %v6354_v63, %v9098_v48  ;;  %v6383_v41 = vrot.slane %v6355_v61, %v9098_v48  ;;  %v1499_v20 = vrot.slane %v12775_v59, %v9080_v52 }
 0x2d7   : > { %v1503_v14 = vrot.slane %v12775_v59, %v9083_v53  ;;  %v1507_v38 = vrot.slane %v12775_v59, %v9087_v10  ;;  %v6384_v54 = vcombine.low %v6362_v7, %v6369_v33  ;;  %v1511_v62 = vrot.slane %v12775_v59, %v9090_v43 }
 0x2d8   : > { %3255 = vperm.xlu1 %8424, %v2930_v55   ;;  %v2980_v16 = vcombine.low %v1483_v12, %v1487_v19  ;;  %v2981_v22 = vcombine.low %v1491_v42, %v1495_v34  ;;  %v11957_v35 = vsel %vm8398_vm15, inf, %v11859_v49  ;;  %v11961_v23 = vsel %vm3297_vm14, %v3296_v32, %v11868_v13 }
 0x2d9   : > { %v6385_v28 = vcombine.low %v6376_v37, %v6383_v41  ;;  %v2982_v30 = vcombine.low %v1499_v20, %v1503_v14  ;;  %v6392_v60 = vrot.slane %v6384_v54, %v9098_v48  ;;  %v2983_v36 = vcombine.low %v1507_v38, %v1511_v62  ;;  %v11987_v38 = vpop.permute.xlu0 %3252 }
 0x2da   : > { %v2990_v63 = vrot.slane %v2980_v16, %v9098_v48  ;;  %v2997_v59 = vrot.slane %v2981_v22, %v9098_v48  ;;  %v4424_v51 = vrot.slane %v11603_v21, %v9061_v58  ;;  %v4428_v49 = vrot.slane %v11603_v21, %v9067_v44  ;;  %12776 = vst [vmem:[#allocation5_spill] sm:$0xff] %v11987_v38  ;;  %v12777_v22 = vld [vmem:[#allocation20_spill] sm:$0xff] }
 0x2db   : > { %v6399_v12 = vrot.slane %v6385_v28, %v9098_v48  ;;  %v3004_v61 = vrot.slane %v2982_v30, %v9098_v48  ;;  %v3011_v13 = vrot.slane %v2983_v36, %v9098_v48  ;;  %v4432_v7 = vrot.slane %v11603_v21, %v9070_v45 }
 0x2dc   : > { %v3012_v32 = vcombine.low %v2990_v63, %v2997_v59  ;;  %v4436_v19 = vrot.slane %v11603_v21, %v9073_v46  ;;  %v3299_v42 = vadd.s32 4294967264, %v11644_v3  ;;  %v4440_v33 = vrot.slane %v11603_v21, %v9080_v52 }
 0x2dd   : > { %v6400_v55 = vcombine.low %v6392_v60, %v6399_v12  ;;  %v4444_v37 = vrot.slane %v11603_v21, %v9083_v53  ;;  %v3013_v34 = vcombine.low %v3004_v61, %v3011_v13  ;;  %v4448_v20 = vrot.slane %v11603_v21, %v9087_v10 }
 0x2de   : > { %v3020_v41 = vrot.slane %v3012_v32, %v9098_v48  ;;  %v4452_v14 = vrot.slane %v11603_v21, %v9090_v43  ;;  %v5666_v54 = vcombine.low %v4424_v51, %v4428_v49  ;;  %v5667_v62 = vcombine.low %v4432_v7, %v4436_v19 }
 0x2df   : > { %6679 = vperm.xlu0 %8423, %v6400_v55   ;;  %v5668_v16 = vcombine.low %v4440_v33, %v4444_v37  ;;  %v1547_v28 = vrot.slane %v12777_v22, %v9061_v58  ;;  %v3027_v30 = vrot.slane %v3013_v34, %v9098_v48  ;;  %v1551_v36 = vrot.slane %v12777_v22, %v9067_v44 }
 0x2e0   : > { %v5669_v60 = vcombine.low %v4448_v20, %v4452_v14  ;;  %v1555_v63 = vrot.slane %v12777_v22, %v9070_v45  ;;  %v5676_v21 = vrot.slane %v5666_v54, %v9098_v48  ;;  %v5683_v59 = vrot.slane %v5667_v62, %v9098_v48  ;;  %v12013_v14 = vpop.permute.xlu0 %3258 }
 0x2e1   : > { %v5690_v12 = vrot.slane %v5668_v16, %v9098_v48  ;;  %v1559_v61 = vrot.slane %v12777_v22, %v9073_v46  ;;  %v3028_v51 = vcombine.low %v3020_v41, %v3027_v30  ;;  %v1563_v13 = vrot.slane %v12777_v22, %v9080_v52  ;;  %12778 = vst [vmem:[#allocation2_spill] sm:$0xff] %v12013_v14 }
 0x2e2   : > { %v5697_v49 = vrot.slane %v5669_v60, %v9098_v48  ;;  %v1567_v32 = vrot.slane %v12777_v22, %v9083_v53  ;;  %v5698_v7 = vcombine.low %v5676_v21, %v5683_v59  ;;  %v1571_v19 = vrot.slane %v12777_v22, %v9087_v10 }
 0x2e3   : > { %v1575_v55 = vrot.slane %v12777_v22, %v9090_v43  ;;  %v3078_v33 = vcombine.low %v1547_v28, %v1551_v36  ;;  %v12011_v37 = vsub.s32 %v3299_v42, %v12771_v9  ;;  %3261 = vperm.xlu1 %8424, %v3028_v51   ;;  %v3079_v41 = vcombine.low %v1555_v63, %v1559_v61 }
 0x2e4   : > { %v5699_v34 = vcombine.low %v5690_v12, %v5697_v49  ;;  %v3080_v20 = vcombine.low %v1563_v13, %v1567_v32  ;;  %v5706_v54 = vrot.slane %v5698_v7, %v9098_v48  ;;  %v4904_v30 = vrot.slane %v11450_v25, %v9061_v58 }
 0x2e5   : > { %v3081_v62 = vcombine.low %v1571_v19, %v1575_v55  ;;  %v3088_v16 = vrot.slane %v3078_v33, %v9098_v48  ;;  %v3095_v28 = vrot.slane %v3079_v41, %v9098_v48  ;;  %v4908_v60 = vrot.slane %v11450_v25, %v9067_v44 }
 0x2e6   : > { %v5713_v22 = vrot.slane %v5699_v34, %v9098_v48  ;;  %v3102_v42 = vrot.slane %v3080_v20, %v9098_v48  ;;  %v4912_v63 = vrot.slane %v11450_v25, %v9070_v45  ;;  %v4916_v21 = vrot.slane %v11450_v25, %v9073_v46  ;;  %v12779_v34 = vld [vmem:[#allocation21_spill] sm:$0xff] }
 0x2e7   : > { %v3109_v36 = vrot.slane %v3081_v62, %v9098_v48  ;;  %v4920_v59 = vrot.slane %v11450_v25, %v9080_v52  ;;  %v3110_v61 = vcombine.low %v3088_v16, %v3095_v28  ;;  %v4924_v51 = vrot.slane %v11450_v25, %v9083_v53 }
 0x2e8   : > { %v5714_v12 = vcombine.low %v5706_v54, %v5713_v22  ;;  %v4928_v49 = vrot.slane %v11450_v25, %v9087_v10  ;;  %v4932_v32 = vrot.slane %v11450_v25, %v9090_v43  ;;  %v6401_v7 = vcombine.low %v4904_v30, %v4908_v60  ;;  %v12042_v54 = vpop.permute.xlu0 %3264 }
 0x2e9   : > { %v3111_v13 = vcombine.low %v3102_v42, %v3109_v36  ;;  %v6402_v19 = vcombine.low %v4912_v63, %v4916_v21  ;;  %v3118_v55 = vrot.slane %v3110_v61, %v9098_v48  ;;  %v6403_v33 = vcombine.low %v4920_v59, %v4924_v51  ;;  %12780 = vst [vmem:[#allocation3_spill] sm:$0xff] %v12042_v54 }
 0x2ea   : > { %6637 = vperm.xlu0 %8423, %v5714_v12   ;;  %v4008_v41 = vrot.slane %v12779_v34, %v9061_v58  ;;  %v4012_v20 = vrot.slane %v12779_v34, %v9067_v44  ;;  %v6404_v16 = vcombine.low %v4928_v49, %v4932_v32  ;;  %v6411_v22 = vrot.slane %v6401_v7, %v9098_v48 }
 0x2eb   : > { %v3125_v62 = vrot.slane %v3111_v13, %v9098_v48  ;;  %v6418_v25 = vrot.slane %v6402_v19, %v9098_v48  ;;  %v6425_v30 = vrot.slane %v6403_v33, %v9098_v48  ;;  %v4016_v28 = vrot.slane %v12779_v34, %v9070_v45 }
 0x2ec   : > { %v4020_v42 = vrot.slane %v12779_v34, %v9073_v46  ;;  %v4024_v60 = vrot.slane %v12779_v34, %v9080_v52  ;;  %v6432_v63 = vrot.slane %v6404_v16, %v9098_v48  ;;  %v4028_v59 = vrot.slane %v12779_v34, %v9083_v53 }
 0x2ed   : > { %v3126_v36 = vcombine.low %v3118_v55, %v3125_v62  ;;  %v6433_v21 = vcombine.low %v6411_v22, %v6418_v25  ;;  %v4032_v12 = vrot.slane %v12779_v34, %v9087_v10  ;;  %v4036_v61 = vrot.slane %v12779_v34, %v9090_v43  ;;  %v12069_v22 = vpop.permute.xlu0 %3270 }
 0x2ee   : > { %v5029_v51 = vcombine.low %v4008_v41, %v4012_v20  ;;  %v5030_v49 = vcombine.low %v4016_v28, %v4020_v42  ;;  %v12062_v13 = vadd.s32 4294967224, %v11644_v3  ;;  %v6434_v32 = vcombine.low %v6425_v30, %v6432_v63  ;;  %12781 = vst [vmem:[#allocation9_spill] sm:$0xff] %v12069_v22 }
 0x2ef   : > { %3267 = vperm.xlu1 %8424, %v3126_v36   ;;  %v6441_v7 = vrot.slane %v6433_v21, %v9098_v48  ;;  %v5031_v19 = vcombine.low %v4024_v60, %v4028_v59  ;;  %v5032_v55 = vcombine.low %v4032_v12, %v4036_v61  ;;  %v4936_v16 = vrot.slane %v11464_v40, %v9061_v58 }
 0x2f0   : > { %v5039_v33 = vrot.slane %v5029_v51, %v9098_v48  ;;  %v5046_v62 = vrot.slane %v5030_v49, %v9098_v48  ;;  %v6448_v34 = vrot.slane %v6434_v32, %v9098_v48  ;;  %v4940_v20 = vrot.slane %v11464_v40, %v9067_v44 }
 0x2f1   : > { %v5053_v41 = vrot.slane %v5031_v19, %v9098_v48  ;;  %v4944_v25 = vrot.slane %v11464_v40, %v9070_v45  ;;  %v5060_v30 = vrot.slane %v5032_v55, %v9098_v48  ;;  %v4948_v42 = vrot.slane %v11464_v40, %v9073_v46  ;;  %v12782_v55 = vld [vmem:[#allocation23_spill] sm:$0xff] }
 0x2f2   : > { %v5061_v28 = vcombine.low %v5039_v33, %v5046_v62  ;;  %v4952_v60 = vrot.slane %v11464_v40, %v9080_v52  ;;  %v6449_v36 = vcombine.low %v6441_v7, %v6448_v34  ;;  %v4956_v63 = vrot.slane %v11464_v40, %v9083_v53 }
 0x2f3   : > { %v4960_v21 = vrot.slane %v11464_v40, %v9087_v10  ;;  %v4964_v59 = vrot.slane %v11464_v40, %v9090_v43  ;;  %v5062_v12 = vcombine.low %v5053_v41, %v5060_v30  ;;  %v6450_v51 = vcombine.low %v4936_v16, %v4940_v20  ;;  %v12098_v16 = vpop.permute.xlu0 %6601  ;;  %v12100_v20 = vpop.permute.xlu1 %3189 }
 0x2f4   : > { %v5069_v61 = vrot.slane %v5061_v28, %v9098_v48  ;;  %v6451_v49 = vcombine.low %v4944_v25, %v4948_v42  ;;  %6682 = vperm.xlu0 %8423, %v6449_v36   ;;  %v6452_v32 = vcombine.low %v4952_v60, %v4956_v63  ;;  %v4072_v7 = vrot.slane %v12782_v55, %v9061_v58 }
 0x2f5   : > { %v6453_v19 = vcombine.low %v4960_v21, %v4964_v59  ;;  %v4076_v33 = vrot.slane %v12782_v55, %v9067_v44  ;;  %v5076_v62 = vrot.slane %v5062_v12, %v9098_v48  ;;  %v6460_v34 = vrot.slane %v6450_v51, %v9098_v48  ;;  %12783 = vst [vmem:[#allocation8_spill] sm:$0xff] %v12098_v16 }
 0x2f6   : > { %v6467_v40 = vrot.slane %v6451_v49, %v9098_v48  ;;  %v4080_v41 = vrot.slane %v12782_v55, %v9070_v45  ;;  %v6474_v25 = vrot.slane %v6452_v32, %v9098_v48  ;;  %v4084_v28 = vrot.slane %v12782_v55, %v9073_v46 }
 0x2f7   : > { %v6481_v30 = vrot.slane %v6453_v19, %v9098_v48  ;;  %v4088_v42 = vrot.slane %v12782_v55, %v9080_v52  ;;  %v5077_v60 = vcombine.low %v5069_v61, %v5076_v62  ;;  %v4092_v63 = vrot.slane %v12782_v55, %v9083_v53 }
 0x2f8   : > { %v6482_v36 = vcombine.low %v6460_v34, %v6467_v40  ;;  %v4096_v21 = vrot.slane %v12782_v55, %v9087_v10  ;;  %v4100_v12 = vrot.slane %v12782_v55, %v9090_v43  ;;  %v5127_v51 = vcombine.low %v4072_v7, %v4076_v33  ;;  %v12119_v34 = vpop.permute.xlu0 %6610 }
 0x2f9   : > { %v6483_v59 = vcombine.low %v6474_v25, %v6481_v30  ;;  %v5128_v49 = vcombine.low %v4080_v41, %v4084_v28  ;;  %v3303_v32 = vrot.slane %v12100_v20, %v12011_v37  ;;  %6598 = vperm.xlu1 %8424, %v5077_v60   ;;  %v5129_v61 = vcombine.low %v4088_v42, %v4092_v63 }
 0x2fa   : > { %v6490_v19 = vrot.slane %v6482_v36, %v9098_v48  ;;  %v4968_v62 = vrot.slane %v11506_v26, %v9061_v58  ;;  %12784 = vst [vmem:[#allocation10_spill] sm:$0xff] %v12119_v34  ;;  %v5130_v25 = vcombine.low %v4096_v21, %v4100_v12  ;;  %v5137_v30 = vrot.slane %v5127_v51, %v9098_v48 }
 0x2fb   : > { %v6497_v40 = vrot.slane %v6483_v59, %v9098_v48  ;;  %v5144_v55 = vrot.slane %v5128_v49, %v9098_v48  ;;  %vm3304_vm6 = vcmask 326912   ;;  %v5151_v7 = vrot.slane %v5129_v61, %v9098_v48  ;;  %v12785_v61 = vld [vmem:[#allocation22_spill] sm:$0xff] }
 0x2fc   : > { %v4972_v33 = vrot.slane %v11506_v26, %v9067_v44  ;;  %v4976_v41 = vrot.slane %v11506_v26, %v9070_v45  ;;  %v4980_v20 = vrot.slane %v11506_v26, %v9073_v46  ;;  %v5158_v42 = vrot.slane %v5130_v25, %v9098_v48  ;;  %v12146_v16 = vpop.permute.xlu0 %6616 }
 0x2fd   : > { %v6498_v28 = vcombine.low %v6490_v19, %v6497_v40  ;;  %v5159_v60 = vcombine.low %v5137_v30, %v5144_v55  ;;  %v4984_v36 = vrot.slane %v11506_v26, %v9080_v52  ;;  %v4988_v63 = vrot.slane %v11506_v26, %v9083_v53  ;;  %12786 = vst [vmem:[#allocation12_spill] sm:$0xff] %v12146_v16 }
 0x2fe   : > { %v4992_v21 = vrot.slane %v11506_v26, %v9087_v10  ;;  %v4996_v59 = vrot.slane %v11506_v26, %v9090_v43  ;;  %v6499_v12 = vcombine.low %v4968_v62, %v4972_v33  ;;  %v5160_v51 = vcombine.low %v5151_v7, %v5158_v42 }
 0x2ff   : > { %6685 = vperm.xlu0 %8423, %v6498_v28   ;;  %v5167_v49 = vrot.slane %v5159_v60, %v9098_v48  ;;  %v6500_v19 = vcombine.low %v4976_v41, %v4980_v20  ;;  %v4104_v40 = vrot.slane %v12785_v61, %v9061_v58  ;;  %v6501_v25 = vcombine.low %v4984_v36, %v4988_v63 }
 0x300   : > { %v6502_v30 = vcombine.low %v4992_v21, %v4996_v59  ;;  %v6509_v55 = vrot.slane %v6499_v12, %v9098_v48  ;;  %v4108_v34 = vrot.slane %v12785_v61, %v9067_v44  ;;  %v5174_v26 = vrot.slane %v5160_v51, %v9098_v48 }
 0x301   : > { %v6516_v62 = vrot.slane %v6500_v19, %v9098_v48  ;;  %v4112_v7 = vrot.slane %v12785_v61, %v9070_v45  ;;  %v4116_v33 = vrot.slane %v12785_v61, %v9073_v46  ;;  %v6523_v41 = vrot.slane %v6501_v25, %v9098_v48 }
 0x302   : > { %v6530_v20 = vrot.slane %v6502_v30, %v9098_v48  ;;  %v4120_v28 = vrot.slane %v12785_v61, %v9080_v52  ;;  %v4124_v42 = vrot.slane %v12785_v61, %v9083_v53  ;;  %v5175_v60 = vcombine.low %v5167_v49, %v5174_v26  ;;  %v12787_v49 = vld [vmem:[#allocation24_spill] sm:$0xff] }
 0x303   : > { %v6531_v36 = vcombine.low %v6509_v55, %v6516_v62  ;;  %v4128_v63 = vrot.slane %v12785_v61, %v9087_v10  ;;  %v4132_v21 = vrot.slane %v12785_v61, %v9090_v43  ;;  %v5176_v12 = vcombine.low %v4104_v40, %v4108_v34  ;;  %v12175_v40 = vpop.permute.xlu0 %6622 }
 0x304   : > { %v6532_v59 = vcombine.low %v6523_v41, %v6530_v20  ;;  %v5177_v51 = vcombine.low %v4112_v7, %v4116_v33  ;;  %v5178_v19 = vcombine.low %v4120_v28, %v4124_v42  ;;  %v12166_v25 = vsub.s32 %v12062_v13, %v12771_v9  ;;  %6604 = vperm.xlu1 %8424, %v5175_v60  }
 0x305   : > { %v6539_v30 = vrot.slane %v6531_v36, %v9098_v48  ;;  %v5179_v16 = vcombine.low %v4128_v63, %v4132_v21  ;;  %v4168_v55 = vrot.slane %v12787_v49, %v9061_v58  ;;  %v5186_v62 = vrot.slane %v5176_v12, %v9098_v48  ;;  %12788 = vst [vmem:[#allocation13_spill] sm:$0xff] %v12175_v40 }
 0x306   : > { %v6546_v26 = vrot.slane %v6532_v59, %v9098_v48  ;;  %v5193_v61 = vrot.slane %v5177_v51, %v9098_v48  ;;  %v5200_v34 = vrot.slane %v5178_v19, %v9098_v48  ;;  %v12179_v13 = vsel %vm3304_vm6, %v3303_v32, %v11961_v23 }
 0x307   : > { %v5207_v7 = vrot.slane %v5179_v16, %v9098_v48  ;;  %v4172_v33 = vrot.slane %v12787_v49, %v9067_v44  ;;  %v4176_v41 = vrot.slane %v12787_v49, %v9070_v45  ;;  %v4180_v42 = vrot.slane %v12787_v49, %v9073_v46 }
 0x308   : > { %v6547_v20 = vcombine.low %v6539_v30, %v6546_v26  ;;  %v5208_v28 = vcombine.low %v5186_v62, %v5193_v61  ;;  %v4184_v60 = vrot.slane %v12787_v49, %v9080_v52  ;;  %v4188_v16 = vrot.slane %v12787_v49, %v9083_v53  ;;  %v12789_v26 = vld [vmem:[#allocation25_spill] sm:$0xff] }
 0x309   : > { %v5209_v32 = vcombine.low %v5200_v34, %v5207_v7  ;;  %v4192_v36 = vrot.slane %v12787_v49, %v9087_v10  ;;  %v4196_v21 = vrot.slane %v12787_v49, %v9090_v43  ;;  %v5274_v59 = vcombine.low %v4168_v55, %v4172_v33 }
 0x30a   : > { %6688 = vperm.xlu0 %8423, %v6547_v20   ;;  %v5216_v63 = vrot.slane %v5208_v28, %v9098_v48  ;;  %v5275_v12 = vcombine.low %v4176_v41, %v4180_v42  ;;  %v3306_v51 = vadd.s32 4294967256, %v11644_v3  ;;  %v5276_v30 = vcombine.low %v4184_v60, %v4188_v16  ;;  %v12207_v28 = vpop.permute.xlu0 %6628 }
 0x30b   : > { %v5223_v19 = vrot.slane %v5209_v32, %v9098_v48  ;;  %v4232_v62 = vrot.slane %v12789_v26, %v9061_v58  ;;  %v5277_v61 = vcombine.low %v4192_v36, %v4196_v21  ;;  %v5284_v34 = vrot.slane %v5274_v59, %v9098_v48  ;;  %12790 = vst [vmem:[#allocation14_spill] sm:$0xff] %v12207_v28  ;;  %v12792_v28 = vld [vmem:[#allocation26_spill] sm:$0xff] }
 0x30c   : > { %v5291_v7 = vrot.slane %v5275_v12, %v9098_v48  ;;  %v4236_v20 = vrot.slane %v12789_v26, %v9067_v44  ;;  %v5298_v55 = vrot.slane %v5276_v30, %v9098_v48  ;;  %v4240_v33 = vrot.slane %v12789_v26, %v9070_v45 }
 0x30d   : > { %v5224_v49 = vcombine.low %v5216_v63, %v5223_v19  ;;  %v4244_v41 = vrot.slane %v12789_v26, %v9073_v46  ;;  %v5305_v42 = vrot.slane %v5277_v61, %v9098_v48  ;;  %v4248_v32 = vrot.slane %v12789_v26, %v9080_v52 }
 0x30e   : > { %v5306_v60 = vcombine.low %v5284_v34, %v5291_v7  ;;  %v4252_v16 = vrot.slane %v12789_v26, %v9083_v53  ;;  %v4256_v36 = vrot.slane %v12789_v26, %v9087_v10  ;;  %v4260_v63 = vrot.slane %v12789_v26, %v9090_v43  ;;  %v12227_v34 = vpop.permute.xlu0 %6634 }
 0x30f   : > { %6607 = vperm.xlu1 %8424, %v5224_v49   ;;  %v5372_v21 = vcombine.low %v4232_v62, %v4236_v20  ;;  %v5373_v59 = vcombine.low %v4240_v33, %v4244_v41  ;;  %v12224_v12 = vsub.s32 %v3306_v51, %v12771_v9  ;;  %v5307_v19 = vcombine.low %v5298_v55, %v5305_v42 }
 0x310   : > { %v5314_v30 = vrot.slane %v5306_v60, %v9098_v48  ;;  %v5374_v61 = vcombine.low %v4248_v32, %v4252_v16  ;;  %12791 = vst [vmem:[#allocation16_spill] sm:$0xff] %v12227_v34  ;;  %v5375_v7 = vcombine.low %v4256_v36, %v4260_v63  ;;  %v4296_v40 = vrot.slane %v12792_v28, %v9061_v58  ;;  %v12244_v60 = vpop.permute.xlu1 %3192 }
 0x311   : > { %v5382_v49 = vrot.slane %v5372_v21, %v9098_v48  ;;  %v5389_v23 = vrot.slane %v5373_v59, %v9098_v48  ;;  %v5321_v26 = vrot.slane %v5307_v19, %v9098_v48  ;;  %v4300_v51 = vrot.slane %v12792_v28, %v9067_v44 }
 0x312   : > { %v5396_v62 = vrot.slane %v5374_v61, %v9098_v48  ;;  %v4304_v20 = vrot.slane %v12792_v28, %v9070_v45  ;;  %v5403_v55 = vrot.slane %v5375_v7, %v9098_v48  ;;  %v4308_v41 = vrot.slane %v12792_v28, %v9073_v46 }
 0x313   : > { %v5404_v33 = vcombine.low %v5382_v49, %v5389_v23  ;;  %v4312_v42 = vrot.slane %v12792_v28, %v9080_v52  ;;  %v5322_v32 = vcombine.low %v5314_v30, %v5321_v26  ;;  %v4316_v16 = vrot.slane %v12792_v28, %v9083_v53  ;;  %v12256_v26 = vpop.permute.xlu0 %6646 }
 0x314   : > { %v4320_v36 = vrot.slane %v12792_v28, %v9087_v10  ;;  %v4324_v63 = vrot.slane %v12792_v28, %v9090_v43  ;;  %v5405_v21 = vcombine.low %v5396_v62, %v5403_v55  ;;  %v5470_v59 = vcombine.low %v4296_v40, %v4300_v51 }
 0x315   : > { %v5412_v23 = vrot.slane %v5404_v33, %v9098_v48  ;;  %v5471_v19 = vcombine.low %v4304_v20, %v4308_v41  ;;  %v3348_v61 = vadd.s32 4294967208, %v11644_v3  ;;  %6613 = vperm.xlu1 %8424, %v5322_v32   ;;  %v5472_v7 = vcombine.low %v4312_v42, %v4316_v16  ;;  %v12269_v33 = vpop.xlane.xlu1 %7036 }
 0x316   : > { %v5473_v49 = vcombine.low %v4320_v36, %v4324_v63  ;;  %v4360_v30 = vrot.slane %v11014_v24, %v9061_v58  ;;  %v5419_v34 = vrot.slane %v5405_v21, %v9098_v48  ;;  %v5480_v22 = vrot.slane %v5470_v59, %v9098_v48 }
 0x317   : > { %v5487_v28 = vrot.slane %v5471_v19, %v9098_v48  ;;  %v4364_v40 = vrot.slane %v11014_v24, %v9067_v44  ;;  %v5494_v62 = vrot.slane %v5472_v7, %v9098_v48  ;;  %v4368_v20 = vrot.slane %v11014_v24, %v9070_v45 }
 0x318   : > { %v5501_v51 = vrot.slane %v5473_v49, %v9098_v48  ;;  %v4372_v55 = vrot.slane %v11014_v24, %v9073_v46  ;;  %v5420_v41 = vcombine.low %v5412_v23, %v5419_v34  ;;  %v4376_v32 = vrot.slane %v11014_v24, %v9080_v52 }
 0x319   : > { %v5502_v42 = vcombine.low %v5480_v22, %v5487_v28  ;;  %v4380_v16 = vrot.slane %v11014_v24, %v9083_v53  ;;  %v4384_v63 = vrot.slane %v11014_v24, %v9087_v10  ;;  %v4388_v21 = vrot.slane %v11014_v24, %v9090_v43 }
 0x31a   : > { %v5503_v36 = vcombine.low %v5494_v62, %v5501_v51  ;;  %v5568_v59 = vcombine.low %v4360_v30, %v4364_v40  ;;  %6619 = vperm.xlu1 %8424, %v5420_v41   ;;  %v5569_v34 = vcombine.low %v4368_v20, %v4372_v55  ;;  %v4808_v62 = vrot.slane %v11121_v57, %v9061_v58  ;;  %v12286_v51 = vpop.permute.xlu0 %6649 }
 0x31b   : > { %v5510_v22 = vrot.slane %v5502_v42, %v9098_v48  ;;  %v5570_v23 = vcombine.low %v4376_v32, %v4380_v16  ;;  %v5571_v49 = vcombine.low %v4384_v63, %v4388_v21  ;;  %v4812_v40 = vrot.slane %v11121_v57, %v9067_v44  ;;  %v12299_v16 = vpop.permute.xlu1 %3195 }
 0x31c   : > { %v5517_v7 = vrot.slane %v5503_v36, %v9098_v48  ;;  %v5578_v28 = vrot.slane %v5568_v59, %v9098_v48  ;;  %v5585_v24 = vrot.slane %v5569_v34, %v9098_v48  ;;  %v4816_v20 = vrot.slane %v11121_v57, %v9070_v45 }
 0x31d   : > { %v5592_v30 = vrot.slane %v5570_v23, %v9098_v48  ;;  %v5599_v41 = vrot.slane %v5571_v49, %v9098_v48  ;;  %v4820_v42 = vrot.slane %v11121_v57, %v9073_v46  ;;  %v4824_v32 = vrot.slane %v11121_v57, %v9080_v52 }
 0x31e   : > { %v5518_v55 = vcombine.low %v5510_v22, %v5517_v7  ;;  %v5600_v36 = vcombine.low %v5578_v28, %v5585_v24  ;;  %v4828_v63 = vrot.slane %v11121_v57, %v9083_v53  ;;  %v4832_v21 = vrot.slane %v11121_v57, %v9087_v10 }
 0x31f   : > { %v4836_v59 = vrot.slane %v11121_v57, %v9090_v43  ;;  %vm3311_vm11 = vcmask 392512   ;;  %v12308_v22 = vsub.s32 %v3348_v61, %v12771_v9  ;;  %v5601_v34 = vcombine.low %v5592_v30, %v5599_v41 }
 0x320   : > { %6625 = vperm.xlu1 %8424, %v5518_v55   ;;  %v6254_v23 = vcombine.low %v4808_v62, %v4812_v40  ;;  %v6255_v7 = vcombine.low %v4816_v20, %v4820_v42  ;;  %v5608_v49 = vrot.slane %v5600_v36, %v9098_v48  ;;  %v6256_v28 = vcombine.low %v4824_v32, %v4828_v63  ;;  %v12318_v55 = vpop.permute.xlu0 %6652  ;;  %v12330_v63 = vpop.permute.xlu1 %3198 }
 0x321   : > { %v6257_v24 = vcombine.low %v4832_v21, %v4836_v59  ;;  %v4456_v19 = vrot.slane %v11701_v56, %v9061_v58  ;;  %v5615_v54 = vrot.slane %v5601_v34, %v9098_v48  ;;  %v4460_v61 = vrot.slane %v11701_v56, %v9067_v44 }
 0x322   : > { %v6264_v14 = vrot.slane %v6254_v23, %v9098_v48  ;;  %v6271_v57 = vrot.slane %v6255_v7, %v9098_v48  ;;  %v6278_v62 = vrot.slane %v6256_v28, %v9098_v48  ;;  %v4464_v40 = vrot.slane %v11701_v56, %v9070_v45 }
 0x323   : > { %v6285_v30 = vrot.slane %v6257_v24, %v9098_v48  ;;  %v4468_v20 = vrot.slane %v11701_v56, %v9073_v46  ;;  %v5616_v41 = vcombine.low %v5608_v49, %v5615_v54  ;;  %v4472_v32 = vrot.slane %v11701_v56, %v9080_v52 }
 0x324   : > { %v6286_v42 = vcombine.low %v6264_v14, %v6271_v57  ;;  %v4476_v36 = vrot.slane %v11701_v56, %v9083_v53  ;;  %v4480_v59 = vrot.slane %v11701_v56, %v9087_v10  ;;  %v4484_v34 = vrot.slane %v11701_v56, %v9090_v43 }
 0x325   : > { %v6287_v21 = vcombine.low %v6278_v62, %v6285_v30  ;;  %v5715_v23 = vcombine.low %v4456_v19, %v4460_v61  ;;  %6631 = vperm.xlu1 %8424, %v5616_v41   ;;  %v5716_v14 = vcombine.low %v4464_v40, %v4468_v20  ;;  %v4488_v49 = vrot.slane %v11772_v2, %v9061_v58  ;;  %v12349_v40 = vpop.permute.xlu0 %6655 }
 0x326   : > { %v6294_v54 = vrot.slane %v6286_v42, %v9098_v48  ;;  %v5717_v7 = vcombine.low %v4472_v32, %v4476_v36  ;;  %v5718_v24 = vcombine.low %v4480_v59, %v4484_v34  ;;  %v4492_v62 = vrot.slane %v11772_v2, %v9067_v44 }
 0x327   : > { %v6301_v28 = vrot.slane %v6287_v21, %v9098_v48  ;;  %v5725_v57 = vrot.slane %v5715_v23, %v9098_v48  ;;  %v5732_v30 = vrot.slane %v5716_v14, %v9098_v48  ;;  %v4496_v19 = vrot.slane %v11772_v2, %v9070_v45  ;;  %v12360_v23 = vpop.permute.xlu1 %3201 }
 0x328   : > { %v5739_v56 = vrot.slane %v5717_v7, %v9098_v48  ;;  %v4500_v61 = vrot.slane %v11772_v2, %v9073_v46  ;;  %v5746_v41 = vrot.slane %v5718_v24, %v9098_v48  ;;  %v4504_v42 = vrot.slane %v11772_v2, %v9080_v52 }
 0x329   : > { %v6302_v20 = vcombine.low %v6294_v54, %v6301_v28  ;;  %v4508_v32 = vrot.slane %v11772_v2, %v9083_v53  ;;  %v5747_v36 = vcombine.low %v5725_v57, %v5732_v30  ;;  %v4512_v21 = vrot.slane %v11772_v2, %v9087_v10 }
 0x32a   : > { %v4516_v59 = vrot.slane %v11772_v2, %v9090_v43  ;;  %v5764_v34 = vcombine.low %v4488_v49, %v4492_v62  ;;  %v12793_v54 = vrot.slane %v12244_v60, %v12224_v12  ;;  %v5748_v7 = vcombine.low %v5739_v56, %v5746_v41 }
 0x32b   : > { %6673 = vperm.xlu1 %8424, %v6302_v20   ;;  %v5765_v28 = vcombine.low %v4496_v19, %v4500_v61  ;;  %v5766_v24 = vcombine.low %v4504_v42, %v4508_v32  ;;  %v5755_v57 = vrot.slane %v5747_v36, %v9098_v48  ;;  %v5000_v2 = vrot.slane %v11957_v35, %v9061_v58  ;;  %v12385_v20 = vpop.permute.xlu0 %6658 }
 0x32c   : > { %v12367_v14 = vsel %vm3311_vm11, %v12793_v54, %v12179_v13  ;;  %v5767_v30 = vcombine.low %v4512_v21, %v4516_v59  ;;  %v5774_v38 = vrot.slane %v5764_v34, %v9098_v48  ;;  %v5762_v49 = vrot.slane %v5748_v7, %v9098_v48 }
 0x32d   : > { %v5781_v62 = vrot.slane %v5765_v28, %v9098_v48  ;;  %v5788_v60 = vrot.slane %v5766_v24, %v9098_v48  ;;  %v5004_v13 = vrot.slane %v11957_v35, %v9067_v44  ;;  %v5008_v19 = vrot.slane %v11957_v35, %v9070_v45 }
 0x32e   : > { %v5795_v56 = vrot.slane %v5767_v30, %v9098_v48  ;;  %v5012_v61 = vrot.slane %v11957_v35, %v9073_v46  ;;  %v5016_v58 = vrot.slane %v11957_v35, %v9080_v52  ;;  %v5763_v41 = vcombine.low %v5755_v57, %v5762_v49  ;;  %v3208_v46 = vpop.permute.xlu1 %3207 }
 0x32f   : > { %v5796_v42 = vcombine.low %v5774_v38, %v5781_v62  ;;  %v5020_v32 = vrot.slane %v11957_v35, %v9083_v53  ;;  %v5024_v44 = vrot.slane %v11957_v35, %v9087_v10  ;;  %v5028_v45 = vrot.slane %v11957_v35, %v9090_v43 }
 0x330   : > { %v5797_v36 = vcombine.low %v5788_v60, %v5795_v56  ;;  %v6548_v21 = vcombine.low %v5000_v2, %v5004_v13  ;;  %v6549_v59 = vcombine.low %v5008_v19, %v5012_v61  ;;  %v3320_v34 = vadd.s32 4294967240, %v11644_v3  ;;  %6640 = vperm.xlu1 %8424, %v5763_v41   ;;  %v12406_v60 = vpop.permute.xlu0 %6661 }
 0x331   : > { %v5804_v52 = vrot.slane %v5796_v42, %v9098_v48  ;;  %v6550_v54 = vcombine.low %v5016_v58, %v5020_v32  ;;  %v3313_v38 = vadd.s32 4294967248, %v11644_v3  ;;  %v6551_v7 = vcombine.low %v5024_v44, %v5028_v45 }
 0x332   : > { %v5811_v53 = vrot.slane %v5797_v36, %v9098_v48  ;;  %v6558_v10 = vrot.slane %v6548_v21, %v9098_v48  ;;  %v6565_v28 = vrot.slane %v6549_v59, %v9098_v48  ;;  %v3352_v43 = vrot.slane %v11766_v5, %v12308_v22  ;;  %v3214_v41 = vpop.permute.xlu1 %3213 }
 0x333   : > { %v3362_v35 = vadd.s32 4294967192, %v11644_v3  ;;  %v6572_v24 = vrot.slane %v6550_v54, %v9098_v48  ;;  %v3327_v57 = vadd.s32 4294967232, %v11644_v3  ;;  %v6579_v2 = vrot.slane %v6551_v7, %v9098_v48 }
 0x334   : > { %v5812_v30 = vcombine.low %v5804_v52, %v5811_v53  ;;  %v6580_v49 = vcombine.low %v6558_v10, %v6565_v28  ;;  %v7038_v62 = vadd.f32 1e-12, %v12269_v33  ;;  %v12409_v13 = vsub.s32 %v3320_v34, %v12771_v9 }
 0x335   : > { %v12412_v56 = vsub.s32 %v3313_v38, %v12771_v9  ;;  %v3341_v5 = vadd.s32 4294967216, %v11644_v3  ;;  %vm3318_vm12 = vcmask 458112   ;;  %v6581_v19 = vcombine.low %v6572_v24, %v6579_v2  ;;  %v12437_v38 = vpop.permute.xlu0 %6664 }
 0x336   : > { %6643 = vperm.xlu1 %8424, %v5812_v30   ;;  %v6588_v61 = vrot.slane %v6580_v49, %v9098_v48  ;;  %v7040_v58 = vrot.slane %v7038_v62, 1  ;;  %8689 = vrcp.f32 %v7038_v62  ;;  %v12417_v33 = vsub.s32 %v3327_v57, %v12771_v9 }
 0x337   : > { %v3317_v42 = vrot.slane %v12299_v16, %v12412_v56  ;;  %v3355_v32 = vadd.s32 4294967200, %v11644_v3  ;;  %vm3325_vm13 = vcmask 523712   ;;  %v3376_v44 = vadd.s32 4294967176, %v11644_v3 }
 0x338   : > { %v6595_v36 = vrot.slane %v6581_v19, %v9098_v48  ;;  %8691 = vrcp.f32 %v7040_v58  ;;  %v3324_v45 = vrot.slane %v12330_v63, %v12409_v13  ;;  %v12427_v21 = vsub.s32 %v3341_v5, %v12771_v9 }
 0x339   : > { %v3319_v59 = vsel %vm3318_vm12, %v3317_v42, %v12367_v14  ;;  %vm3332_vm10 = vcmask 589312   ;;  %v3331_v16 = vrot.slane %v12360_v23, %v12417_v33  ;;  %v12434_v34 = vsub.s32 %v3362_v35, %v12771_v9  ;;  %v3220_v35 = vpop.permute.xlu1 %3219 }
 0x33a   : > { %v6596_v52 = vcombine.low %v6588_v61, %v6595_v36  ;;  %v3326_v54 = vsel %vm3325_vm13, %v3324_v45, %v3319_v59  ;;  %vm3339_vm0 = vcmask 654912   ;;  %v12440_v63 = vsub.s32 %v3355_v32, %v12771_v9  ;;  %v12795_v32 = vld [vmem:[#allocation4_spill] sm:$0xff] }
 0x33b   : > { %v3333_v53 = vsel %vm3332_vm10, %v3331_v16, %v3326_v54  ;;  %vm3346_vm1 = vcmask 720512   ;;  %v3345_v14 = vrot.slane %v3208_v46, %v12427_v21  ;;  %v12445_v7 = vsub.s32 %v3376_v44, %v12771_v9 }
 0x33c   : > { %6691 = vperm.xlu1 %8424, %v6596_v52   ;;  %v6779_v23 = vrot.slane %v12286_v51, %v11789_v8  ;;  %v12794_v10 = vrot.slane %v11736_v47, %v12166_v25  ;;  %vm3353_vm2 = vcmask 786112   ;;  %vm3360_vm3 = vcmask 851712  }
 0x33d   : > { %v3359_v57 = vrot.slane %v3214_v41, %v12440_v63  ;;  %v6775_v46 = vrot.slane %v12256_v26, %v11713_v11  ;;  %v3369_v2 = vadd.s32 4294967184, %v11644_v3  ;;  %v3366_v51 = vrot.slane %v11802_v0, %v12434_v34  ;;  %v6668_v3 = vpop.permute.xlu0 %6667 }
 0x33e   : > { %v3340_v28 = vsel %vm3339_vm0, %v12794_v10, %v3333_v53  ;;  %vm3367_vm7 = vcmask 917312   ;;  %v3380_v62 = vrot.slane %v11835_v27, %v12445_v7  ;;  %v6784_v19 = vrot.slane %v12318_v55, %v11806_v39 }
 0x33f   : > { %v3347_v24 = vsel %vm3346_vm1, %v3345_v14, %v3340_v28  ;;  %v6780_v5 = vsel %vm3283_vm9, %v6779_v23, %v6775_v46  ;;  %v12468_v26 = vsub.s32 %v3369_v2, %v12771_v9  ;;  %v6789_v61 = vrot.slane %v12349_v40, %v11902_v29  ;;  %v3226_v9 = vpop.permute.xlu1 %3225 }
 0x340   : > { %v3354_v30 = vsel %vm3353_vm2, %v3352_v43, %v3347_v24  ;;  %v8690_v49 = vpop.eup %8689  ;;  %vm3374_vm5 = vcmask 982912   ;;  %vm12681_vm8 = vcmask 1048512   ;;  %v6794_v55 = vrot.slane %v12385_v20, %v12011_v37 }
 0x341   : > { %v3361_v47 = vsel %vm3360_vm3, %v3359_v57, %v3354_v30  ;;  %v7044_v43 = vmul.f32 %v8690_v49, %v11088_v17  ;;  %v7045_v0 = vmul.f32 %v8690_v49, %v11106_v31  ;;  %v3373_v41 = vrot.slane %v3220_v35, %v12468_v26 }
 0x342   : > { %v8692_v58 = vpop.eup %8691  ;;  %v3368_v27 = vsel %vm3367_vm7, %v3366_v51, %v3361_v47  ;;  %v6799_v31 = vrot.slane %v12406_v60, %v12224_v12  ;;  %v6785_v40 = vsel %vm3290_vm4, %v6784_v19, %v6780_v5  ;;  %v6804_v45 = vrot.slane %v12437_v38, %v12412_v56 }
 0x343   : > { %v7047_v42 = vmul.f32 %v8692_v58, %v11057_v50  ;;  %v7048_v17 = vmul.f32 %v8692_v58, %v12795_v32  ;;  %v7053_v44 = vcombine.low %v7044_v43, %v7045_v0  ;;  %v3375_v36 = vsel %vm3374_vm5, %v3373_v41, %v3368_v27  ;;  %v3232_v24 = vpop.permute.xlu1 %3231 }
 0x344   : > { %v6790_v16 = vsel %vm3297_vm14, %v6789_v61, %v6785_v40  ;;  %v3382_v50 = vsel %vm12681_vm8, %v3380_v62, %v3375_v36  ;;  %vm12494_vm15 = vcmp.lt.s32.totalorder %v12769_v18, 256  ;;  %v6809_v38 = vrot.slane %v6668_v3, %v12409_v13  ;;  %v12800_v40 = vld [vmem:[#allocation5_spill] sm:$0xff] }
 0x345   : > { %v7060_v59 = vrot.slane %v7053_v44, %v9098_v48  ;;  %v7068_v20 = vcombine.low %v7047_v42, %v7048_v17  ;;  %v3468_v52 = vrot.slane %v3382_v50, %v9098_v48  ;;  %v6795_v54 = vsel %vm3304_vm6, %v6794_v55, %v6790_v16  ;;  %v12801_v16 = vld [vmem:[#allocation2_spill] sm:$0xff] }
 0x346   : > { %v6671_v53 = vpop.permute.xlu0 %6670  ;;  %vm12509_vm8 = vcmp.lt.s32.totalorder %v12769_v18, 128  ;;  %v6800_v28 = vsel %vm3311_vm11, %v6799_v31, %v6795_v54  ;;  %v3386_v47 = vrot.slane %v3226_v9, %v11713_v11  ;;  %v3395_v62 = vrot.slane %v3232_v24, %v11806_v39 }
 0x347   : > { %v7067_v14 = vrot.slane %v7060_v59, %v9098_v48  ;;  %v7075_v23 = vrot.slane %v7068_v20, %v9098_v48  ;;  %v3475_v35 = vrot.slane %v3468_v52, %v9098_v48  ;;  %v6805_v57 = vsel %vm3318_vm12, %v6804_v45, %v6800_v28  ;;  %v3238_v51 = vpop.permute.xlu1 %3237  ;;  %v12802_v52 = vld [vmem:[#allocation3_spill] sm:$0xff] }
 0x348   : > { %v6814_v46 = vrot.slane %v6671_v53, %v12417_v33  ;;  %v6810_v2 = vsel %vm3325_vm13, %v6809_v38, %v6805_v57  ;;  %v3390_v5 = vrot.slane %v11865_v4, %v11789_v8  ;;  %v3405_v43 = vrot.slane %v3238_v51, %v12011_v37 }
 0x349   : > { %v7082_v30 = vrot.slane %v7075_v23, %v9098_v48  ;;  %7087 = vst.msk [vmem:[%s162_s19] sm:$0x3] %vm12494_vm15, %v7067_v14  ;;  %v3400_v0 = vrot.slane %v11899_v15, %v11902_v29  ;;  %v3410_v55 = vrot.slane %v11924_v6, %v12224_v12  ;;  %v3420_v15 = vrot.slane %v11952_v1, %v12409_v13  ;;  %v12803_v14 = vld [vmem:[#allocation9_spill] sm:$0xff] }
 0x34a   : > { %3496 = vst.msk [vmem:[%s12506_s22] sm:$0x1] %vm12509_vm8, %v3475_v35  ;;  %v12525_v18 = vsel %vm3332_vm10, %v6814_v46, %v6810_v2  ;;  %v3391_v19 = vsel %vm3283_vm9, %v3390_v5, %v3386_v47  ;;  %v3430_v36 = vrot.slane %v12800_v40, %v12166_v25  ;;  %v3440_v1 = vrot.slane %v12801_v16, %v12308_v22  ;;  %v12809_v40 = vld [vmem:[#allocation14_spill] sm:$0xff] }
 0x34b   : > { %7088 = vst.msk [vmem:[%s162_s19 + $0x2] sm:$0x3] %vm12494_vm15, %v7082_v30  ;;  %v3244_v49 = vpop.permute.xlu1 %3243  ;;  %v3396_v3 = vsel %vm3290_vm4, %v3395_v62, %v3391_v19  ;;  %v3450_v54 = vrot.slane %v12802_v52, %v12434_v34  ;;  %v3460_v23 = vrot.slane %v12803_v14, %v12445_v7  ;;  %vm12804_vm15 = vcmask 1048512   ;;  %v12805_v62 = vld [vmem:[#allocation8_spill] sm:$0xff] }
 0x34c   : > { %v3401_v58 = vsel %vm3297_vm14, %v3400_v0, %v3396_v3  ;;  %v3415_v41 = vrot.slane %v3244_v49, %v12412_v56  ;;  %v6700_v5 = vrot.slane %v12805_v62, %v11789_v8  ;;  %v12807_v8 = vld [vmem:[#allocation12_spill] sm:$0xff] }
 0x34d   : > { %v3406_v27 = vsel %vm3304_vm6, %v3405_v43, %v3401_v58  ;;  %v12806_v58 = vld [vmem:[#allocation10_spill] sm:$0xff] }
 0x34e   : > { %v3411_v4 = vsel %vm3311_vm11, %v3410_v55, %v3406_v27  ;;  %v6715_v27 = vrot.slane %v12806_v58, %v12011_v37 }
 0x34f   : > { %v3250_v61 = vpop.permute.xlu1 %3249  ;;  %v3416_v42 = vsel %vm3318_vm12, %v3415_v41, %v3411_v4 }
 0x350   : > { %v3425_v32 = vrot.slane %v3250_v61, %v12417_v33  ;;  %v3421_v17 = vsel %vm3325_vm13, %v3420_v15, %v3416_v42  ;;  %v12808_v42 = vld [vmem:[#allocation13_spill] sm:$0xff] }
 0x352   : > { %v3426_v44 = vsel %vm3332_vm10, %v3425_v32, %v3421_v17  ;;  %v6735_v32 = vrot.slane %v12808_v42, %v12417_v33 }
 0x353   : > { %v3431_v45 = vsel %vm3339_vm0, %v3430_v36, %v3426_v44  ;;  %v6745_v36 = vrot.slane %v12809_v40, %v12427_v21 }
 0x357   : > { %v3256_v9 = vpop.permute.xlu1 %3255 }
 0x358   : > { %v3435_v31 = vrot.slane %v3256_v9, %v12427_v21 }
 0x35a   : > { %v3436_v59 = vsel %vm3346_vm1, %v3435_v31, %v3431_v45 }
 0x35b   : > { %v3441_v50 = vsel %vm3353_vm2, %v3440_v1, %v3436_v59  ;;  %v12810_v59 = vld [vmem:[#allocation16_spill] sm:$0xff] }
 0x362   : > { %v3262_v6 = vpop.permute.xlu1 %3261 }
 0x363   : > { %v3445_v20 = vrot.slane %v3262_v6, %v12440_v63 }
 0x365   : > { %v3446_v60 = vsel %vm3360_vm3, %v3445_v20, %v3441_v50  ;;  %v6755_v20 = vrot.slane %v12810_v59, %v12440_v63 }
 0x366   : > { %v3451_v28 = vsel %vm3367_vm7, %v3450_v54, %v3446_v60 }
 0x36e   : > { %v3268_v38 = vpop.permute.xlu1 %3267 }
 0x36f   : > { %v3455_v53 = vrot.slane %v3268_v38, %v12468_v26 }
 0x371   : > { %v3456_v35 = vsel %vm3374_vm5, %v3455_v53, %v3451_v28 }
 0x372   : > { %v3461_v24 = vsel %vm12804_vm15, %v3460_v23, %v3456_v35 }
 0x373   : > { %v3482_v57 = vrot.slane %v3461_v24, %v9098_v48 }
 0x375   : > { %v3489_v46 = vrot.slane %v3482_v57, %v9098_v48 }
 0x377   : > { %3497 = vst.msk [vmem:[%s12506_s22 + $0x2] sm:$0x1] %vm12509_vm8, %v3489_v46 }
 0x378   : > { %v6599_v30 = vpop.permute.xlu1 %6598 }
 0x379   : > { %v6696_v47 = vrot.slane %v6599_v30, %v11713_v11 }
 0x37b   : > { %v6701_v3 = vsel %vm3283_vm9, %v6700_v5, %v6696_v47  ;;  %vm12811_vm9 = vmmov %vm12804_vm15 }
 0x383   : > { %v6605_v2 = vpop.permute.xlu1 %6604 }
 0x384   : > { %v6705_v49 = vrot.slane %v6605_v2, %v11806_v39  ;;  %v6677_v39 = vpop.permute.xlu0 %6676 }
 0x385   : > { %v6824_v54 = vrot.slane %v6677_v39, %v12427_v21 }
 0x386   : > { %v6706_v43 = vsel %vm3290_vm4, %v6705_v49, %v6701_v3  ;;  %vm12812_vm4 = vmmov %vm12811_vm9 }
 0x388   : > { %v6680_v17 = vpop.permute.xlu0 %6679 }
 0x389   : > { %v6829_v38 = vrot.slane %v6680_v17, %v12308_v22 }
 0x38c   : > { %v6638_v6 = vpop.permute.xlu0 %6637 }
 0x38d   : > { %v6760_v21 = vrot.slane %v6638_v6, %v12434_v34 }
 0x38e   : > { %v6608_v51 = vpop.permute.xlu1 %6607 }
 0x38f   : > { %v6710_v19 = vrot.slane %v6608_v51, %v11902_v29  ;;  %v6725_v29 = vrot.slane %v12807_v8, %v12412_v56 }
 0x390   : > { %v6683_v60 = vpop.permute.xlu0 %6682 }
 0x391   : > { %v6711_v0 = vsel %vm3297_vm14, %v6710_v19, %v6706_v43  ;;  %v6834_v14 = vrot.slane %v6683_v60, %v12440_v63 }
 0x392   : > { %v6716_v11 = vsel %vm3304_vm6, %v6715_v27, %v6711_v0 }
 0x394   : > { %v6614_v61 = vpop.permute.xlu1 %6613  ;;  %v6686_v57 = vpop.permute.xlu0 %6685 }
 0x395   : > { %v6720_v41 = vrot.slane %v6614_v61, %v12224_v12  ;;  %v6839_v30 = vrot.slane %v6686_v57, %v12434_v34 }
 0x397   : > { %v6721_v55 = vsel %vm3311_vm11, %v6720_v41, %v6716_v11 }
 0x398   : > { %v6726_v15 = vsel %vm3318_vm12, %v6725_v29, %v6721_v55  ;;  %v6689_v2 = vpop.permute.xlu0 %6688 }
 0x399   : > { %v6620_v4 = vpop.permute.xlu1 %6619  ;;  %v6844_v62 = vrot.slane %v6689_v2, %v12468_v26 }
 0x39a   : > { %v6730_v9 = vrot.slane %v6620_v4, %v12409_v13 }
 0x39c   : > { %v6731_v37 = vsel %vm3325_vm13, %v6730_v9, %v6726_v15 }
 0x39d   : > { %v6736_v12 = vsel %vm3332_vm10, %v6735_v32, %v6731_v37 }
 0x39f   : > { %v6626_v44 = vpop.permute.xlu1 %6625 }
 0x3a0   : > { %v6740_v31 = vrot.slane %v6626_v44, %v12166_v25 }
 0x3a2   : > { %v6741_v56 = vsel %vm3339_vm0, %v6740_v31, %v6736_v12 }
 0x3a3   : > { %v6746_v13 = vsel %vm3346_vm1, %v6745_v36, %v6741_v56 }
 0x3a4   : > { %v6632_v45 = vpop.permute.xlu1 %6631 }
 0x3a5   : > { %v6750_v33 = vrot.slane %v6632_v45, %v12308_v22 }
 0x3a7   : > { %v6751_v16 = vsel %vm3353_vm2, %v6750_v33, %v6746_v13 }
 0x3a8   : > { %v6756_v1 = vsel %vm3360_vm3, %v6755_v20, %v6751_v16 }
 0x3a9   : > { %v6761_v22 = vsel %vm3367_vm7, %v6760_v21, %v6756_v1 }
 0x3aa   : > { %v6674_v50 = vpop.permute.xlu1 %6673 }
 0x3ab   : > { %v6819_v52 = vrot.slane %v6674_v50, %v12166_v25 }
 0x3ad   : > { %v6820_v53 = vsel %vm3339_vm0, %v6819_v52, %v12525_v18 }
 0x3ae   : > { %v6825_v23 = vsel %vm3346_vm1, %v6824_v54, %v6820_v53 }
 0x3af   : > { %v6830_v28 = vsel %vm3353_vm2, %v6829_v38, %v6825_v23  ;;  %v6641_v35 = vpop.permute.xlu1 %6640 }
 0x3b0   : > { %v6835_v24 = vsel %vm3360_vm3, %v6834_v14, %v6830_v28  ;;  %v6765_v25 = vrot.slane %v6641_v35, %v12468_v26 }
 0x3b1   : > { %v6840_v49 = vsel %vm3367_vm7, %v6839_v30, %v6835_v24 }
 0x3b2   : > { %v6766_v63 = vsel %vm3374_vm5, %v6765_v25, %v6761_v22  ;;  %v6845_v43 = vsel %vm3374_vm5, %v6844_v62, %v6840_v49 }
 0x3b5   : > { %v6644_v46 = vpop.permute.xlu1 %6643 }
 0x3b6   : > { %v6770_v18 = vrot.slane %v6644_v46, %v12445_v7 }
 0x3b8   : > { %v6771_v51 = vsel %vm12811_vm9, %v6770_v18, %v6766_v63 }
 0x3b9   : > { %v6857_v47 = vrot.slane %v6771_v51, %v9098_v48 }
 0x3bb   : > { %v6864_v5 = vrot.slane %v6857_v47, %v9098_v48  ;;  %v6692_v19 = vpop.permute.xlu1 %6691 }
 0x3bc   : > { %v6849_v3 = vrot.slane %v6692_v19, %v12445_v7 }
 0x3bd   : > { %7256 = vst.msk [vmem:[%s12506_s22 + $0x1] sm:$0x1] %vm12509_vm8, %v6864_v5 }
 0x3be   : > { %v6850_v34 = vsel %vm12812_vm4, %v6849_v3, %v6845_v43 }
 0x3bf   : > { %v6871_v0 = vrot.slane %v6850_v34, %v9098_v48 }
 0x3c1   : > { %v6878_v61 = vrot.slane %v6871_v0, %v9098_v48 }
 0x3c3   : > { %7257 = vst.msk [vmem:[%s12506_s22 + $0x3] sm:$0x1] %vm12509_vm8, %v6878_v61 }
 0x3c4 PF: > { %s13_s9 = sadd.s32 1, %s8699_s9  }
 0x3c5   : > { %p10_p4 = scmp.ge.s32.totalorder %s13_s9, 4  }
 0x3c7   :  { %12 = sbr.rel (!%p10_p4) target bundleno = 1 (0x1), region = 69 }

</bundles_post_ra>
